<compile_context>
chip_gen: v7x
topology: tpu7x:2x2x1
jax: 0.10.0
libtpu: 0.0.40
codegen_flags: <defaults>
</compile_context>

<pallas_src>
import functools

import jax
import jax.numpy as jnp
from jax.experimental import pallas as pl
from jax.experimental.pallas import tpu as pltpu

_LANE = 128                      # lanes per vreg (last dim)
_SUB = 8                         # f32 sublanes per vreg
_TILE = _LANE * _SUB             # 1024: alignment granularity of the kernel prefix
_CHUNK_ROWS = 512                # rows per in-kernel accumulation chunk (256 KiB f32)
_MAX_BLOCK_ROWS = 8192           # rows per grid step (4 MiB f32 per input)
_SMALL_N = 64 * _TILE            # below this, plain fused XLA beats a kernel launch
_VMEM_LIMIT_BYTES = 32 * 1024 * 1024


def _pointwise(outputs, labels, margin):
    """Element-wise contrastive contribution, accumulated in f32."""
    o = outputs.astype(jnp.float32)
    l = labels.astype(jnp.float32)
    md = jnp.maximum(jnp.float32(margin) - o, 0.0)
    return l * (o * o) + (1.0 - l) * (md * md)


def _contrastive_loss_kernel(out_ref, lab_ref, psum_ref, *, margin, last_valid_rows):
    """Reduce one (block_rows, 128) tile to an (8, 128) partial sum."""
    block_rows = out_ref.shape[0]
    n_chunks = block_rows // _CHUNK_ROWS
    margin_f = jnp.float32(margin)

    def chunk_sum(start, valid_rows):
        # start is a static Python int -> zero-cost static slice.
        o = out_ref[pl.ds(start, _CHUNK_ROWS), :].astype(jnp.float32)
        l = lab_ref[pl.ds(start, _CHUNK_ROWS), :].astype(jnp.float32)
        md = jnp.maximum(margin_f - o, 0.0)
        contrib = l * (o * o) + (1.0 - l) * (md * md)
        if valid_rows is not None:
            # Row-only mask (no lane iota / flat index): zeroes Pallas
            # edge-block garbage on the last grid block only. jnp.where is a
            # select, so NaN/Inf from garbage rows cannot leak into the sum.
            r = jax.lax.broadcasted_iota(jnp.int32, contrib.shape, 0)
            contrib = jnp.where(start + r < valid_rows, contrib, 0.0)
        # (CHUNK, 128) -> (CHUNK//8, 8, 128): axis-0 sum is pure VPU vreg adds.
        return jnp.sum(contrib.reshape(_CHUNK_ROWS // _SUB, _SUB, _LANE), axis=0)

    def block_sum(n_chunks_used, valid_rows):
        # Fully-unrolled chunk loop (equivalent to fori_loop(unroll=True) but
        # with static slice starts); keeps the live set to ~one chunk + one
        # (8,128) accumulator vreg instead of full-block temporaries.
        acc = jnp.zeros((_SUB, _LANE), jnp.float32)
        for c in range(n_chunks_used):
            acc = acc + chunk_sum(c * _CHUNK_ROWS, valid_rows)
        return acc

    if last_valid_rows == block_rows:
        # block_rows divides rows: every block is full, no masking anywhere.
        psum_ref[0] = block_sum(n_chunks, None)
    else:
        i = pl.program_id(0)
        last = pl.num_programs(0) - 1
        n_chunks_last = pl.cdiv(last_valid_rows, _CHUNK_ROWS)

        @pl.when(i != last)
        def _():
            psum_ref[0] = block_sum(n_chunks, None)

        @pl.when(i == last)
        def _():
            psum_ref[0] = block_sum(n_chunks_last, last_valid_rows)


def contrastive_loss(outputs: jax.Array, labels: jax.Array, margin: float = 1.0) -> jax.Array:
    """outputs, labels: shape (N,). Returns scalar float32 loss."""
    assert outputs.ndim == 1 and labels.shape == outputs.shape
    n = outputs.shape[0]
    assert n > 0, "mean over an empty tensor is undefined"

    # Small-N fast path: kernel launch + second reduce would dominate.
    if n < _SMALL_N:
        return 0.5 * jnp.mean(_pointwise(outputs, labels, margin))

    n_aligned = (n // _TILE) * _TILE           # >= _SMALL_N, so rows >= _CHUNK_ROWS
    rows = n_aligned // _LANE                  # multiple of 8

    # block_rows: multiple of _CHUNK_ROWS, capped at _MAX_BLOCK_ROWS, and small
    # enough that grid >= 2 whenever there is more than one chunk of work (so
    # both v7x TensorCores stream HBM; harmless on single-TC v5e/v6e).
    half_rows = pl.cdiv(rows, 2)
    block_rows = min(_MAX_BLOCK_ROWS, pl.cdiv(half_rows, _CHUNK_ROWS) * _CHUNK_ROWS)
    grid = pl.cdiv(rows, block_rows)
    last_valid_rows = rows - (grid - 1) * block_rows

    if n_aligned == n:
        o2 = outputs.reshape(rows, _LANE)      # pure bitcast, no copy
        l2 = labels.reshape(rows, _LANE)
        tail_sum = jnp.float32(0.0)
    else:
        # Feed the kernel only the 1024-aligned prefix (no full padded copy);
        # the <1024-element ragged tail is a tiny fused XLA elementwise+reduce.
        o2 = outputs[:n_aligned].reshape(rows, _LANE)
        l2 = labels[:n_aligned].reshape(rows, _LANE)
        tail_sum = jnp.sum(_pointwise(outputs[n_aligned:], labels[n_aligned:], margin))

    kernel = functools.partial(
        _contrastive_loss_kernel,
        margin=float(margin),
        last_valid_rows=last_valid_rows,
    )

    partials = pl.pallas_call(
        kernel,
        out_shape=jax.ShapeDtypeStruct((grid, _SUB, _LANE), jnp.float32),
        grid_spec=pltpu.PrefetchScalarGridSpec(
            num_scalar_prefetch=0,
            grid=(grid,),
            in_specs=[
                pl.BlockSpec((block_rows, _LANE), lambda i: (i, 0)),
                pl.BlockSpec((block_rows, _LANE), lambda i: (i, 0)),
            ],
            # Each grid step owns its output block -> no carried state.
            out_specs=pl.BlockSpec((1, _SUB, _LANE), lambda i: (i, 0, 0)),
        ),
        compiler_params=pltpu.CompilerParams(
            # Independent partial sums: safe to shard across both TCs on v7x.
            dimension_semantics=("parallel",),
            # Explicit budget: 16 MiB double-buffered inputs at 8192 rows f32
            # plus chunk-sized temporaries; fits v5e/v6e/v7x.
            vmem_limit_bytes=_VMEM_LIMIT_BYTES,
        ),
    )(o2, l2)

    # Tiny final reduction (grid x 8 x 128 floats) + tail + scale in plain XLA.
    return 0.5 * (jnp.sum(partials) + tail_sum) / jnp.float32(n)


def _reference(outputs, labels, margin=1.0):
    pos = labels * outputs ** 2
    md = jnp.maximum(margin - outputs, 0.0)
    neg = (1.0 - labels) * md ** 2
    return 0.5 * jnp.mean(pos + neg)


if __name__ == "__main__":
    key = jax.random.PRNGKey(0)
    k1, k2, k3, k4, k5, k6 = jax.random.split(key, 6)

    # Small shape consistent with the module: a (N,) relevance-score vector.
    N = 8
    outputs = jax.random.normal(k1, (N,), dtype=jnp.float32)
    labels = (jax.random.uniform(k2, (N,)) > 0.5).astype(jnp.float32)
    loss = contrastive_loss(outputs, labels, margin=1.0)
    jax.block_until_ready(loss)
    ref = _reference(outputs, labels, margin=1.0)
    assert jnp.allclose(loss, ref, atol=1e-6, rtol=1e-6), (loss, ref)

    # Kernel path, uneven size: multi-block grid, masked edge block, ragged tail.
    N2 = 200_000
    outputs2 = jax.random.normal(k3, (N2,), dtype=jnp.float32)
    labels2 = (jax.random.uniform(k4, (N2,)) > 0.5).astype(jnp.float32)
    loss2 = contrastive_loss(outputs2, labels2, margin=0.5)
    jax.block_until_ready(loss2)
    ref2 = _reference(outputs2, labels2, margin=0.5)
    assert jnp.allclose(loss2, ref2, atol=1e-6, rtol=1e-4), (loss2, ref2)

    # Kernel path, aligned size: full blocks everywhere (unmasked fast path),
    # grid split across two blocks.
    N3 = 1_048_576
    outputs3 = jax.random.normal(k5, (N3,), dtype=jnp.float32)
    labels3 = (jax.random.uniform(k6, (N3,)) > 0.5).astype(jnp.float32)
    loss3 = contrastive_loss(outputs3, labels3, margin=1.0)
    jax.block_until_ready(loss3)
    ref3 = _reference(outputs3, labels3, margin=1.0)
    assert jnp.allclose(loss3, ref3, atol=1e-6, rtol=1e-4), (loss3, ref3)

    print("KERNEL_OK")
</pallas_src>

<mosaic_0001>
module attributes {stable_mosaic.version = 11 : i64} {
  func.func @_contrastive_loss_kernel(%arg0: i32, %arg1: memref<1024x128xf32, #tpu.memory_space<vmem>>, %arg2: memref<1024x128xf32, #tpu.memory_space<vmem>>, %arg3: memref<1x8x128xf32, #tpu.memory_space<vmem>>) attributes {dimension_semantics = [#tpu.dimension_semantics<parallel>], iteration_bounds = array<i64: 2>, scalar_prefetch = 0 : i64, scratch_operands = 0 : i64, tpu.core_type = #tpu.core_type<tc>, window_params = [{transform_indices = @transform_0, window_bounds = array<i64: 1024, 128>}, {transform_indices = @transform_1, window_bounds = array<i64: 1024, 128>}, {transform_indices = @transform_2, window_bounds = array<i64: 1, 8, 128>}]} {
    %c1_i32 = arith.constant 1 : i32
    %0 = arith.cmpi ne, %arg0, %c1_i32 : i32
    %1 = arith.extui %0 : i1 to i32
    %cst = arith.constant 5.000000e-01 : f32
    %c0_i32 = arith.constant 0 : i32
    %2 = arith.cmpi ne, %1, %c0_i32 : i32
    scf.if %2 {
      %cst_3 = arith.constant 0.000000e+00 : f32
      %6 = vector.broadcast %cst_3 : f32 to vector<8x128xf32>
      %c0 = arith.constant 0 : index
      %c0_4 = arith.constant 0 : index
      %7 = vector.load %arg1[%c0, %c0_4] : memref<1024x128xf32, #tpu.memory_space<vmem>>, vector<512x128xf32>
      %c0_5 = arith.constant 0 : index
      %c0_6 = arith.constant 0 : index
      %8 = vector.load %arg2[%c0_5, %c0_6] : memref<1024x128xf32, #tpu.memory_space<vmem>>, vector<512x128xf32>
      %9 = vector.broadcast %cst : f32 to vector<512x128xf32>
      %10 = arith.subf %9, %7 : vector<512x128xf32>
      %cst_7 = arith.constant 0.000000e+00 : f32
      %11 = vector.broadcast %cst_7 : f32 to vector<512x128xf32>
      %12 = arith.maximumf %10, %11 : vector<512x128xf32>
      %13 = arith.mulf %7, %7 : vector<512x128xf32>
      %14 = arith.mulf %8, %13 : vector<512x128xf32>
      %cst_8 = arith.constant 1.000000e+00 : f32
      %15 = vector.broadcast %cst_8 : f32 to vector<512x128xf32>
      %16 = arith.subf %15, %8 : vector<512x128xf32>
      %17 = arith.mulf %12, %12 : vector<512x128xf32>
      %18 = arith.mulf %16, %17 : vector<512x128xf32>
      %19 = arith.addf %14, %18 : vector<512x128xf32>
      %20 = vector.shape_cast %19 : vector<512x128xf32> to vector<64x8x128xf32>
      %cst_9 = arith.constant dense<0.000000e+00> : vector<8x128xf32>
      %21 = vector.multi_reduction <add>, %20, %cst_9 [0] : vector<64x8x128xf32> to vector<8x128xf32>
      %22 = arith.addf %6, %21 : vector<8x128xf32>
      %c512 = arith.constant 512 : index
      %c0_10 = arith.constant 0 : index
      %23 = vector.load %arg1[%c512, %c0_10] : memref<1024x128xf32, #tpu.memory_space<vmem>>, vector<512x128xf32>
      %c512_11 = arith.constant 512 : index
      %c0_12 = arith.constant 0 : index
      %24 = vector.load %arg2[%c512_11, %c0_12] : memref<1024x128xf32, #tpu.memory_space<vmem>>, vector<512x128xf32>
      %25 = vector.broadcast %cst : f32 to vector<512x128xf32>
      %26 = arith.subf %25, %23 : vector<512x128xf32>
      %cst_13 = arith.constant 0.000000e+00 : f32
      %27 = vector.broadcast %cst_13 : f32 to vector<512x128xf32>
      %28 = arith.maximumf %26, %27 : vector<512x128xf32>
      %29 = arith.mulf %23, %23 : vector<512x128xf32>
      %30 = arith.mulf %24, %29 : vector<512x128xf32>
      %cst_14 = arith.constant 1.000000e+00 : f32
      %31 = vector.broadcast %cst_14 : f32 to vector<512x128xf32>
      %32 = arith.subf %31, %24 : vector<512x128xf32>
      %33 = arith.mulf %28, %28 : vector<512x128xf32>
      %34 = arith.mulf %32, %33 : vector<512x128xf32>
      %35 = arith.addf %30, %34 : vector<512x128xf32>
      %36 = vector.shape_cast %35 : vector<512x128xf32> to vector<64x8x128xf32>
      %cst_15 = arith.constant dense<0.000000e+00> : vector<8x128xf32>
      %37 = vector.multi_reduction <add>, %36, %cst_15 [0] : vector<64x8x128xf32> to vector<8x128xf32>
      %38 = arith.addf %22, %37 : vector<8x128xf32>
      %c0_16 = arith.constant 0 : index
      %c0_17 = arith.constant 0 : index
      %c0_18 = arith.constant 0 : index
      %39 = vector.load %arg3[%c0_16, %c0_17, %c0_18] : memref<1x8x128xf32, #tpu.memory_space<vmem>>, vector<1x8x128xf32>
      %40 = vector.shape_cast %39 : vector<1x8x128xf32> to vector<8x128xf32>
      %41 = vector.shape_cast %38 : vector<8x128xf32> to vector<1x8x128xf32>
      tpu.vector_store %arg3[%c0_16, %c0_17, %c0_18], %41 {strides = array<i32>} : memref<1x8x128xf32, #tpu.memory_space<vmem>>, vector<1x8x128xf32>,
    } else {
    }
    %c1_i32_0 = arith.constant 1 : i32
    %3 = arith.cmpi eq, %arg0, %c1_i32_0 : i32
    %4 = arith.extui %3 : i1 to i32
    %cst_1 = arith.constant 5.000000e-01 : f32
    %c0_i32_2 = arith.constant 0 : i32
    %5 = arith.cmpi ne, %4, %c0_i32_2 : i32
    scf.if %5 {
      %cst_3 = arith.constant 0.000000e+00 : f32
      %6 = vector.broadcast %cst_3 : f32 to vector<8x128xf32>
      %c0 = arith.constant 0 : index
      %c0_4 = arith.constant 0 : index
      %7 = vector.load %arg1[%c0, %c0_4] : memref<1024x128xf32, #tpu.memory_space<vmem>>, vector<512x128xf32>
      %c0_5 = arith.constant 0 : index
      %c0_6 = arith.constant 0 : index
      %8 = vector.load %arg2[%c0_5, %c0_6] : memref<1024x128xf32, #tpu.memory_space<vmem>>, vector<512x128xf32>
      %9 = vector.broadcast %cst_1 : f32 to vector<512x128xf32>
      %10 = arith.subf %9, %7 : vector<512x128xf32>
      %cst_7 = arith.constant 0.000000e+00 : f32
      %11 = vector.broadcast %cst_7 : f32 to vector<512x128xf32>
      %12 = arith.maximumf %10, %11 : vector<512x128xf32>
      %13 = arith.mulf %7, %7 : vector<512x128xf32>
      %14 = arith.mulf %8, %13 : vector<512x128xf32>
      %cst_8 = arith.constant 1.000000e+00 : f32
      %15 = vector.broadcast %cst_8 : f32 to vector<512x128xf32>
      %16 = arith.subf %15, %8 : vector<512x128xf32>
      %17 = arith.mulf %12, %12 : vector<512x128xf32>
      %18 = arith.mulf %16, %17 : vector<512x128xf32>
      %19 = arith.addf %14, %18 : vector<512x128xf32>
      %20 = tpu.iota {dimensions = array<i32: 0>} : vector<512x128xi32>
      %c0_i32_9 = arith.constant 0 : i32
      %21 = vector.broadcast %c0_i32_9 : i32 to vector<512x128xi32>
      %22 = arith.addi %21, %20 : vector<512x128xi32>
      %c536_i32 = arith.constant 536 : i32
      %23 = vector.broadcast %c536_i32 : i32 to vector<512x128xi32>
      %24 = arith.cmpi slt, %22, %23 : vector<512x128xi32>
      %cst_10 = arith.constant 0.000000e+00 : f32
      %25 = vector.broadcast %cst_10 : f32 to vector<512x128xf32>
      %26 = arith.select %24, %19, %25 : vector<512x128xi1>, vector<512x128xf32>
      %27 = vector.shape_cast %26 : vector<512x128xf32> to vector<64x8x128xf32>
      %cst_11 = arith.constant dense<0.000000e+00> : vector<8x128xf32>
      %28 = vector.multi_reduction <add>, %27, %cst_11 [0] : vector<64x8x128xf32> to vector<8x128xf32>
      %29 = arith.addf %6, %28 : vector<8x128xf32>
      %c512 = arith.constant 512 : index
      %c0_12 = arith.constant 0 : index
      %30 = vector.load %arg1[%c512, %c0_12] : memref<1024x128xf32, #tpu.memory_space<vmem>>, vector<512x128xf32>
      %c512_13 = arith.constant 512 : index
      %c0_14 = arith.constant 0 : index
      %31 = vector.load %arg2[%c512_13, %c0_14] : memref<1024x128xf32, #tpu.memory_space<vmem>>, vector<512x128xf32>
      %32 = vector.broadcast %cst_1 : f32 to vector<512x128xf32>
      %33 = arith.subf %32, %30 : vector<512x128xf32>
      %cst_15 = arith.constant 0.000000e+00 : f32
      %34 = vector.broadcast %cst_15 : f32 to vector<512x128xf32>
      %35 = arith.maximumf %33, %34 : vector<512x128xf32>
      %36 = arith.mulf %30, %30 : vector<512x128xf32>
      %37 = arith.mulf %31, %36 : vector<512x128xf32>
      %cst_16 = arith.constant 1.000000e+00 : f32
      %38 = vector.broadcast %cst_16 : f32 to vector<512x128xf32>
      %39 = arith.subf %38, %31 : vector<512x128xf32>
      %40 = arith.mulf %35, %35 : vector<512x128xf32>
      %41 = arith.mulf %39, %40 : vector<512x128xf32>
      %42 = arith.addf %37, %41 : vector<512x128xf32>
      %43 = tpu.iota {dimensions = array<i32: 0>} : vector<512x128xi32>
      %c512_i32 = arith.constant 512 : i32
      %44 = vector.broadcast %c512_i32 : i32 to vector<512x128xi32>
      %45 = arith.addi %44, %43 : vector<512x128xi32>
      %c536_i32_17 = arith.constant 536 : i32
      %46 = vector.broadcast %c536_i32_17 : i32 to vector<512x128xi32>
      %47 = arith.cmpi slt, %45, %46 : vector<512x128xi32>
      %cst_18 = arith.constant 0.000000e+00 : f32
      %48 = vector.broadcast %cst_18 : f32 to vector<512x128xf32>
      %49 = arith.select %47, %42, %48 : vector<512x128xi1>, vector<512x128xf32>
      %50 = vector.shape_cast %49 : vector<512x128xf32> to vector<64x8x128xf32>
      %cst_19 = arith.constant dense<0.000000e+00> : vector<8x128xf32>
      %51 = vector.multi_reduction <add>, %50, %cst_19 [0] : vector<64x8x128xf32> to vector<8x128xf32>
      %52 = arith.addf %29, %51 : vector<8x128xf32>
      %c0_20 = arith.constant 0 : index
      %c0_21 = arith.constant 0 : index
      %c0_22 = arith.constant 0 : index
      %53 = vector.load %arg3[%c0_20, %c0_21, %c0_22] : memref<1x8x128xf32, #tpu.memory_space<vmem>>, vector<1x8x128xf32>
      %54 = vector.shape_cast %53 : vector<1x8x128xf32> to vector<8x128xf32>
      %55 = vector.shape_cast %52 : vector<8x128xf32> to vector<1x8x128xf32>
      tpu.vector_store %arg3[%c0_20, %c0_21, %c0_22], %55 {strides = array<i32>} : memref<1x8x128xf32, #tpu.memory_space<vmem>>, vector<1x8x128xf32>,
    } else {
    }
    return
  }
  func.func @transform_0(%arg0: i32) -> (i32, i32) {
    %c0_i32 = arith.constant 0 : i32
    %c0_i32_0 = arith.constant 0 : i32
    return %arg0, %c0_i32 : i32, i32
  }
  func.func @transform_1(%arg0: i32) -> (i32, i32) {
    %c0_i32 = arith.constant 0 : i32
    %c0_i32_0 = arith.constant 0 : i32
    return %arg0, %c0_i32 : i32, i32
  }
  func.func @transform_2(%arg0: i32) -> (i32, i32, i32) {
    %c0_i32 = arith.constant 0 : i32
    %c0_i32_0 = arith.constant 0 : i32
    %c0_i32_1 = arith.constant 0 : i32
    return %arg0, %c0_i32, %c0_i32_0 : i32, i32, i32
  }
}

</mosaic_0001>

<bundles_post_ra>
// kernel: tpu_custom_call.1
= control target key start
LH: loop header
LB: loop body
LE: loop exit
PB: predicated region body
PF: predicated region fallthrough
CT: control target
= control target key end

     0   :  { %7 = vsyncpa [#allocation3], 0  ;;  %s7265_s0 = inlined_call_operand.hbm [shape: f32[1560,128], index: 0, kind: input, shape index: {}]   ;;  %s7266_s1 = inlined_call_operand.hbm [shape: f32[1560,128], index: 1, kind: input, shape index: {}]   ;;  %s7267_s2 = inlined_call_operand.hbm [shape: f32[2,8,128], index: 2, kind: output, shape index: {}]  }
   0x1   :  { %9 = vsyncpa [#allocation3 + $0x1], 0 }
   0x2   :  { %10 = vsyncpa [#allocation6], 0 }
   0x3   :  { %12 = vsyncpa [#allocation6 + $0x1], 0 }
   0x4   :  { %13 = vsyncpa [#allocation4], 0 }
   0x5   :  { %15 = vsyncpa [#allocation4 + $0x1], 0  ;;  %s3783_s9 = smov 0   ;;  %s3785_s10 = smov 0  }
   0x6   :  { %s3787_s11 = smov 0   ;;  %s3789_s12 = smov 0  }
   0x7 LB: > { %s3804_s13 = sadd.s32 4294967295, %s3759_s12   ;;  %s3542_s14 = sadd.s32 4294967294, %s3759_s12   ;;  %s3759_s12 = sphi %s3789_s12, %s8415_s12   ;;  %s3755_s11 = sphi %s3787_s11, %s8414_s11   ;;  %s3751_s10 = sphi %s3785_s10, %s8413_s10   ;;  %s3747_s9 = sphi %s3783_s9, %s8412_s9  }
   0x8   : > { %s3808_s15 = sadd.s32 1, %s3759_s12   ;;  %s28_s16 = sadd.s32 1, %s3755_s11 }
   0x9   : > { %s25_s17 = ssub.s32 %s3759_s12, %s3808_s15  ;;  %p35_p0 = scmp.ne.s32.totalorder %s3755_s11, %s3751_s10 }
   0xa   : > { %p26_p1 = scmp.eq.s32.totalorder %s25_s17, 0  ;;  %p36_p2 = scmp.eq.s32.totalorder %s3759_s12, 0 }
   0xb   : > { %p41_p3 = scmp.ne.s32.totalorder %s3751_s10, %s3747_s9  ;;  %p42_p4 = scmp.eq.s32.totalorder %s3804_s13, 0 }
   0xc   : > { %s3820_s18 = scalar_select %p26_p1, %s3755_s11, %s28_s16  }
   0xd   : > { %p3822_p5 = por %p36_p2, %p35_p0  ;;  %p3826_p6 = por %p42_p4, %p41_p3 }
   0xe   : > { %p7269_p7 = scmp.eq.s32.totalorder %s3804_s13, 1  ;;  %p97_p8 = scmp.eq.s32.totalorder %s3542_s14, 1 }
   0xf   : > { %p7268_p11 = scmp.ge.s32.totalorder %s3759_s12, 2 }
  0x10   : > { %p3833_p9 = por %p7269_p7, %p35_p0  ;;  %p3837_p10 = por %p97_p8, %p41_p3 }
  0x11   : > { %113 = sbr.rel (%p7268_p11) target bundleno = 94 (0x5e), region = 16 }
  0x12   : > { %s7479_s21 = scalar_select %p3833_p9, 1, 0 }
  0x13   : > { %s7480_s22 = scalar_select %p3837_p10, 1, 0 }
  0x18   : > { %116 = sbr.rel (!%p3822_p5) target bundleno = 59 (0x3b), region = 20  ;;  %s117_s23 = sand.u32 (%p3822_p5), 1, %s3755_s11  }
  0x19   : > { %s3546_s24 = sshll.u32 (%p3822_p5), %s3759_s12, 7  ;;  %s3545_s25 = sshll.u32 (%p3822_p5), %s117_s23, 10 }
  0x1a   : > { %s123_s26 = ssub.s32 (%p3822_p5), 195, %s3546_s24  ;;  %s3851_s29 = scalar_lea.sflag (%p3822_p5), [#allocation3], %s117_s23 }
  0x1b   : > { %p124_p12 = scmp.lt.s32.totalorder (%p3822_p5), %s123_s26, 128  ;;  %s121_s30 = scalar_lea.vmem (%p3822_p5), [#allocation2], %s3545_s25 }
  0x1f   : > { %s8417_s26 = smov (!%p124_p12, %s123_s26), 128 }
  0x20   : > { %s3848_s27 = sshll.u32 %s8417_s26, 7 }
  0x21   : > { %s128_s28 = ssub.s32 16384, %s3848_s27 }
  0x22   : > { %129 = vsyncadd %s3851_s29, %s128_s28  ;;  %p3548_p13 = scmp.ne.s32.totalorder %s3848_s27, 0  ;;  %s3569_s3 = sshll.u32 %s3759_s12, 14 }
  0x23   : > { %s3859_s6 = scalar_lea.hbm %s7265_s0, %s3569_s3  ;;  %s134_s7 = sshll.u32 %s121_s30, 4  ;;  %s3861_s7 = int_to_ptr.vmem [resolvable:$true] %s134_s7 }
  0x24   : > { %s3633_s8 = scalar_lea.hbm %s3859_s6, %s3848_s27  ;;  %s3637_s17 = scalar_lea.hbm %s7265_s0, 24960 }
  0x25   : > { %p3634_p0 = scmp.ne.s32.totalorder %s3859_s6, %s3633_s8  ;;  %p3638_p3 = scmp.lt.u32.totalorder %s3859_s6, %s7265_s0 }
  0x26   : > { %p3639_p4 = scmp.lt.u32.totalorder %s3637_s17, %s3633_s8  ;;  %p3641_p12 = scmp.lt.u32.totalorder %s3633_s8, %s3859_s6 }
  0x27   : > { %p3635_p1 = pnand %p3634_p0, %p3548_p13 }
  0x28   : > { %p3640_p8 = por %p3639_p4, %p3638_p3 }
  0x29   : > { %p3636_p2 = pneg %p3635_p1 }
  0x2a   : > { %p3642_p11 = por %p3641_p12, %p3640_p8 }
  0x2c   : > { %p3643_p7 = pnand %p3642_p11, %p3636_p2 }
  0x2e   : > { %3646 = shalt.err (!%p3643_p7)
}
  0x2f   : > { %s3647_s25 = scalar_lea.vmem %s3861_s7, %s3848_s27  ;;  %s3761_s26 = smov [#allocation2]  }
  0x30   : > { %p3648_p0 = scmp.ne.s32.totalorder %s3861_s7, %s3647_s25  ;;  %s3651_s28 = sshll.u32 %s3761_s26, 4  ;;  %s3652_s28 = int_to_ptr.vmem [resolvable:$false] %s3651_s28 }
  0x31   : > { %s3653_s30 = scalar_lea.vmem %s3652_s28, 32768  ;;  %p3654_p9 = scmp.lt.s32.totalorder %s3861_s7, %s3652_s28 }
  0x32   : > { %p3649_p1 = pnand %p3648_p0, %p3548_p13  ;;  %p3655_p3 = scmp.lt.s32.totalorder %s3653_s30, %s3647_s25 }
  0x34   : > { %p3650_p10 = pneg %p3649_p1  ;;  %p3656_p4 = por %p3655_p3, %p3654_p9 }
  0x36   : > { %p3657_p8 = pnand %p3656_p4, %p3650_p10 }
  0x38   : > { %3660 = shalt.err (!%p3657_p8)
}
  0x39   : > { %s3762_s3 = smov 128   ;;  %s3763_s4 = smov 8  }
  0x3a   : > { %140 = dma.hbm_to_vmem [thread:$0]  (%p3548_p13), %s3859_s6, %s3848_s27, %s3861_s7, %s3851_s29, %s3762_s3, %s3762_s3, %s3763_s4  }
  0x3b PF: > { %143 = sbr.rel (!%p3822_p5) target bundleno = 94 (0x5e), region = 24  ;;  %s144_s5 = sand.u32 (%p3822_p5), 1, %s3755_s11  }
  0x3c   : > { %s3553_s8 = sshll.u32 (%p3822_p5), %s3759_s12, 7  ;;  %s3552_s14 = sshll.u32 (%p3822_p5), %s144_s5, 10 }
  0x3d   : > { %s150_s16 = ssub.s32 (%p3822_p5), 195, %s3553_s8  ;;  %s3895_s24 = scalar_lea.sflag (%p3822_p5), [#allocation6], %s144_s5 }
  0x3e   : > { %p151_p7 = scmp.lt.s32.totalorder (%p3822_p5), %s150_s16, 128  ;;  %s148_s27 = scalar_lea.vmem (%p3822_p5), [#allocation5], %s3552_s14 }
  0x42   : > { %s8419_s16 = smov (!%p151_p7, %s150_s16), 128 }
  0x43   : > { %s3892_s17 = sshll.u32 %s8419_s16, 7 }
  0x44   : > { %s155_s23 = ssub.s32 16384, %s3892_s17 }
  0x45   : > { %156 = vsyncadd %s3895_s24, %s155_s23  ;;  %p3555_p5 = scmp.ne.s32.totalorder %s3892_s17, 0  ;;  %s3570_s19 = sshll.u32 %s3759_s12, 14 }
  0x46   : > { %s3903_s7 = scalar_lea.hbm %s7266_s1, %s3570_s19  ;;  %s161_s25 = sshll.u32 %s148_s27, 4  ;;  %s3905_s25 = int_to_ptr.vmem [resolvable:$true] %s161_s25 }
  0x47   : > { %s3661_s26 = scalar_lea.hbm %s3903_s7, %s3892_s17  ;;  %s3665_s3 = scalar_lea.hbm %s7266_s1, 24960 }
  0x48   : > { %p3662_p9 = scmp.ne.s32.totalorder %s3903_s7, %s3661_s26  ;;  %p3666_p13 = scmp.lt.u32.totalorder %s3903_s7, %s7266_s1 }
  0x49   : > { %p3667_p2 = scmp.lt.u32.totalorder %s3665_s3, %s3661_s26  ;;  %p3669_p0 = scmp.lt.u32.totalorder %s3661_s26, %s3903_s7 }
  0x4a   : > { %p3663_p10 = pnand %p3662_p9, %p3555_p5 }
  0x4b   : > { %p3668_p12 = por %p3667_p2, %p3666_p13 }
  0x4c   : > { %p3664_p11 = pneg %p3663_p10 }
  0x4d   : > { %p3670_p1 = por %p3669_p0, %p3668_p12 }
  0x4f   : > { %p3671_p3 = pnand %p3670_p1, %p3664_p11 }
  0x51   : > { %3674 = shalt.err (!%p3671_p3)
}
  0x52   : > { %s3675_s8 = scalar_lea.vmem %s3905_s25, %s3892_s17  ;;  %s3764_s14 = smov [#allocation5]  }
  0x53   : > { %p3676_p4 = scmp.ne.s32.totalorder %s3905_s25, %s3675_s8  ;;  %s3679_s16 = sshll.u32 %s3764_s14, 4  ;;  %s3680_s16 = int_to_ptr.vmem [resolvable:$false] %s3679_s16 }
  0x54   : > { %s3681_s23 = scalar_lea.vmem %s3680_s16, 32768  ;;  %p3682_p9 = scmp.lt.s32.totalorder %s3905_s25, %s3680_s16 }
  0x55   : > { %p3677_p8 = pnand %p3676_p4, %p3555_p5  ;;  %p3683_p10 = scmp.lt.s32.totalorder %s3681_s23, %s3675_s8 }
  0x57   : > { %p3678_p7 = pneg %p3677_p8  ;;  %p3684_p13 = por %p3683_p10, %p3682_p9 }
  0x59   : > { %p3685_p2 = pnand %p3684_p13, %p3678_p7 }
  0x5b   : > { %3688 = shalt.err (!%p3685_p2)
}
  0x5c   : > { %s3765_s27 = smov 128   ;;  %s3766_s19 = smov 8  }
  0x5d   : > { %167 = dma.hbm_to_vmem [thread:$0]  (%p3555_p5), %s3903_s7, %s3892_s17, %s3905_s25, %s3895_s24, %s3765_s27, %s3765_s27, %s3766_s19  }
  0x5e PF: > { %p3559_p11 = scmp.ge.s32.totalorder %s3759_s12, 1  ;;  %p169_p12 = scmp.lt.s32.totalorder %s3759_s12, 3 }
  0x60   : > { %p170_p0 = pnand %p3559_p11, %p169_p12 }
  0x61   : > { %s3935_s29 = sand.u32 (!%p170_p0), 1, %s3751_s10  }
  0x62   : > { %173 = sbr.rel (%p170_p0) target bundleno = 702 (0x2be), region = 28  ;;  %s3560_s6 = sshll.u32 (!%p170_p0), %s3935_s29, 10 }
  0x63   : > { %s176_s26 = scalar_lea.sflag (!%p170_p0), [#allocation3], %s3935_s29  ;;  %s3939_s28 = scalar_lea.vmem (!%p170_p0), [#allocation2], %s3560_s6 }
  0x69   : > { %3734 = dma.done.wait (%p3826_p6), %s176_s26, 16384  }
  0x6a   : > { %3736 = vsyncadd (%p3826_p6), %s176_s26, 4294950912  ;;  %s185_s17 = scalar_lea.sflag [#allocation6], %s3935_s29  ;;  %s3946_s24 = scalar_lea.vmem [#allocation5], %s3560_s6 }
  0x6b   : > { %3738 = dma.done.wait (%p3826_p6), %s185_s17, 16384  }
  0x6c   : > { %3740 = vsyncadd (%p3826_p6), %s185_s17, 4294950912  ;;  %s3562_s7 = sshll.u32 %s3935_s29, 3  ;;  %p7481_p5 = scmp.eq.s32.totalorder %s3804_s13, 1 }
  0x6d   : > { %s3953_s25 = scalar_lea.vmem [#allocation7], %s3562_s7 }
  0x6e   : > { %227 = sbr.rel (%p7481_p5) target bundleno = 488 (0x1e8), region = 40 }
  0x75   : > { %v3958_v0 = vld [vmem:[%s3939_s28] sm:$0xff]  ;;  %v3961_v1 = vld [vmem:[%s3939_s28 + $0x8] sm:$0xff]  ;;  %v3964_v2 = vld [vmem:[%s3939_s28 + $0x10] sm:$0xff] }
  0x76   : > { %v3967_v3 = vld [vmem:[%s3939_s28 + $0x18] sm:$0xff]  ;;  %v3970_v4 = vld [vmem:[%s3939_s28 + $0x20] sm:$0xff]  ;;  %v3973_v5 = vld [vmem:[%s3939_s28 + $0x28] sm:$0xff]  ;;  %v4006_v19 = vmul.f32 %v3958_v0, %v3958_v0  ;;  %v4022_v26 = vmul.f32 %v3961_v1, %v3961_v1  ;;  %v4038_v33 = vmul.f32 %v3964_v2, %v3964_v2 }
  0x77   : > { %v3976_v6 = vld [vmem:[%s3939_s28 + $0x30] sm:$0xff]  ;;  %v3979_v7 = vld [vmem:[%s3939_s28 + $0x38] sm:$0xff]  ;;  %v3982_v8 = vld [vmem:[%s3939_s28 + $0x40] sm:$0xff]  ;;  %v4054_v40 = vmul.f32 %v3967_v3, %v3967_v3  ;;  %v4070_v47 = vmul.f32 %v3970_v4, %v3970_v4  ;;  %v4086_v54 = vmul.f32 %v3973_v5, %v3973_v5 }
  0x78   : > { %v3985_v9 = vld [vmem:[%s3939_s28 + $0x48] sm:$0xff]  ;;  %v3988_v10 = vld [vmem:[%s3939_s28 + $0x50] sm:$0xff]  ;;  %v3993_v13 = vld [vmem:[%s3939_s28 + $0x58] sm:$0xff]  ;;  %7482 = vst [vmem:[#allocation11_spill] sm:$0xff] %v4038_v33  ;;  %v4102_v61 = vmul.f32 %v3976_v6, %v3976_v6  ;;  %v4118_v60 = vmul.f32 %v3979_v7, %v3979_v7  ;;  %v4134_v59 = vmul.f32 %v3982_v8, %v3982_v8 }
  0x79   : > { %v3996_v14 = vld [vmem:[%s3939_s28 + $0x60] sm:$0xff]  ;;  %v3999_v15 = vld [vmem:[%s3939_s28 + $0x68] sm:$0xff]  ;;  %v4009_v20 = vld [vmem:[%s3939_s28 + $0x70] sm:$0xff]  ;;  %7483 = vst [vmem:[#allocation12_spill] sm:$0xff] %v4054_v40  ;;  %v4150_v58 = vmul.f32 %v3985_v9, %v3985_v9  ;;  %v4166_v52 = vmul.f32 %v3988_v10, %v3988_v10  ;;  %v4182_v44 = vmul.f32 %v3993_v13, %v3993_v13 }
  0x7a   : > { %v4012_v21 = vld [vmem:[%s3939_s28 + $0x78] sm:$0xff]  ;;  %v4015_v22 = vld [vmem:[%s3939_s28 + $0x80] sm:$0xff]  ;;  %v4025_v27 = vld [vmem:[%s3939_s28 + $0x88] sm:$0xff]  ;;  %7484 = vst [vmem:[#allocation13_spill] sm:$0xff] %v4070_v47  ;;  %v4198_v32 = vmul.f32 %v3996_v14, %v3996_v14  ;;  %v4214_v24 = vmul.f32 %v3999_v15, %v3999_v15  ;;  %v4230_v16 = vmul.f32 %v4009_v20, %v4009_v20 }
  0x7b   : > { %v4028_v28 = vld [vmem:[%s3939_s28 + $0x90] sm:$0xff]  ;;  %v4031_v29 = vld [vmem:[%s3939_s28 + $0x98] sm:$0xff]  ;;  %v4041_v34 = vld [vmem:[%s3939_s28 + $0xa0] sm:$0xff]  ;;  %7485 = vst [vmem:[#allocation14_spill] sm:$0xff] %v4086_v54  ;;  %v4262_v40 = vmul.f32 %v4015_v22, %v4015_v22 }
  0x7c   : > { %v4044_v35 = vld [vmem:[%s3939_s28 + $0xa8] sm:$0xff]  ;;  %v4047_v36 = vld [vmem:[%s3939_s28 + $0xb0] sm:$0xff]  ;;  %v4057_v41 = vld [vmem:[%s3939_s28 + $0xb8] sm:$0xff]  ;;  %7486 = vst [vmem:[#allocation15_spill] sm:$0xff] %v4102_v61 }
  0x7d   : > { %v4060_v42 = vld [vmem:[%s3939_s28 + $0xc0] sm:$0xff]  ;;  %v4063_v43 = vld [vmem:[%s3939_s28 + $0xc8] sm:$0xff]  ;;  %v4073_v48 = vld [vmem:[%s3939_s28 + $0xd0] sm:$0xff]  ;;  %7487 = vst [vmem:[#allocation16_spill] sm:$0xff] %v4118_v60 }
  0x7e   : > { %v4076_v49 = vld [vmem:[%s3939_s28 + $0xd8] sm:$0xff]  ;;  %v4079_v50 = vld [vmem:[%s3939_s28 + $0xe0] sm:$0xff]  ;;  %v4089_v55 = vld [vmem:[%s3939_s28 + $0xe8] sm:$0xff]  ;;  %7488 = vst [vmem:[#allocation17_spill] sm:$0xff] %v4134_v59 }
  0x7f   : > { %v4092_v56 = vld [vmem:[%s3939_s28 + $0xf0] sm:$0xff]  ;;  %v4095_v57 = vld [vmem:[%s3939_s28 + $0xf8] sm:$0xff]  ;;  %v4105_v62 = vld [vmem:[%s3939_s28 + $0x100] sm:$0xff]  ;;  %7489 = vst [vmem:[#allocation18_spill] sm:$0xff] %v4150_v58  ;;  %v4246_v58 = vmul.f32 %v4012_v21, %v4012_v21 }
  0x80   : > { %v4108_v63 = vld [vmem:[%s3939_s28 + $0x108] sm:$0xff]  ;;  %v4111_v53 = vld [vmem:[%s3939_s28 + $0x110] sm:$0xff]  ;;  %v4121_v51 = vld [vmem:[%s3939_s28 + $0x118] sm:$0xff]  ;;  %7493 = vst [vmem:[#allocation22_spill] sm:$0xff] %v4166_v52 }
  0x81   : > { %v4124_v46 = vld [vmem:[%s3939_s28 + $0x120] sm:$0xff]  ;;  %v4127_v45 = vld [vmem:[%s3939_s28 + $0x128] sm:$0xff]  ;;  %v4137_v39 = vld [vmem:[%s3939_s28 + $0x130] sm:$0xff]  ;;  %7497 = vst [vmem:[#allocation26_spill] sm:$0xff] %v4182_v44 }
  0x82   : > { %v4140_v38 = vld [vmem:[%s3939_s28 + $0x138] sm:$0xff]  ;;  %v4143_v37 = vld [vmem:[%s3939_s28 + $0x140] sm:$0xff]  ;;  %v4153_v31 = vld [vmem:[%s3939_s28 + $0x148] sm:$0xff]  ;;  %7501 = vst [vmem:[#allocation30_spill] sm:$0xff] %v4198_v32 }
  0x83   : > { %7490 = vst [vmem:[#allocation19_spill] sm:$0xff] %v4153_v31  ;;  %v4156_v30 = vld [vmem:[%s3939_s28 + $0x150] sm:$0xff]  ;;  %v4159_v25 = vld [vmem:[%s3939_s28 + $0x158] sm:$0xff]  ;;  %v4169_v23 = vld [vmem:[%s3939_s28 + $0x160] sm:$0xff]  ;;  %v4309_v31 = vmul.f32 %v4044_v35, %v4044_v35 }
  0x84   : > { %7491 = vst [vmem:[#allocation20_spill] sm:$0xff] %v4156_v30  ;;  %7492 = vst [vmem:[#allocation21_spill] sm:$0xff] %v4159_v25  ;;  %v4172_v18 = vld [vmem:[%s3939_s28 + $0x168] sm:$0xff]  ;;  %v4175_v17 = vld [vmem:[%s3939_s28 + $0x170] sm:$0xff]  ;;  %v7519_v30 = vsub.f32 0.5, %v3973_v5  ;;  %v7524_v5 = vsub.f32 0.5, %v3985_v9  ;;  %v4357_v9 = vmul.f32 %v4060_v42, %v4060_v42 }
  0x85   : > { %7494 = vst [vmem:[#allocation23_spill] sm:$0xff] %v4169_v23  ;;  %7495 = vst [vmem:[#allocation24_spill] sm:$0xff] %v4172_v18  ;;  %v4185_v12 = vld [vmem:[%s3939_s28 + $0x178] sm:$0xff]  ;;  %v4188_v11 = vld [vmem:[%s3939_s28 + $0x180] sm:$0xff]  ;;  %v4275_v23 = vmul.f32 %v4025_v27, %v4025_v27 }
  0x86   : > { %7496 = vst [vmem:[#allocation25_spill] sm:$0xff] %v4175_v17  ;;  %7498 = vst [vmem:[#allocation27_spill] sm:$0xff] %v4185_v12  ;;  %v4191_v52 = vld [vmem:[%s3939_s28 + $0x188] sm:$0xff]  ;;  %v4201_v44 = vld [vmem:[%s3939_s28 + $0x190] sm:$0xff]  ;;  %v7516_v12 = vsub.f32 0.5, %v3964_v2 }
  0x87   : > { %7499 = vst [vmem:[#allocation28_spill] sm:$0xff] %v4188_v11  ;;  %7500 = vst [vmem:[#allocation29_spill] sm:$0xff] %v4191_v52  ;;  %v4204_v59 = vld [vmem:[%s3939_s28 + $0x198] sm:$0xff]  ;;  %v4207_v60 = vld [vmem:[%s3939_s28 + $0x1a0] sm:$0xff] }
  0x88   : > { %7502 = vst [vmem:[#allocation31_spill] sm:$0xff] %v4207_v60  ;;  %7503 = vst [vmem:[#allocation32_spill] sm:$0xff] %v4214_v24  ;;  %v4217_v32 = vld [vmem:[%s3939_s28 + $0x1a8] sm:$0xff]  ;;  %v4220_v54 = vld [vmem:[%s3939_s28 + $0x1b0] sm:$0xff]  ;;  %v4282_v60 = vmul.f32 %v4028_v28, %v4028_v28 }
  0x89   : > { %v4223_v47 = vld [vmem:[%s3939_s28 + $0x1b8] sm:$0xff]  ;;  %7505 = vst [vmem:[#allocation34_spill] sm:$0xff] %v4230_v16  ;;  %v4233_v24 = vld [vmem:[%s3939_s28 + $0x1c0] sm:$0xff]  ;;  %v4236_v25 = vld [vmem:[%s3939_s28 + $0x1c8] sm:$0xff] }
  0x8a   : > { %7504 = vst [vmem:[#allocation33_spill] sm:$0xff] %v4223_v47  ;;  %v4239_v33 = vld [vmem:[%s3939_s28 + $0x1d0] sm:$0xff]  ;;  %7506 = vst [vmem:[#allocation35_spill] sm:$0xff] %v4246_v58  ;;  %v4249_v17 = vld [vmem:[%s3939_s28 + $0x1d8] sm:$0xff]  ;;  %v4289_v47 = vmul.f32 %v4031_v29, %v4031_v29  ;;  %v7515_v58 = vsub.f32 0.5, %v3961_v1  ;;  %v7520_v1 = vsub.f32 0.5, %v3976_v6  ;;  %v4341_v6 = vmul.f32 %v4057_v41, %v4057_v41 }
  0x8b   : > { %v4252_v16 = vld [vmem:[%s3939_s28 + $0x1e0] sm:$0xff]  ;;  %v4255_v18 = vld [vmem:[%s3939_s28 + $0x1e8] sm:$0xff]  ;;  %7509 = vst [vmem:[#allocation38_spill] sm:$0xff] %v4262_v40  ;;  %v4265_v61 = vld [vmem:[%s3939_s28 + $0x1f0] sm:$0xff]  ;;  %v7513_v40 = vsub.f32 0.5, %v3958_v0  ;;  %v7518_v0 = vsub.f32 0.5, %v3970_v4 }
  0x8c   : > { %7507 = vst [vmem:[#allocation36_spill] sm:$0xff] %v4252_v16  ;;  %7508 = vst [vmem:[#allocation37_spill] sm:$0xff] %v4255_v18  ;;  %v4268_v52 = vld [vmem:[%s3939_s28 + $0x1f8] sm:$0xff]  ;;  %v421_v11 = vmax.f32 %v7515_v58, 0.0  ;;  %v422_v18 = vmax.f32 %v7516_v12, 0.0  ;;  %v7517_v16 = vsub.f32 0.5, %v3967_v3  ;;  %v4325_v3 = vmul.f32 %v4047_v36, %v4047_v36 }
  0x8d   : > { %7510 = vst [vmem:[#allocation39_spill] sm:$0xff] %v4275_v23  ;;  %7511 = vst [vmem:[#allocation40_spill] sm:$0xff] %v4282_v60  ;;  %v420_v23 = vmax.f32 %v7513_v40, 0.0  ;;  %v4297_v60 = vmul.f32 %v4041_v34, %v4041_v34  ;;  %v4313_v40 = vmax.f32 %v7518_v0, 0.0  ;;  %v4321_v2 = vmax.f32 %v7520_v1, 0.0 }
  0x8e   : > { %7512 = vst [vmem:[#allocation41_spill] sm:$0xff] %v4289_v47  ;;  %v4305_v47 = vmax.f32 %v7517_v16, 0.0  ;;  %7521 = vst [vmem:[#allocation43_spill] sm:$0xff] %v4325_v3  ;;  %v7522_v12 = vsub.f32 0.5, %v3979_v7  ;;  %v7523_v4 = vsub.f32 0.5, %v3982_v8  ;;  %v7525_v0 = vsub.f32 0.5, %v3988_v10 }
  0x8f   : > { %7514 = vst [vmem:[#allocation42_spill] sm:$0xff] %v4297_v60  ;;  %v4317_v60 = vmax.f32 %v7519_v30, 0.0  ;;  %v4337_v30 = vmax.f32 %v7524_v5, 0.0  ;;  %v7526_v7 = vsub.f32 0.5, %v3993_v13  ;;  %v7528_v8 = vsub.f32 0.5, %v3996_v14 }
  0x90   : > { %v4329_v16 = vmax.f32 %v7522_v12, 0.0  ;;  %v4333_v58 = vmax.f32 %v7523_v4, 0.0  ;;  %v4345_v1 = vmax.f32 %v7525_v0, 0.0  ;;  %v7530_v5 = vsub.f32 0.5, %v3999_v15 }
  0x91   : > { %v4349_v12 = vmax.f32 %v7526_v7, 0.0  ;;  %v4353_v4 = vmax.f32 %v7528_v8, 0.0  ;;  %v7532_v10 = vsub.f32 0.5, %v4009_v20  ;;  %v7534_v13 = vsub.f32 0.5, %v4012_v21 }
  0x92   : > { %v4361_v3 = vmax.f32 %v7530_v5, 0.0  ;;  %v4373_v14 = vmul.f32 %v4063_v43, %v4063_v43  ;;  %v7536_v8 = vsub.f32 0.5, %v4015_v22  ;;  %v7538_v15 = vsub.f32 0.5, %v4025_v27 }
  0x93   : > { %7527 = vst [vmem:[#allocation44_spill] sm:$0xff] %v4349_v12  ;;  %7529 = vst [vmem:[#allocation45_spill] sm:$0xff] %v4353_v4  ;;  %v4365_v0 = vmax.f32 %v7532_v10, 0.0  ;;  %v4369_v7 = vmax.f32 %v7534_v13, 0.0  ;;  %v7540_v20 = vsub.f32 0.5, %v4028_v28  ;;  %v4389_v21 = vmul.f32 %v4073_v48, %v4073_v48  ;;  %v292_v13 = vld [vmem:[%s3946_s24] sm:$0xff] }
  0x94   : > { %7531 = vst [vmem:[#allocation46_spill] sm:$0xff] %v4361_v3  ;;  %v4377_v4 = vmax.f32 %v7536_v8, 0.0  ;;  %v4381_v5 = vmax.f32 %v7538_v15, 0.0  ;;  %v7544_v22 = vsub.f32 0.5, %v4041_v34  ;;  %v7546_v8 = vsub.f32 0.5, %v4044_v35 }
  0x95   : > { %7533 = vst [vmem:[#allocation47_spill] sm:$0xff] %v4365_v0  ;;  %7535 = vst [vmem:[#allocation48_spill] sm:$0xff] %v4369_v7  ;;  %v4385_v10 = vmax.f32 %v7540_v20, 0.0  ;;  %v293_v7 = vld [vmem:[%s3946_s24 + $0x8] sm:$0xff]  ;;  %v7542_v0 = vsub.f32 0.5, %v4031_v29  ;;  %v4407_v15 = vmul.f32 %v4076_v49, %v4076_v49  ;;  %v7548_v20 = vsub.f32 0.5, %v4047_v36 }
  0x96   : > { %7537 = vst [vmem:[#allocation49_spill] sm:$0xff] %v4377_v4  ;;  %7539 = vst [vmem:[#allocation50_spill] sm:$0xff] %v4381_v5  ;;  %v4399_v27 = vmax.f32 %v7544_v22, 0.0  ;;  %v4403_v28 = vmax.f32 %v7546_v8, 0.0  ;;  %v7550_v29 = vsub.f32 0.5, %v4057_v41  ;;  %v7552_v34 = vsub.f32 0.5, %v4060_v42 }
  0x97   : > { %7541 = vst [vmem:[#allocation51_spill] sm:$0xff] %v4385_v10  ;;  %v4395_v3 = vmax.f32 %v7542_v0, 0.0  ;;  %v4411_v10 = vmax.f32 %v7548_v20, 0.0  ;;  %v4423_v35 = vmul.f32 %v4079_v50, %v4079_v50  ;;  %v7554_v8 = vsub.f32 0.5, %v4063_v43  ;;  %v294_v43 = vld [vmem:[%s3946_s24 + $0x10] sm:$0xff] }
  0x98   : > { %7545 = vst [vmem:[#allocation53_spill] sm:$0xff] %v4399_v27  ;;  %7547 = vst [vmem:[#allocation54_spill] sm:$0xff] %v4403_v28  ;;  %v4415_v0 = vmax.f32 %v7550_v29, 0.0  ;;  %v4419_v22 = vmax.f32 %v7552_v34, 0.0  ;;  %v7556_v36 = vsub.f32 0.5, %v4073_v48  ;;  %v7558_v41 = vsub.f32 0.5, %v4076_v49 }
  0x99   : > { %7543 = vst [vmem:[#allocation52_spill] sm:$0xff] %v4395_v3  ;;  %7549 = vst [vmem:[#allocation55_spill] sm:$0xff] %v4411_v10  ;;  %v4427_v28 = vmax.f32 %v7554_v8, 0.0  ;;  %v4439_v42 = vmul.f32 %v4089_v55, %v4089_v55  ;;  %v612_v34 = vsub.f32 1.0, %v292_v13  ;;  %v677_v10 = vmul.f32 %v421_v11, %v421_v11 }
  0x9a   : > { %7551 = vst [vmem:[#allocation56_spill] sm:$0xff] %v4415_v0  ;;  %7553 = vst [vmem:[#allocation57_spill] sm:$0xff] %v4419_v22  ;;  %v4431_v20 = vmax.f32 %v7556_v36, 0.0  ;;  %v4435_v29 = vmax.f32 %v7558_v41, 0.0  ;;  %v613_v22 = vsub.f32 1.0, %v293_v7  ;;  %v676_v0 = vmul.f32 %v420_v23, %v420_v23 }
  0x9b   : > { %7555 = vst [vmem:[#allocation58_spill] sm:$0xff] %v4427_v28  ;;  %v7560_v8 = vsub.f32 0.5, %v4079_v50  ;;  %v7562_v48 = vsub.f32 0.5, %v4089_v55  ;;  %v7564_v49 = vsub.f32 0.5, %v4092_v56  ;;  %v7566_v23 = vsub.f32 0.5, %v4095_v57 }
  0x9c   : > { %7557 = vst [vmem:[#allocation59_spill] sm:$0xff] %v4431_v20  ;;  %7559 = vst [vmem:[#allocation60_spill] sm:$0xff] %v4435_v29  ;;  %v4456_v29 = vmul.f32 %v4092_v56, %v4092_v56  ;;  %v7568_v50 = vsub.f32 0.5, %v4105_v62  ;;  %v7570_v55 = vsub.f32 0.5, %v4108_v63 }
  0x9d   : > { %v4444_v28 = vmax.f32 %v7560_v8, 0.0  ;;  %v4448_v36 = vmax.f32 %v7562_v48, 0.0  ;;  %v4452_v41 = vmax.f32 %v7564_v49, 0.0  ;;  %v4460_v11 = vmax.f32 %v7566_v23, 0.0 }
  0x9e   : > { %v4464_v8 = vmax.f32 %v7568_v50, 0.0  ;;  %v4468_v48 = vmax.f32 %v7570_v55, 0.0  ;;  %v4472_v49 = vmul.f32 %v4095_v57, %v4095_v57  ;;  %v4480_v23 = vmul.f32 %v4105_v62, %v4105_v62 }
  0x9f   : > { %7561 = vst [vmem:[#allocation61_spill] sm:$0xff] %v4444_v28  ;;  %7563 = vst [vmem:[#allocation62_spill] sm:$0xff] %v4448_v36  ;;  %v549_v50 = vmul.f32 %v4022_v26, %v293_v7  ;;  %v614_v36 = vsub.f32 1.0, %v294_v43  ;;  %v678_v55 = vmul.f32 %v422_v18, %v422_v18  ;;  %v741_v28 = vmul.f32 %v677_v10, %v613_v22 }
  0xa0   : > { %7565 = vst [vmem:[#allocation63_spill] sm:$0xff] %v4452_v41  ;;  %7567 = vst [vmem:[#allocation64_spill] sm:$0xff] %v4460_v11  ;;  %v7572_v41 = vsub.f32 0.5, %v4111_v53  ;;  %v548_v11 = vmul.f32 %v4006_v19, %v292_v13  ;;  %v7574_v57 = vsub.f32 0.5, %v4121_v51  ;;  %v7578_v62 = vsub.f32 0.5, %v4127_v45 }
  0xa1   : > { %7569 = vst [vmem:[#allocation65_spill] sm:$0xff] %v4464_v8  ;;  %7571 = vst [vmem:[#allocation66_spill] sm:$0xff] %v4468_v48  ;;  %v295_v8 = vld [vmem:[%s3946_s24 + $0x18] sm:$0xff]  ;;  %v740_v48 = vmul.f32 %v676_v0, %v612_v34  ;;  %v4499_v19 = vmul.f32 %v4108_v63, %v4108_v63  ;;  %v7580_v18 = vsub.f32 0.5, %v4137_v39  ;;  %v7582_v7 = vsub.f32 0.5, %v4140_v38  ;;  %v7586_v34 = vld [vmem:[#allocation19_spill] sm:$0xff] }
  0xa2   : > { %v4476_v56 = vmax.f32 %v7572_v41, 0.0  ;;  %v4487_v20 = vmax.f32 %v7574_v57, 0.0  ;;  %v7576_v41 = vsub.f32 0.5, %v4124_v46  ;;  %v4495_v27 = vmax.f32 %v7578_v62, 0.0 }
  0xa3   : > { %v4503_v26 = vmax.f32 %v7580_v18, 0.0  ;;  %v4507_v10 = vmax.f32 %v7582_v7, 0.0  ;;  %v7584_v13 = vsub.f32 0.5, %v4143_v37  ;;  %v4515_v22 = vmul.f32 %v4111_v53, %v4111_v53 }
  0xa4   : > { %7573 = vst [vmem:[#allocation67_spill] sm:$0xff] %v4476_v56  ;;  %7575 = vst [vmem:[#allocation68_spill] sm:$0xff] %v4487_v20  ;;  %v4491_v56 = vmax.f32 %v7576_v41, 0.0  ;;  %v7587_v57 = vsub.f32 0.5, %v7586_v34  ;;  %v7589_v41 = vld [vmem:[#allocation20_spill] sm:$0xff]  ;;  %v615_v7 = vsub.f32 1.0, %v295_v8  ;;  %v805_v53 = vadd.f32 %v741_v28, %v549_v50 }
  0xa5   : > { %7579 = vst [vmem:[#allocation70_spill] sm:$0xff] %v4495_v27  ;;  %7581 = vst [vmem:[#allocation71_spill] sm:$0xff] %v4503_v26  ;;  %v4511_v0 = vmax.f32 %v7584_v13, 0.0  ;;  %v7590_v62 = vsub.f32 0.5, %v7589_v41  ;;  %v7592_v26 = vld [vmem:[#allocation11_spill] sm:$0xff]  ;;  %v679_v13 = vmul.f32 %v4305_v47, %v4305_v47  ;;  %v7593_v20 = vld [vmem:[#allocation21_spill] sm:$0xff] }
  0xa6   : > { %7577 = vst [vmem:[#allocation69_spill] sm:$0xff] %v4491_v56  ;;  %7583 = vst [vmem:[#allocation72_spill] sm:$0xff] %v4507_v10  ;;  %v4519_v63 = vmax.f32 %v7587_v57, 0.0  ;;  %v550_v27 = vmul.f32 %v7592_v26, %v294_v43  ;;  %v296_v10 = vld [vmem:[%s3946_s24 + $0x20] sm:$0xff]  ;;  %v804_v56 = vadd.f32 %v740_v48, %v548_v11  ;;  %v7594_v3 = vsub.f32 0.5, %v7593_v20  ;;  %v7596_v57 = vld [vmem:[#allocation23_spill] sm:$0xff] }
  0xa7   : > { %7585 = vst [vmem:[#allocation73_spill] sm:$0xff] %v4511_v0  ;;  %v4523_v18 = vmax.f32 %v7590_v62, 0.0  ;;  %v742_v0 = vmul.f32 %v678_v55, %v614_v36  ;;  %v7599_v62 = vld [vmem:[#allocation24_spill] sm:$0xff]  ;;  %v4543_v26 = vmul.f32 %v4121_v51, %v4121_v51  ;;  %v7603_v47 = vld [vmem:[#allocation25_spill] sm:$0xff]  ;;  %v7606_v28 = vld [vmem:[#allocation27_spill] sm:$0xff] }
  0xa8   : > { %7588 = vst [vmem:[#allocation19_spill] sm:$0xff] %v4519_v63  ;;  %v4531_v5 = vmax.f32 %v7594_v3, 0.0  ;;  %v7597_v63 = vsub.f32 0.5, %v7596_v57  ;;  %v7604_v36 = vsub.f32 0.5, %v7603_v47  ;;  %v7607_v48 = vsub.f32 0.5, %v7606_v28  ;;  %v7609_v50 = vld [vmem:[#allocation28_spill] sm:$0xff] }
  0xa9   : > { %7591 = vst [vmem:[#allocation20_spill] sm:$0xff] %v4523_v18  ;;  %v7600_v18 = vsub.f32 0.5, %v7599_v62  ;;  %7602 = vst [vmem:[#allocation24_spill] sm:$0xff] %v4543_v26  ;;  %v7610_v55 = vsub.f32 0.5, %v7609_v50  ;;  %v806_v12 = vadd.f32 %v742_v0, %v550_v27 }
  0xaa   : > { %7595 = vst [vmem:[#allocation11_spill] sm:$0xff] %v4531_v5  ;;  %v4535_v4 = vmax.f32 %v7597_v63, 0.0  ;;  %v4547_v11 = vmax.f32 %v7604_v36, 0.0  ;;  %v4551_v3 = vmax.f32 %v7607_v48, 0.0  ;;  %v4567_v36 = vmul.f32 %v4127_v45, %v4127_v45  ;;  %v7622_v45 = vld [vmem:[#allocation31_spill] sm:$0xff] }
  0xab   : > { %v4539_v43 = vmax.f32 %v7600_v18, 0.0  ;;  %v4555_v63 = vmax.f32 %v7610_v55, 0.0  ;;  %v4559_v18 = vmul.f32 %v4124_v46, %v4124_v46  ;;  %v616_v48 = vsub.f32 1.0, %v296_v10 }
  0xac   : > { %7598 = vst [vmem:[#allocation21_spill] sm:$0xff] %v4535_v4  ;;  %7605 = vst [vmem:[#allocation25_spill] sm:$0xff] %v4547_v11  ;;  %v7617_v11 = vld [vmem:[#allocation12_spill] sm:$0xff]  ;;  %v680_v55 = vmul.f32 %v4313_v40, %v4313_v40  ;;  %v868_v46 = vadd.f32 %v805_v53, %v804_v56  ;;  %v7625_v40 = vsub.f32 0.5, %v4217_v32  ;;  %v7627_v56 = vsub.f32 0.5, %v4220_v54 }
  0xad   : > { %7601 = vst [vmem:[#allocation23_spill] sm:$0xff] %v4539_v43  ;;  %7608 = vst [vmem:[#allocation27_spill] sm:$0xff] %v4551_v3  ;;  %v7613_v43 = vld [vmem:[#allocation29_spill] sm:$0xff]  ;;  %v551_v5 = vmul.f32 %v7617_v11, %v295_v8  ;;  %v297_v3 = vld [vmem:[%s3946_s24 + $0x28] sm:$0xff]  ;;  %v4587_v11 = vmul.f32 %v4137_v39, %v4137_v39 }
  0xae   : > { %7611 = vst [vmem:[#allocation28_spill] sm:$0xff] %v4555_v63  ;;  %7612 = vst [vmem:[#allocation74_spill] sm:$0xff] %v4559_v18  ;;  %v7614_v4 = vsub.f32 0.5, %v7613_v43  ;;  %v743_v63 = vmul.f32 %v679_v13, %v615_v7  ;;  %v7618_v18 = vsub.f32 0.5, %v4201_v44  ;;  %v4591_v27 = vmax.f32 %v7625_v40, 0.0  ;;  %v7629_v7 = vld [vmem:[#allocation33_spill] sm:$0xff] }
  0xaf   : > { %7616 = vst [vmem:[#allocation75_spill] sm:$0xff] %v4567_v36  ;;  %v7623_v36 = vsub.f32 0.5, %v7622_v45  ;;  %v4595_v0 = vmax.f32 %v7627_v56, 0.0  ;;  %v7630_v13 = vsub.f32 0.5, %v7629_v7  ;;  %v617_v56 = vsub.f32 1.0, %v297_v3 }
  0xb0   : > { %v4563_v51 = vmax.f32 %v7614_v4, 0.0  ;;  %v4575_v26 = vmax.f32 %v7618_v18, 0.0  ;;  %v7620_v4 = vsub.f32 0.5, %v4204_v59  ;;  %7626 = vst [vmem:[#allocation77_spill] sm:$0xff] %v4591_v27  ;;  %v4603_v18 = vmul.f32 %v4140_v38, %v4140_v38  ;;  %v7637_v27 = vld [vmem:[#allocation13_spill] sm:$0xff] }
  0xb1   : > { %v4583_v8 = vmax.f32 %v7623_v36, 0.0  ;;  %7628 = vst [vmem:[#allocation78_spill] sm:$0xff] %v4595_v0  ;;  %v4599_v53 = vmax.f32 %v7630_v13, 0.0  ;;  %v7633_v36 = vsub.f32 0.5, %v4233_v24  ;;  %v298_v0 = vld [vmem:[%s3946_s24 + $0x30] sm:$0xff]  ;;  %v681_v13 = vmul.f32 %v4317_v60, %v4317_v60  ;;  %v7645_v60 = vld [vmem:[#allocation37_spill] sm:$0xff] }
  0xb2   : > { %7615 = vst [vmem:[#allocation29_spill] sm:$0xff] %v4563_v51  ;;  %7619 = vst [vmem:[#allocation12_spill] sm:$0xff] %v4575_v26  ;;  %v4579_v51 = vmax.f32 %v7620_v4, 0.0  ;;  %v7635_v4 = vsub.f32 0.5, %v4236_v25  ;;  %v869_v38 = vadd.f32 %v868_v46, %v806_v12  ;;  %v7638_v26 = vsub.f32 0.5, %v4239_v33 }
  0xb3   : > { %7624 = vst [vmem:[#allocation31_spill] sm:$0xff] %v4583_v8  ;;  %7631 = vst [vmem:[#allocation33_spill] sm:$0xff] %v4599_v53  ;;  %v4607_v39 = vmax.f32 %v7633_v36, 0.0  ;;  %v552_v8 = vmul.f32 %v7637_v27, %v296_v10  ;;  %v744_v53 = vmul.f32 %v680_v55, %v616_v48  ;;  %v7640_v36 = vsub.f32 0.5, %v4249_v17 }
  0xb4   : > { %7621 = vst [vmem:[#allocation76_spill] sm:$0xff] %v4579_v51  ;;  %7632 = vst [vmem:[#allocation79_spill] sm:$0xff] %v4603_v18  ;;  %v4611_v40 = vmax.f32 %v7635_v4, 0.0  ;;  %v807_v51 = vadd.f32 %v743_v63, %v551_v5  ;;  %v4619_v18 = vmax.f32 %v7638_v26, 0.0  ;;  %v7642_v4 = vld [vmem:[#allocation36_spill] sm:$0xff]  ;;  %v4631_v27 = vmul.f32 %v4143_v37, %v4143_v37 }
  0xb5   : > { %7634 = vst [vmem:[#allocation80_spill] sm:$0xff] %v4607_v39  ;;  %v4623_v39 = vmax.f32 %v7640_v36, 0.0  ;;  %v7646_v48 = vsub.f32 0.5, %v7645_v60  ;;  %v7648_v12 = vsub.f32 0.5, %v4265_v61  ;;  %v7650_v63 = vsub.f32 0.5, %v4268_v52  ;;  %v7652_v36 = vld [vmem:[#allocation14_spill] sm:$0xff] }
  0xb6   : > { %7636 = vst [vmem:[#allocation81_spill] sm:$0xff] %v4611_v40  ;;  %7639 = vst [vmem:[#allocation13_spill] sm:$0xff] %v4619_v18  ;;  %v7643_v40 = vsub.f32 0.5, %v7642_v4  ;;  %v4647_v46 = vmul.f32 %v7586_v34, %v7586_v34  ;;  %v4651_v37 = vmul.f32 %v7589_v41, %v7589_v41  ;;  %v870_v34 = vadd.f32 %v869_v38, %v807_v51  ;;  %v7653_v51 = vld [vmem:[#allocation15_spill] sm:$0xff] }
  0xb7   : > { %7641 = vst [vmem:[#allocation82_spill] sm:$0xff] %v4623_v39  ;;  %v4635_v5 = vmax.f32 %v7646_v48, 0.0  ;;  %v4639_v26 = vmax.f32 %v7648_v12, 0.0  ;;  %v4643_v55 = vmax.f32 %v7650_v63, 0.0  ;;  %v553_v48 = vmul.f32 %v7652_v36, %v297_v3  ;;  %v4750_v36 = vld [vmem:[%s3946_s24 + $0x50] sm:$0xff]  ;;  %v7664_v39 = vld [vmem:[#allocation18_spill] sm:$0xff] }
  0xb8   : > { %v4627_v10 = vmax.f32 %v7643_v40, 0.0  ;;  %v4655_v40 = vmul.f32 %v7593_v20, %v7593_v20  ;;  %v618_v12 = vsub.f32 1.0, %v298_v0  ;;  %v682_v63 = vmul.f32 %v4321_v2, %v4321_v2 }
  0xb9   : > { %7647 = vst [vmem:[#allocation37_spill] sm:$0xff] %v4635_v5  ;;  %7649 = vst [vmem:[#allocation83_spill] sm:$0xff] %v4639_v26  ;;  %v299_v26 = vld [vmem:[%s3946_s24 + $0x38] sm:$0xff]  ;;  %v808_v5 = vadd.f32 %v744_v53, %v552_v8  ;;  %v4667_v41 = vmul.f32 %v7599_v62, %v7599_v62  ;;  %v4671_v20 = vmul.f32 %v7603_v47, %v7603_v47  ;;  %v300_v53 = vld [vmem:[%s3946_s24 + $0x40] sm:$0xff] }
  0xba   : > { %7644 = vst [vmem:[#allocation36_spill] sm:$0xff] %v4627_v10  ;;  %7651 = vst [vmem:[#allocation84_spill] sm:$0xff] %v4643_v55  ;;  %v745_v55 = vmul.f32 %v681_v13, %v617_v56  ;;  %v4663_v10 = vmul.f32 %v7596_v57, %v7596_v57  ;;  %v4675_v3 = vmul.f32 %v7606_v28, %v7606_v28  ;;  %v619_v8 = vsub.f32 1.0, %v299_v26 }
  0xbb   : > { %v4679_v2 = vmul.f32 %v7609_v50, %v7609_v50  ;;  %v4683_v57 = vmul.f32 %v7613_v43, %v7613_v43  ;;  %v4687_v62 = vmul.f32 %v4201_v44, %v4201_v44  ;;  %v4691_v47 = vmul.f32 %v4204_v59, %v4204_v59 }
  0xbc   : > { %v4695_v28 = vmul.f32 %v7622_v45, %v7622_v45  ;;  %v4699_v50 = vmul.f32 %v4217_v32, %v4217_v32  ;;  %v554_v43 = vmul.f32 %v7653_v51, %v298_v0  ;;  %v683_v44 = vmul.f32 %v4329_v16, %v4329_v16  ;;  %v4767_v51 = vld [vmem:[%s3946_s24 + $0x78] sm:$0xff] }
  0xbd   : > { %v746_v56 = vmul.f32 %v682_v63, %v618_v12  ;;  %v809_v59 = vadd.f32 %v745_v55, %v553_v48  ;;  %v871_v13 = vadd.f32 %v870_v34, %v808_v5  ;;  %v4707_v45 = vmul.f32 %v4220_v54, %v4220_v54  ;;  %v7659_v5 = vld [vmem:[#allocation16_spill] sm:$0xff]  ;;  %v4756_v48 = vld [vmem:[%s3946_s24 + $0x60] sm:$0xff]  ;;  %v4761_v34 = vld [vmem:[%s3946_s24 + $0x68] sm:$0xff]  ;;  %7662 = vst [vmem:[#allocation89_spill] sm:$0xff] %v4767_v51 }
  0xbe   : > { %v4711_v32 = vmul.f32 %v7629_v7, %v7629_v7  ;;  %v4715_v0 = vmul.f32 %v4233_v24, %v4233_v24  ;;  %v4719_v16 = vmul.f32 %v4236_v25, %v4236_v25  ;;  %v4723_v38 = vmul.f32 %v4239_v33, %v4239_v33  ;;  %v4738_v25 = vld [vmem:[%s3946_s24 + $0x48] sm:$0xff]  ;;  %7660 = vst [vmem:[#allocation16_spill] sm:$0xff] %v4761_v34 }
  0xbf   : > { %v4727_v54 = vmul.f32 %v4249_v17, %v4249_v17  ;;  %v4731_v7 = vmul.f32 %v7642_v4, %v7642_v4  ;;  %v4735_v24 = vmul.f32 %v7645_v60, %v7645_v60  ;;  %v4742_v33 = vmul.f32 %v4265_v61, %v4265_v61  ;;  %v4753_v60 = vld [vmem:[%s3946_s24 + $0x58] sm:$0xff] }
  0xc0   : > { %v4746_v17 = vmul.f32 %v4268_v52, %v4268_v52  ;;  %v555_v55 = vmul.f32 %v7659_v5, %v299_v26  ;;  %v620_v4 = vsub.f32 1.0, %v300_v53  ;;  %v684_v61 = vmul.f32 %v4333_v58, %v4333_v58  ;;  %v4764_v26 = vld [vmem:[%s3946_s24 + $0x70] sm:$0xff]  ;;  %v7663_v5 = vld [vmem:[#allocation17_spill] sm:$0xff] }
  0xc1   : > { %7654 = vst [vmem:[#allocation14_spill] sm:$0xff] %v4727_v54  ;;  %7655 = vst [vmem:[#allocation15_spill] sm:$0xff] %v4731_v7  ;;  %v747_v12 = vmul.f32 %v683_v44, %v619_v8  ;;  %v810_v63 = vadd.f32 %v746_v56, %v554_v43  ;;  %v872_v52 = vadd.f32 %v871_v13, %v809_v59  ;;  %v7666_v43 = vld [vmem:[#allocation26_spill] sm:$0xff]  ;;  %v4783_v44 = vld [vmem:[%s3946_s24 + $0x80] sm:$0xff] }
  0xc2   : > { %7656 = vst [vmem:[#allocation85_spill] sm:$0xff] %v4735_v24  ;;  %7657 = vst [vmem:[#allocation86_spill] sm:$0xff] %v4742_v33  ;;  %v4772_v18 = vmul.f32 %v7664_v39, %v4738_v25  ;;  %v7665_v33 = vld [vmem:[#allocation22_spill] sm:$0xff]  ;;  %v4780_v8 = vmul.f32 %v7666_v43, %v4753_v60  ;;  %v7673_v13 = vld [vmem:[#allocation32_spill] sm:$0xff] }
  0xc3   : > { %7658 = vst [vmem:[#allocation87_spill] sm:$0xff] %v4746_v17  ;;  %7661 = vst [vmem:[#allocation88_spill] sm:$0xff] %v4764_v26  ;;  %v556_v17 = vmul.f32 %v7663_v5, %v300_v53  ;;  %v4776_v58 = vmul.f32 %v7665_v33, %v4750_v36  ;;  %v4786_v56 = vld [vmem:[%s3946_s24 + $0x88] sm:$0xff]  ;;  %v4789_v53 = vld [vmem:[%s3946_s24 + $0x90] sm:$0xff]  ;;  %v4797_v33 = vmul.f32 %v7673_v13, %v4761_v34 }
  0xc4   : > { %7667 = vst [vmem:[#allocation17_spill] sm:$0xff] %v4780_v8  ;;  %7668 = vst [vmem:[#allocation18_spill] sm:$0xff] %v4783_v44  ;;  %v7671_v39 = vld [vmem:[#allocation30_spill] sm:$0xff]  ;;  %v7677_v8 = vld [vmem:[#allocation35_spill] sm:$0xff] }
  0xc5   : > { %7669 = vst [vmem:[#allocation22_spill] sm:$0xff] %v4786_v56  ;;  %7670 = vst [vmem:[#allocation26_spill] sm:$0xff] %v4789_v53  ;;  %v4793_v59 = vmul.f32 %v7671_v39, %v4756_v48  ;;  %v7675_v5 = vld [vmem:[#allocation34_spill] sm:$0xff]  ;;  %v4805_v24 = vmul.f32 %v7677_v8, %v4767_v51  ;;  %v4808_v7 = vld [vmem:[%s3946_s24 + $0x98] sm:$0xff]  ;;  %v621_v8 = vsub.f32 1.0, %v4738_v25 }
  0xc6   : > { %7674 = vst [vmem:[#allocation32_spill] sm:$0xff] %v4797_v33  ;;  %v4801_v43 = vmul.f32 %v7675_v5, %v4764_v26  ;;  %v4811_v54 = vld [vmem:[%s3946_s24 + $0xa0] sm:$0xff]  ;;  %v7679_v39 = vld [vmem:[#allocation38_spill] sm:$0xff]  ;;  %v7681_v13 = vld [vmem:[#allocation39_spill] sm:$0xff] }
  0xc7   : > { %7672 = vst [vmem:[#allocation30_spill] sm:$0xff] %v4793_v59  ;;  %7678 = vst [vmem:[#allocation35_spill] sm:$0xff] %v4805_v24  ;;  %v4815_v59 = vmul.f32 %v7679_v39, %v4783_v44  ;;  %v4819_v33 = vmul.f32 %v7681_v13, %v4786_v56  ;;  %v7683_v5 = vld [vmem:[#allocation40_spill] sm:$0xff]  ;;  %v4827_v24 = vld [vmem:[%s3946_s24 + $0xa8] sm:$0xff]  ;;  %v685_v39 = vmul.f32 %v4337_v30, %v4337_v30 }
  0xc8   : > { %7676 = vst [vmem:[#allocation34_spill] sm:$0xff] %v4801_v43  ;;  %v4823_v43 = vmul.f32 %v7683_v5, %v4789_v53  ;;  %v4830_v51 = vld [vmem:[%s3946_s24 + $0xb0] sm:$0xff]  ;;  %v4833_v26 = vld [vmem:[%s3946_s24 + $0xb8] sm:$0xff]  ;;  %v748_v13 = vmul.f32 %v684_v61, %v620_v4  ;;  %v4838_v5 = vld [vmem:[%s3946_s24 + $0xc0] sm:$0xff]  ;;  %v4856_v30 = vmul.f32 %v4309_v31, %v4827_v24 }
  0xc9   : > { %7680 = vst [vmem:[#allocation38_spill] sm:$0xff] %v4815_v59  ;;  %7682 = vst [vmem:[#allocation39_spill] sm:$0xff] %v4819_v33  ;;  %v811_v33 = vadd.f32 %v747_v12, %v555_v55  ;;  %v873_v59 = vadd.f32 %v872_v52, %v810_v63  ;;  %v4844_v25 = vld [vmem:[%s3946_s24 + $0xd0] sm:$0xff]  ;;  %v7687_v53 = vld [vmem:[#allocation41_spill] sm:$0xff]  ;;  %v4873_v52 = vmul.f32 %v4341_v6, %v4833_v26 }
  0xca   : > { %7684 = vst [vmem:[#allocation40_spill] sm:$0xff] %v4823_v43  ;;  %v4841_v43 = vld [vmem:[%s3946_s24 + $0xc8] sm:$0xff]  ;;  %7686 = vst [vmem:[#allocation91_spill] sm:$0xff] %v4844_v25  ;;  %v4848_v56 = vmul.f32 %v7687_v53, %v4808_v7  ;;  %v7692_v55 = vld [vmem:[#allocation43_spill] sm:$0xff]  ;;  %v4877_v31 = vmul.f32 %v4357_v9, %v4838_v5  ;;  %v4885_v53 = vmul.f32 %v4389_v21, %v4844_v25  ;;  %v622_v21 = vsub.f32 1.0, %v4750_v36 }
  0xcb   : > { %7685 = vst [vmem:[#allocation90_spill] sm:$0xff] %v4841_v43  ;;  %v7689_v44 = vld [vmem:[#allocation42_spill] sm:$0xff]  ;;  %7691 = vst [vmem:[#allocation92_spill] sm:$0xff] %v4856_v30  ;;  %v4860_v4 = vmul.f32 %v7692_v55, %v4830_v51  ;;  %v4863_v61 = vld [vmem:[%s3946_s24 + $0xd8] sm:$0xff] }
  0xcc   : > { %7688 = vst [vmem:[#allocation41_spill] sm:$0xff] %v4848_v56  ;;  %v4852_v34 = vmul.f32 %v7689_v44, %v4811_v54  ;;  %7694 = vst [vmem:[#allocation93_spill] sm:$0xff] %v4863_v61  ;;  %v4866_v12 = vld [vmem:[%s3946_s24 + $0xe0] sm:$0xff]  ;;  %v4869_v63 = vld [vmem:[%s3946_s24 + $0xe8] sm:$0xff]  ;;  %v4881_v44 = vmul.f32 %v4373_v14, %v4841_v43  ;;  %v4895_v6 = vmul.f32 %v4407_v15, %v4863_v61 }
  0xcd   : > { %7693 = vst [vmem:[#allocation43_spill] sm:$0xff] %v4860_v4  ;;  %7695 = vst [vmem:[#allocation94_spill] sm:$0xff] %v4866_v12  ;;  %v4888_v55 = vld [vmem:[%s3946_s24 + $0xf0] sm:$0xff]  ;;  %v4891_v4 = vld [vmem:[%s3946_s24 + $0xf8] sm:$0xff]  ;;  %v4899_v9 = vmul.f32 %v4423_v35, %v4866_v12  ;;  %v4903_v14 = vmul.f32 %v4439_v42, %v4869_v63  ;;  %v686_v15 = vmul.f32 %v4345_v1, %v4345_v1 }
  0xce   : > { %7690 = vst [vmem:[#allocation42_spill] sm:$0xff] %v4852_v34  ;;  %7696 = vst [vmem:[#allocation95_spill] sm:$0xff] %v4869_v63  ;;  %v749_v35 = vmul.f32 %v685_v39, %v621_v8  ;;  %v4918_v42 = vld [vmem:[%s3946_s24 + $0x118] sm:$0xff]  ;;  %v4924_v36 = vld [vmem:[%s3946_s24 + $0x128] sm:$0xff]  ;;  %v4932_v30 = vmul.f32 %v4472_v49, %v4891_v4 }
  0xcf   : > { %7697 = vst [vmem:[#allocation96_spill] sm:$0xff] %v4873_v52  ;;  %7698 = vst [vmem:[#allocation97_spill] sm:$0xff] %v4877_v31  ;;  %v4913_v31 = vld [vmem:[%s3946_s24 + $0x110] sm:$0xff]  ;;  %v4928_v52 = vmul.f32 %v4456_v29, %v4888_v55  ;;  %v4949_v29 = vld [vmem:[%s3946_s24 + $0x140] sm:$0xff] }
  0xd0   : > { %7699 = vst [vmem:[#allocation98_spill] sm:$0xff] %v4881_v44  ;;  %7700 = vst [vmem:[#allocation99_spill] sm:$0xff] %v4885_v53  ;;  %v4907_v53 = vld [vmem:[%s3946_s24 + $0x100] sm:$0xff]  ;;  %v4910_v44 = vld [vmem:[%s3946_s24 + $0x108] sm:$0xff]  ;;  %v4953_v49 = vmul.f32 %v4515_v22, %v4913_v31 }
  0xd1   : > { %7701 = vst [vmem:[#allocation100_spill] sm:$0xff] %v4888_v55  ;;  %7702 = vst [vmem:[#allocation101_spill] sm:$0xff] %v4891_v4  ;;  %v4936_v1 = vmul.f32 %v4480_v23, %v4907_v53  ;;  %v7720_v8 = vld [vmem:[#allocation24_spill] sm:$0xff]  ;;  %v7722_v39 = vld [vmem:[#allocation74_spill] sm:$0xff] }
  0xd2   : > { %7703 = vst [vmem:[#allocation102_spill] sm:$0xff] %v4895_v6  ;;  %7704 = vst [vmem:[#allocation103_spill] sm:$0xff] %v4899_v9  ;;  %v812_v9 = vadd.f32 %v748_v13, %v556_v17  ;;  %v874_v6 = vadd.f32 %v873_v59, %v811_v33  ;;  %v4940_v17 = vmul.f32 %v4499_v19, %v4910_v44  ;;  %v4943_v59 = vld [vmem:[%s3946_s24 + $0x130] sm:$0xff]  ;;  %v4946_v33 = vld [vmem:[%s3946_s24 + $0x138] sm:$0xff] }
  0xd3   : > { %7705 = vst [vmem:[#allocation104_spill] sm:$0xff] %v4903_v14  ;;  %7706 = vst [vmem:[#allocation105_spill] sm:$0xff] %v4907_v53  ;;  %v4921_v14 = vld [vmem:[%s3946_s24 + $0x120] sm:$0xff]  ;;  %v4957_v23 = vmul.f32 %v7720_v8, %v4918_v42  ;;  %v7724_v13 = vld [vmem:[#allocation75_spill] sm:$0xff]  ;;  %v4975_v22 = vmul.f32 %v4587_v11, %v4943_v59 }
  0xd4   : > { %7707 = vst [vmem:[#allocation106_spill] sm:$0xff] %v4910_v44  ;;  %7708 = vst [vmem:[#allocation107_spill] sm:$0xff] %v4913_v31  ;;  %v4961_v19 = vmul.f32 %v7722_v39, %v4921_v14  ;;  %v7729_v8 = vld [vmem:[#allocation79_spill] sm:$0xff]  ;;  %v4983_v39 = vmul.f32 %v4631_v27, %v4949_v29  ;;  %v7735_v11 = vld [vmem:[#allocation44_spill] sm:$0xff]  ;;  %v875_v27 = vadd.f32 %v874_v6, %v812_v9 }
  0xd5   : > { %7709 = vst [vmem:[#allocation108_spill] sm:$0xff] %v4918_v42  ;;  %7710 = vst [vmem:[#allocation109_spill] sm:$0xff] %v4921_v14  ;;  %v5024_v9 = vld [vmem:[%s3946_s24 + $0x188] sm:$0xff]  ;;  %v7843_v42 = vld [vmem:[#allocation40_spill] sm:$0xff] }
  0xd6   : > { %7711 = vst [vmem:[#allocation110_spill] sm:$0xff] %v4924_v36  ;;  %7712 = vst [vmem:[#allocation111_spill] sm:$0xff] %v4928_v52  ;;  %v5005_v52 = vld [vmem:[%s3946_s24 + $0x180] sm:$0xff]  ;;  %v7845_v53 = vld [vmem:[#allocation80_spill] sm:$0xff] }
  0xd7   : > { %7713 = vst [vmem:[#allocation112_spill] sm:$0xff] %v4932_v30  ;;  %7714 = vst [vmem:[#allocation113_spill] sm:$0xff] %v4936_v1  ;;  %v4968_v1 = vld [vmem:[%s3946_s24 + $0x148] sm:$0xff]  ;;  %v4971_v30 = vld [vmem:[%s3946_s24 + $0x150] sm:$0xff] }
  0xd8   : > { %7715 = vst [vmem:[#allocation114_spill] sm:$0xff] %v4940_v17  ;;  %7716 = vst [vmem:[#allocation115_spill] sm:$0xff] %v4943_v59  ;;  %v4965_v17 = vmul.f32 %v7724_v13, %v4924_v36  ;;  %v623_v13 = vsub.f32 1.0, %v4753_v60  ;;  %v5002_v60 = vld [vmem:[%s3946_s24 + $0x178] sm:$0xff]  ;;  %v5009_v34 = vmul.f32 %v4647_v46, %v4968_v1  ;;  %v5013_v56 = vmul.f32 %v4651_v37, %v4971_v30  ;;  %v7840_v59 = vld [vmem:[#allocation77_spill] sm:$0xff] }
  0xd9   : > { %7717 = vst [vmem:[#allocation116_spill] sm:$0xff] %v4946_v33  ;;  %7718 = vst [vmem:[#allocation117_spill] sm:$0xff] %v4949_v29  ;;  %v5030_v46 = vld [vmem:[%s3946_s24 + $0x198] sm:$0xff]  ;;  %v7833_v29 = vld [vmem:[#allocation25_spill] sm:$0xff] }
  0xda   : > { %7719 = vst [vmem:[#allocation118_spill] sm:$0xff] %v4953_v49  ;;  %7721 = vst [vmem:[#allocation24_spill] sm:$0xff] %v4957_v23  ;;  %v4979_v23 = vmul.f32 %v7729_v8, %v4946_v33  ;;  %v4993_v49 = vld [vmem:[%s3946_s24 + $0x168] sm:$0xff]  ;;  %v750_v8 = vmul.f32 %v686_v15, %v622_v21  ;;  %v5027_v21 = vld [vmem:[%s3946_s24 + $0x190] sm:$0xff]  ;;  %v5046_v15 = vmul.f32 %v4679_v2, %v5005_v52  ;;  %v624_v2 = vsub.f32 1.0, %v4756_v48 }
  0xdb   : > { %7723 = vst [vmem:[#allocation74_spill] sm:$0xff] %v4961_v19  ;;  %7725 = vst [vmem:[#allocation75_spill] sm:$0xff] %v4965_v17  ;;  %v4987_v17 = vld [vmem:[%s3946_s24 + $0x158] sm:$0xff]  ;;  %v4990_v19 = vld [vmem:[%s3946_s24 + $0x160] sm:$0xff]  ;;  %v5034_v37 = vmul.f32 %v4667_v41, %v4993_v49  ;;  %v5056_v41 = vmul.f32 %v4683_v57, %v5024_v9 }
  0xdc   : > { %7726 = vst [vmem:[#allocation119_spill] sm:$0xff] %v4968_v1  ;;  %7727 = vst [vmem:[#allocation120_spill] sm:$0xff] %v4971_v30  ;;  %v5021_v6 = vmul.f32 %v4663_v10, %v4990_v19  ;;  %v5042_v10 = vmul.f32 %v4675_v3, %v5002_v60  ;;  %v5064_v3 = vmul.f32 %v4691_v47, %v5030_v46  ;;  %v7758_v57 = vld [vmem:[#allocation45_spill] sm:$0xff]  ;;  %v5080_v47 = vld [vmem:[%s3946_s24 + $0x1c8] sm:$0xff] }
  0xdd   : > { %7728 = vst [vmem:[#allocation121_spill] sm:$0xff] %v4975_v22  ;;  %7730 = vst [vmem:[#allocation79_spill] sm:$0xff] %v4979_v23  ;;  %v687_v22 = vmul.f32 %v7735_v11, %v7735_v11  ;;  %v813_v23 = vadd.f32 %v749_v35, %v4772_v18  ;;  %v5017_v18 = vmul.f32 %v4655_v40, %v4987_v17  ;;  %v5049_v35 = vld [vmem:[%s3946_s24 + $0x1a0] sm:$0xff]  ;;  %v5052_v11 = vld [vmem:[%s3946_s24 + $0x1a8] sm:$0xff] }
  0xde   : > { %7731 = vst [vmem:[#allocation122_spill] sm:$0xff] %v4983_v39  ;;  %7732 = vst [vmem:[#allocation123_spill] sm:$0xff] %v4987_v17  ;;  %v4999_v39 = vld [vmem:[%s3946_s24 + $0x170] sm:$0xff]  ;;  %v5086_v48 = vld [vmem:[%s3946_s24 + $0x1d8] sm:$0xff] }
  0xdf   : > { %7733 = vst [vmem:[#allocation124_spill] sm:$0xff] %v4990_v19  ;;  %7734 = vst [vmem:[#allocation125_spill] sm:$0xff] %v4993_v49  ;;  %v5038_v40 = vmul.f32 %v4671_v20, %v4999_v39  ;;  %v5060_v20 = vmul.f32 %v4687_v62, %v5027_v21  ;;  %v751_v62 = vmul.f32 %v687_v22, %v623_v13  ;;  %v5108_v13 = vld [vmem:[%s3946_s24 + $0x1e8] sm:$0xff]  ;;  %v7829_v19 = vld [vmem:[#allocation20_spill] sm:$0xff] }
  0xe0   : > { %7736 = vst [vmem:[#allocation44_spill] sm:$0xff] %v4999_v39  ;;  %7737 = vst [vmem:[#allocation126_spill] sm:$0xff] %v5002_v60  ;;  %v7828_v39 = vld [vmem:[#allocation39_spill] sm:$0xff]  ;;  %v7831_v30 = vld [vmem:[#allocation21_spill] sm:$0xff] }
  0xe1   : > { %7738 = vst [vmem:[#allocation127_spill] sm:$0xff] %v5005_v52  ;;  %7739 = vst [vmem:[#allocation128_spill] sm:$0xff] %v5009_v34  ;;  %v7783_v34 = vld [vmem:[#allocation88_spill] sm:$0xff]  ;;  %v7826_v52 = vld [vmem:[#allocation19_spill] sm:$0xff] }
  0xe2   : > { %7740 = vst [vmem:[#allocation129_spill] sm:$0xff] %v5013_v56  ;;  %7741 = vst [vmem:[#allocation130_spill] sm:$0xff] %v5017_v18  ;;  %v5094_v18 = vmul.f32 %v4699_v50, %v5052_v11  ;;  %v5119_v50 = vmul.f32 %v4719_v16, %v5080_v47  ;;  %v7830_v17 = vld [vmem:[#allocation11_spill] sm:$0xff]  ;;  %v7841_v36 = vld [vmem:[#allocation78_spill] sm:$0xff] }
  0xe3   : > { %7742 = vst [vmem:[#allocation131_spill] sm:$0xff] %v5021_v6  ;;  %7743 = vst [vmem:[#allocation132_spill] sm:$0xff] %v5024_v9  ;;  %v5090_v6 = vmul.f32 %v4695_v28, %v5049_v35  ;;  %v7825_v9 = vld [vmem:[#allocation73_spill] sm:$0xff]  ;;  %v7832_v1 = vld [vmem:[#allocation23_spill] sm:$0xff] }
  0xe4   : > { %7744 = vst [vmem:[#allocation133_spill] sm:$0xff] %v5027_v21  ;;  %7745 = vst [vmem:[#allocation134_spill] sm:$0xff] %v5030_v46  ;;  %v7818_v46 = vld [vmem:[#allocation66_spill] sm:$0xff]  ;;  %v7824_v21 = vld [vmem:[#allocation72_spill] sm:$0xff] }
  0xe5   : > { %7746 = vst [vmem:[#allocation135_spill] sm:$0xff] %v5034_v37  ;;  %7747 = vst [vmem:[#allocation136_spill] sm:$0xff] %v5038_v40  ;;  %v5074_v40 = vld [vmem:[%s3946_s24 + $0x1c0] sm:$0xff]  ;;  %v876_v37 = vadd.f32 %v875_v27, %v813_v23  ;;  %v7839_v33 = vld [vmem:[#allocation31_spill] sm:$0xff] }
  0xe6   : > { %7748 = vst [vmem:[#allocation137_spill] sm:$0xff] %v5042_v10  ;;  %7749 = vst [vmem:[#allocation138_spill] sm:$0xff] %v5046_v15  ;;  %v5068_v15 = vld [vmem:[%s3946_s24 + $0x1b0] sm:$0xff]  ;;  %v5071_v10 = vld [vmem:[%s3946_s24 + $0x1b8] sm:$0xff]  ;;  %v5115_v28 = vmul.f32 %v4715_v0, %v5074_v40 }
  0xe7   : > { %7750 = vst [vmem:[#allocation139_spill] sm:$0xff] %v5049_v35  ;;  %7751 = vst [vmem:[#allocation140_spill] sm:$0xff] %v5052_v11  ;;  %v5098_v22 = vmul.f32 %v4707_v45, %v5068_v15  ;;  %v5105_v23 = vld [vmem:[%s3946_s24 + $0x1e0] sm:$0xff]  ;;  %v7816_v11 = vld [vmem:[#allocation64_spill] sm:$0xff] }
  0xe8   : > { %7752 = vst [vmem:[#allocation141_spill] sm:$0xff] %v5056_v41  ;;  %7753 = vst [vmem:[#allocation142_spill] sm:$0xff] %v5060_v20  ;;  %v688_v41 = vmul.f32 %v7758_v57, %v7758_v57  ;;  %v814_v20 = vadd.f32 %v750_v8, %v4776_v58  ;;  %v5102_v58 = vmul.f32 %v4711_v32, %v5071_v10  ;;  %v5111_v8 = vld [vmem:[%s3946_s24 + $0x1f0] sm:$0xff]  ;;  %v7772_v32 = vld [vmem:[#allocation14_spill] sm:$0xff] }
  0xe9   : > { %7754 = vst [vmem:[#allocation143_spill] sm:$0xff] %v5064_v3  ;;  %7755 = vst [vmem:[#allocation144_spill] sm:$0xff] %v5068_v15  ;;  %v5083_v3 = vld [vmem:[%s3946_s24 + $0x1d0] sm:$0xff]  ;;  %v5127_v27 = vmul.f32 %v7772_v32, %v5086_v48  ;;  %v7782_v32 = vld [vmem:[#allocation17_spill] sm:$0xff] }
  0xea   : > { %7756 = vst [vmem:[#allocation145_spill] sm:$0xff] %v5071_v10  ;;  %7757 = vst [vmem:[#allocation146_spill] sm:$0xff] %v5074_v40  ;;  %v5123_v45 = vmul.f32 %v4723_v38, %v5083_v3  ;;  %v7774_v57 = vld [vmem:[#allocation15_spill] sm:$0xff]  ;;  %v7781_v38 = vld [vmem:[#allocation46_spill] sm:$0xff]  ;;  %v877_v56 = vadd.f32 %v876_v37, %v814_v20 }
  0xeb   : > { %7759 = vst [vmem:[#allocation45_spill] sm:$0xff] %v5080_v47  ;;  %7760 = vst [vmem:[#allocation147_spill] sm:$0xff] %v5083_v3  ;;  %v7787_v3 = vld [vmem:[#allocation26_spill] sm:$0xff]  ;;  %v7815_v10 = vld [vmem:[#allocation63_spill] sm:$0xff] }
  0xec   : > { %7761 = vst [vmem:[#allocation148_spill] sm:$0xff] %v5086_v48  ;;  %7762 = vst [vmem:[#allocation149_spill] sm:$0xff] %v5090_v6  ;;  %v752_v6 = vmul.f32 %v688_v41, %v624_v2  ;;  %v7785_v48 = vld [vmem:[#allocation18_spill] sm:$0xff]  ;;  %v7788_v2 = vld [vmem:[#allocation47_spill] sm:$0xff] }
  0xed   : > { %7763 = vst [vmem:[#allocation150_spill] sm:$0xff] %v5094_v18  ;;  %7764 = vst [vmem:[#allocation151_spill] sm:$0xff] %v5098_v22  ;;  %v7776_v22 = vld [vmem:[#allocation85_spill] sm:$0xff]  ;;  %v7814_v40 = vld [vmem:[#allocation62_spill] sm:$0xff] }
  0xee   : > { %7765 = vst [vmem:[#allocation152_spill] sm:$0xff] %v5102_v58  ;;  %7766 = vst [vmem:[#allocation153_spill] sm:$0xff] %v5105_v23  ;;  %v5131_v58 = vmul.f32 %v7774_v57, %v5105_v23  ;;  %v5135_v0 = vmul.f32 %v7776_v22, %v5108_v13  ;;  %v626_v57 = vsub.f32 1.0, %v7783_v34  ;;  %v628_v22 = vsub.f32 1.0, %v7785_v48  ;;  %v7799_v34 = vld [vmem:[#allocation50_spill] sm:$0xff]  ;;  %v7817_v35 = vld [vmem:[#allocation65_spill] sm:$0xff] }
  0xef   : > { %7767 = vst [vmem:[#allocation154_spill] sm:$0xff] %v5108_v13  ;;  %7768 = vst [vmem:[#allocation155_spill] sm:$0xff] %v5111_v8  ;;  %v7800_v13 = vld [vmem:[#allocation35_spill] sm:$0xff]  ;;  %v7844_v44 = vld [vmem:[#allocation33_spill] sm:$0xff] }
  0xf0   : > { %7769 = vst [vmem:[#allocation156_spill] sm:$0xff] %v5115_v28  ;;  %7770 = vst [vmem:[#allocation157_spill] sm:$0xff] %v5119_v50  ;;  %v7778_v28 = vld [vmem:[#allocation86_spill] sm:$0xff]  ;;  %v7780_v50 = vld [vmem:[#allocation16_spill] sm:$0xff] }
  0xf1   : > { %7771 = vst [vmem:[#allocation158_spill] sm:$0xff] %v5123_v45  ;;  %7773 = vst [vmem:[#allocation14_spill] sm:$0xff] %v5127_v27  ;;  %v5139_v16 = vmul.f32 %v7778_v28, %v5111_v8  ;;  %v625_v18 = vsub.f32 1.0, %v7780_v50  ;;  %v689_v45 = vmul.f32 %v7781_v38, %v7781_v38  ;;  %v815_v27 = vadd.f32 %v751_v62, %v7782_v32  ;;  %v7791_v38 = vld [vmem:[#allocation32_spill] sm:$0xff]  ;;  %v7811_v8 = vld [vmem:[#allocation61_spill] sm:$0xff] }
  0xf2   : > { %7775 = vst [vmem:[#allocation15_spill] sm:$0xff] %v5131_v58  ;;  %7777 = vst [vmem:[#allocation85_spill] sm:$0xff] %v5135_v0  ;;  %v7784_v58 = vld [vmem:[#allocation89_spill] sm:$0xff]  ;;  %v7786_v0 = vld [vmem:[#allocation22_spill] sm:$0xff]  ;;  %v690_v62 = vmul.f32 %v7788_v2, %v7788_v2 }
  0xf3   : > { %7779 = vst [vmem:[#allocation86_spill] sm:$0xff] %v5139_v16  ;;  %v627_v23 = vsub.f32 1.0, %v7784_v58  ;;  %v753_v48 = vmul.f32 %v689_v45, %v625_v18  ;;  %v7789_v58 = vld [vmem:[#allocation30_spill] sm:$0xff]  ;;  %v878_v28 = vadd.f32 %v877_v56, %v815_v27  ;;  %v7790_v27 = vld [vmem:[#allocation48_spill] sm:$0xff]  ;;  %v7846_v4 = vld [vmem:[#allocation81_spill] sm:$0xff] }
  0xf4   : > { %v816_v32 = vadd.f32 %v752_v6, %v7789_v58  ;;  %v691_v58 = vmul.f32 %v7790_v27, %v7790_v27  ;;  %v754_v41 = vmul.f32 %v690_v62, %v626_v57  ;;  %v7793_v56 = vld [vmem:[#allocation34_spill] sm:$0xff]  ;;  %v7803_v6 = vld [vmem:[#allocation53_spill] sm:$0xff] }
  0xf5   : > { %v817_v37 = vadd.f32 %v753_v48, %v7791_v38  ;;  %v693_v38 = vmul.f32 %v7799_v34, %v7799_v34  ;;  %v696_v57 = vmul.f32 %v7803_v6, %v7803_v6  ;;  %v7804_v45 = vld [vmem:[#allocation54_spill] sm:$0xff]  ;;  %v7809_v48 = vld [vmem:[#allocation59_spill] sm:$0xff]  ;;  %v7847_v55 = vld [vmem:[#allocation13_spill] sm:$0xff] }
  0xf6   : > { %v879_v50 = vadd.f32 %v878_v28, %v816_v32  ;;  %v7792_v32 = vld [vmem:[#allocation49_spill] sm:$0xff]  ;;  %v755_v18 = vmul.f32 %v691_v58, %v627_v23  ;;  %v818_v2 = vadd.f32 %v754_v41, %v7793_v56  ;;  %v5195_v28 = vld [vmem:[%s3946_s24 + $0x1f8] sm:$0xff]  ;;  %v7801_v23 = vld [vmem:[#allocation51_spill] sm:$0xff]  ;;  %v697_v34 = vmul.f32 %v7804_v45, %v7804_v45 }
  0xf7   : > { %v692_v27 = vmul.f32 %v7792_v32, %v7792_v32  ;;  %7794 = vst [vmem:[#allocation16_spill] sm:$0xff] %v5195_v28  ;;  %v7802_v41 = vld [vmem:[#allocation52_spill] sm:$0xff]  ;;  %v7808_v32 = vld [vmem:[#allocation58_spill] sm:$0xff]  ;;  %v704_v45 = vmul.f32 %v7811_v8, %v7811_v8  ;;  %v709_v8 = vmul.f32 %v7818_v46, %v7818_v46  ;;  %v716_v46 = vmul.f32 %v7825_v9, %v7825_v9 }
  0xf8   : > { %v880_v20 = vadd.f32 %v879_v50, %v817_v37  ;;  %v819_v62 = vadd.f32 %v755_v18, %v7800_v13  ;;  %v694_v50 = vmul.f32 %v7801_v23, %v7801_v23  ;;  %v695_v56 = vmul.f32 %v7802_v41, %v7802_v41  ;;  %v7807_v18 = vld [vmem:[#allocation57_spill] sm:$0xff]  ;;  %v7810_v28 = vld [vmem:[#allocation60_spill] sm:$0xff]  ;;  %v7813_v37 = vld [vmem:[#allocation38_spill] sm:$0xff] }
  0xf9   : > { %v756_v16 = vmul.f32 %v692_v27, %v628_v22  ;;  %v7805_v22 = vld [vmem:[#allocation55_spill] sm:$0xff]  ;;  %v700_v27 = vmul.f32 %v7807_v18, %v7807_v18  ;;  %v701_v23 = vmul.f32 %v7808_v32, %v7808_v32  ;;  %v702_v41 = vmul.f32 %v7809_v48, %v7809_v48  ;;  %v7848_v63 = vld [vmem:[#allocation82_spill] sm:$0xff] }
  0xfa   : > { %v881_v15 = vadd.f32 %v880_v20, %v818_v2  ;;  %v698_v13 = vmul.f32 %v7805_v22, %v7805_v22  ;;  %v7806_v20 = vld [vmem:[#allocation56_spill] sm:$0xff]  ;;  %v703_v6 = vmul.f32 %v7810_v28, %v7810_v28  ;;  %v7812_v22 = vsub.f32 1.0, %v7786_v0  ;;  %v7819_v0 = vld [vmem:[#allocation67_spill] sm:$0xff] }
  0xfb   : > { %v699_v2 = vmul.f32 %v7806_v20, %v7806_v20  ;;  %v820_v20 = vadd.f32 %v756_v16, %v7813_v37  ;;  %v705_v18 = vmul.f32 %v7814_v40, %v7814_v40  ;;  %v706_v32 = vmul.f32 %v7815_v10, %v7815_v10  ;;  %v7820_v16 = vld [vmem:[#allocation68_spill] sm:$0xff]  ;;  %v7822_v37 = vld [vmem:[#allocation70_spill] sm:$0xff] }
  0xfc   : > { %v757_v58 = vmul.f32 %v693_v38, %v7812_v22  ;;  %v882_v47 = vadd.f32 %v881_v15, %v819_v62  ;;  %v707_v48 = vmul.f32 %v7816_v11, %v7816_v11  ;;  %v708_v28 = vmul.f32 %v7817_v35, %v7817_v35  ;;  %v7821_v62 = vld [vmem:[#allocation69_spill] sm:$0xff]  ;;  %v7823_v22 = vld [vmem:[#allocation71_spill] sm:$0xff] }
  0xfd   : > { %v710_v38 = vmul.f32 %v7819_v0, %v7819_v0  ;;  %v711_v15 = vmul.f32 %v7820_v16, %v7820_v16  ;;  %v712_v40 = vmul.f32 %v7821_v62, %v7821_v62  ;;  %v713_v10 = vmul.f32 %v7822_v37, %v7822_v37 }
  0xfe   : > { %v714_v11 = vmul.f32 %v7823_v22, %v7823_v22  ;;  %v715_v35 = vmul.f32 %v7824_v21, %v7824_v21  ;;  %v717_v0 = vmul.f32 %v7826_v52, %v7826_v52  ;;  %v7827_v16 = vsub.f32 1.0, %v7787_v3  ;;  %v7834_v3 = vld [vmem:[#allocation27_spill] sm:$0xff] }
  0xff   : > { %v821_v62 = vadd.f32 %v757_v58, %v7828_v39  ;;  %v883_v49 = vadd.f32 %v882_v47, %v820_v20  ;;  %v718_v37 = vmul.f32 %v7829_v19, %v7829_v19  ;;  %v719_v22 = vmul.f32 %v7830_v17, %v7830_v17  ;;  %v7835_v39 = vld [vmem:[#allocation28_spill] sm:$0xff]  ;;  %v7836_v58 = vld [vmem:[#allocation29_spill] sm:$0xff] }
 0x100   : > { %v758_v60 = vmul.f32 %v694_v50, %v7827_v16  ;;  %v720_v21 = vmul.f32 %v7831_v30, %v7831_v30  ;;  %v721_v9 = vmul.f32 %v7832_v1, %v7832_v1  ;;  %v722_v52 = vmul.f32 %v7833_v29, %v7833_v29  ;;  %v7837_v20 = vld [vmem:[#allocation12_spill] sm:$0xff] }
 0x101   : > { %v723_v50 = vmul.f32 %v7834_v3, %v7834_v3  ;;  %v724_v47 = vmul.f32 %v7835_v39, %v7835_v39  ;;  %v725_v19 = vmul.f32 %v7836_v58, %v7836_v58  ;;  %v726_v17 = vmul.f32 %v7837_v20, %v7837_v20  ;;  %v7838_v16 = vld [vmem:[#allocation76_spill] sm:$0xff] }
 0x102   : > { %v727_v30 = vmul.f32 %v7838_v16, %v7838_v16  ;;  %v728_v1 = vmul.f32 %v7839_v33, %v7839_v33  ;;  %v729_v29 = vmul.f32 %v7840_v59, %v7840_v59  ;;  %v730_v3 = vmul.f32 %v7841_v36, %v7841_v36 }
 0x103   : > { %v7842_v39 = vsub.f32 1.0, %v4808_v7  ;;  %v822_v58 = vadd.f32 %v758_v60, %v7843_v42  ;;  %v884_v31 = vadd.f32 %v883_v49, %v821_v62  ;;  %v731_v20 = vmul.f32 %v7844_v44, %v7844_v44  ;;  %v7849_v7 = vld [vmem:[#allocation36_spill] sm:$0xff]  ;;  %v7850_v42 = vld [vmem:[#allocation37_spill] sm:$0xff]  ;;  %v7851_v60 = vld [vmem:[#allocation83_spill] sm:$0xff] }
 0x104   : > { %v732_v16 = vmul.f32 %v7845_v53, %v7845_v53  ;;  %v733_v33 = vmul.f32 %v7846_v4, %v7846_v4  ;;  %v734_v59 = vmul.f32 %v7847_v55, %v7847_v55  ;;  %v735_v36 = vmul.f32 %v7848_v63, %v7848_v63  ;;  %v7852_v62 = vld [vmem:[#allocation84_spill] sm:$0xff] }
 0x105   : > { %v759_v14 = vmul.f32 %v695_v56, %v7842_v39  ;;  %v736_v56 = vmul.f32 %v7849_v7, %v7849_v7  ;;  %v737_v49 = vmul.f32 %v7850_v42, %v7850_v42  ;;  %v738_v44 = vmul.f32 %v7851_v60, %v7851_v60  ;;  %v7859_v60 = vld [vmem:[#allocation41_spill] sm:$0xff] }
 0x106   : > { %v5311_v53 = vmul.f32 %v7852_v62, %v7852_v62  ;;  %v7854_v4 = vsub.f32 1.0, %v4811_v54  ;;  %v7855_v55 = vsub.f32 1.0, %v4827_v24  ;;  %v7856_v63 = vsub.f32 1.0, %v4830_v51  ;;  %v7860_v54 = vld [vmem:[#allocation90_spill] sm:$0xff]  ;;  %v7862_v24 = vld [vmem:[#allocation91_spill] sm:$0xff]  ;;  %v7864_v51 = vld [vmem:[#allocation93_spill] sm:$0xff] }
 0x107   : > { %v7857_v7 = vsub.f32 1.0, %v4833_v26  ;;  %v7858_v42 = vsub.f32 1.0, %v4838_v5  ;;  %v823_v62 = vadd.f32 %v759_v14, %v7859_v60  ;;  %v7866_v26 = vld [vmem:[#allocation94_spill] sm:$0xff]  ;;  %v7868_v5 = vld [vmem:[#allocation95_spill] sm:$0xff]  ;;  %v7870_v14 = vld [vmem:[#allocation100_spill] sm:$0xff] }
 0x108   : > { %7853 = vst [vmem:[#allocation46_spill] sm:$0xff] %v5311_v53  ;;  %v760_v39 = vmul.f32 %v696_v57, %v7854_v4  ;;  %v761_v12 = vmul.f32 %v697_v34, %v7855_v55  ;;  %v762_v61 = vmul.f32 %v698_v13, %v7856_v63  ;;  %v885_v53 = vadd.f32 %v884_v31, %v822_v58  ;;  %v7872_v58 = vld [vmem:[#allocation101_spill] sm:$0xff] }
 0x109   : > { %v763_v25 = vmul.f32 %v699_v2, %v7857_v7  ;;  %v764_v43 = vmul.f32 %v700_v27, %v7858_v42  ;;  %v7861_v4 = vsub.f32 1.0, %v7860_v54  ;;  %v7863_v34 = vsub.f32 1.0, %v7862_v24 }
 0x10a   : > { %v7865_v13 = vsub.f32 1.0, %v7864_v51  ;;  %v7867_v2 = vsub.f32 1.0, %v7866_v26  ;;  %v7869_v27 = vsub.f32 1.0, %v7868_v5  ;;  %v7871_v60 = vsub.f32 1.0, %v7870_v14 }
 0x10b   : > { %v765_v57 = vmul.f32 %v701_v23, %v7861_v4  ;;  %v766_v55 = vmul.f32 %v702_v41, %v7863_v34  ;;  %v7873_v54 = vsub.f32 1.0, %v7872_v58  ;;  %v7874_v23 = vld [vmem:[#allocation105_spill] sm:$0xff]  ;;  %v7876_v41 = vld [vmem:[#allocation106_spill] sm:$0xff] }
 0x10c   : > { %v767_v63 = vmul.f32 %v703_v6, %v7865_v13  ;;  %v768_v7 = vmul.f32 %v704_v45, %v7867_v2  ;;  %v769_v42 = vmul.f32 %v705_v18, %v7869_v27  ;;  %v770_v31 = vmul.f32 %v706_v32, %v7871_v60  ;;  %v7878_v13 = vld [vmem:[#allocation107_spill] sm:$0xff]  ;;  %v7880_v45 = vld [vmem:[#allocation108_spill] sm:$0xff]  ;;  %v7882_v27 = vld [vmem:[#allocation109_spill] sm:$0xff] }
 0x10d   : > { %v771_v4 = vmul.f32 %v707_v48, %v7873_v54  ;;  %v7875_v24 = vsub.f32 1.0, %v7874_v23  ;;  %v7877_v51 = vsub.f32 1.0, %v7876_v41  ;;  %v7879_v26 = vsub.f32 1.0, %v7878_v13  ;;  %v7884_v60 = vld [vmem:[#allocation110_spill] sm:$0xff]  ;;  %v7886_v54 = vld [vmem:[#allocation115_spill] sm:$0xff] }
 0x10e   : > { %v7881_v5 = vsub.f32 1.0, %v7880_v45  ;;  %v7883_v14 = vsub.f32 1.0, %v7882_v27  ;;  %v7885_v58 = vsub.f32 1.0, %v7884_v60  ;;  %v7887_v23 = vsub.f32 1.0, %v7886_v54 }
 0x10f   : > { %v772_v34 = vmul.f32 %v708_v28, %v7875_v24  ;;  %v773_v6 = vmul.f32 %v709_v8, %v7877_v51  ;;  %v774_v2 = vmul.f32 %v710_v38, %v7879_v26  ;;  %v7888_v28 = vld [vmem:[#allocation42_spill] sm:$0xff]  ;;  %v886_v8 = vadd.f32 %v885_v53, %v823_v62  ;;  %v7889_v51 = vld [vmem:[#allocation116_spill] sm:$0xff]  ;;  %v7891_v38 = vld [vmem:[#allocation117_spill] sm:$0xff] }
 0x110   : > { %v775_v18 = vmul.f32 %v711_v15, %v7881_v5  ;;  %v776_v32 = vmul.f32 %v712_v40, %v7883_v14  ;;  %v777_v48 = vmul.f32 %v713_v10, %v7885_v58  ;;  %v778_v24 = vmul.f32 %v714_v11, %v7887_v23  ;;  %v7893_v15 = vld [vmem:[#allocation119_spill] sm:$0xff]  ;;  %v7895_v40 = vld [vmem:[#allocation120_spill] sm:$0xff]  ;;  %v7901_v53 = vld [vmem:[#allocation125_spill] sm:$0xff] }
 0x111   : > { %v824_v41 = vadd.f32 %v760_v39, %v7888_v28  ;;  %v7890_v13 = vsub.f32 1.0, %v7889_v51  ;;  %v7892_v45 = vsub.f32 1.0, %v7891_v38  ;;  %v7894_v27 = vsub.f32 1.0, %v7893_v15  ;;  %v7897_v58 = vld [vmem:[#allocation123_spill] sm:$0xff]  ;;  %v7899_v23 = vld [vmem:[#allocation124_spill] sm:$0xff] }
 0x112   : > { %v7896_v60 = vsub.f32 1.0, %v7895_v40  ;;  %v7898_v54 = vsub.f32 1.0, %v7897_v58  ;;  %v7900_v28 = vsub.f32 1.0, %v7899_v23  ;;  %v7902_v62 = vsub.f32 1.0, %v7901_v53 }
 0x113   : > { %v779_v26 = vmul.f32 %v715_v35, %v7890_v13  ;;  %v780_v5 = vmul.f32 %v716_v46, %v7892_v45  ;;  %v781_v14 = vmul.f32 %v717_v0, %v7894_v27  ;;  %v7903_v13 = vld [vmem:[#allocation44_spill] sm:$0xff]  ;;  %v7905_v45 = vld [vmem:[#allocation126_spill] sm:$0xff]  ;;  %v7907_v0 = vld [vmem:[#allocation127_spill] sm:$0xff] }
 0x114   : > { %v782_v10 = vmul.f32 %v718_v37, %v7896_v60  ;;  %v783_v11 = vmul.f32 %v719_v22, %v7898_v54  ;;  %v784_v39 = vmul.f32 %v720_v21, %v7900_v28  ;;  %v785_v51 = vmul.f32 %v721_v9, %v7902_v62  ;;  %v7909_v37 = vld [vmem:[#allocation132_spill] sm:$0xff]  ;;  %v7911_v22 = vld [vmem:[#allocation133_spill] sm:$0xff]  ;;  %v7913_v21 = vld [vmem:[#allocation134_spill] sm:$0xff] }
 0x115   : > { %v7904_v35 = vsub.f32 1.0, %v7903_v13  ;;  %v7906_v46 = vsub.f32 1.0, %v7905_v45  ;;  %v7908_v27 = vsub.f32 1.0, %v7907_v0  ;;  %v7910_v60 = vsub.f32 1.0, %v7909_v37  ;;  %v7915_v9 = vld [vmem:[#allocation139_spill] sm:$0xff] }
 0x116   : > { %v7912_v54 = vsub.f32 1.0, %v7911_v22  ;;  %v7914_v28 = vsub.f32 1.0, %v7913_v21  ;;  %v7916_v62 = vsub.f32 1.0, %v7915_v9  ;;  %v887_v45 = vadd.f32 %v886_v8, %v824_v41 }
 0x117   : > { %v786_v38 = vmul.f32 %v722_v52, %v7904_v35  ;;  %v787_v15 = vmul.f32 %v723_v50, %v7906_v46  ;;  %v788_v40 = vmul.f32 %v724_v47, %v7908_v27  ;;  %v789_v58 = vmul.f32 %v725_v19, %v7910_v60  ;;  %v7917_v35 = vld [vmem:[#allocation92_spill] sm:$0xff]  ;;  %v7922_v19 = vld [vmem:[#allocation145_spill] sm:$0xff] }
 0x118   : > { %v790_v23 = vmul.f32 %v726_v17, %v7912_v54  ;;  %v791_v53 = vmul.f32 %v727_v30, %v7914_v28  ;;  %v792_v13 = vmul.f32 %v728_v1, %v7916_v62  ;;  %v825_v52 = vadd.f32 %v761_v12, %v7917_v35  ;;  %v7918_v46 = vld [vmem:[#allocation140_spill] sm:$0xff]  ;;  %v7924_v17 = vld [vmem:[#allocation146_spill] sm:$0xff]  ;;  %v7926_v28 = vld [vmem:[#allocation45_spill] sm:$0xff] }
 0x119   : > { %v7919_v50 = vsub.f32 1.0, %v7918_v46  ;;  %v7920_v27 = vld [vmem:[#allocation144_spill] sm:$0xff]  ;;  %v7923_v60 = vsub.f32 1.0, %v7922_v19  ;;  %v7925_v54 = vsub.f32 1.0, %v7924_v17  ;;  %v7927_v30 = vsub.f32 1.0, %v7926_v28  ;;  %v7928_v1 = vld [vmem:[#allocation147_spill] sm:$0xff] }
 0x11a   : > { %v7921_v47 = vsub.f32 1.0, %v7920_v27  ;;  %v7929_v62 = vsub.f32 1.0, %v7928_v1  ;;  %v7930_v35 = vld [vmem:[#allocation148_spill] sm:$0xff]  ;;  %v7932_v46 = vld [vmem:[#allocation153_spill] sm:$0xff]  ;;  %v7934_v27 = vld [vmem:[#allocation154_spill] sm:$0xff] }
 0x11b   : > { %v793_v0 = vmul.f32 %v729_v29, %v7919_v50  ;;  %v795_v22 = vmul.f32 %v731_v20, %v7923_v60  ;;  %v796_v21 = vmul.f32 %v732_v16, %v7925_v54  ;;  %v797_v9 = vmul.f32 %v733_v33, %v7927_v30  ;;  %v7936_v19 = vld [vmem:[#allocation155_spill] sm:$0xff]  ;;  %v7940_v54 = vld [vmem:[#allocation96_spill] sm:$0xff]  ;;  %v7941_v28 = vld [vmem:[#allocation97_spill] sm:$0xff] }
 0x11c   : > { %v794_v37 = vmul.f32 %v730_v3, %v7921_v47  ;;  %v798_v12 = vmul.f32 %v734_v59, %v7929_v62  ;;  %v7931_v41 = vsub.f32 1.0, %v7930_v35  ;;  %v7933_v29 = vsub.f32 1.0, %v7932_v46  ;;  %v7939_v16 = vld [vmem:[#allocation43_spill] sm:$0xff]  ;;  %v7942_v59 = vld [vmem:[#allocation98_spill] sm:$0xff]  ;;  %v7946_v46 = vld [vmem:[#allocation104_spill] sm:$0xff] }
 0x11d   : > { %v7935_v3 = vsub.f32 1.0, %v7934_v27  ;;  %v7937_v20 = vsub.f32 1.0, %v7936_v19  ;;  %v826_v17 = vadd.f32 %v762_v61, %v7939_v16  ;;  %v827_v33 = vadd.f32 %v763_v25, %v7940_v54  ;;  %v7944_v35 = vld [vmem:[#allocation102_spill] sm:$0xff]  ;;  %v7947_v25 = vld [vmem:[#allocation111_spill] sm:$0xff]  ;;  %v7963_v16 = vld [vmem:[#allocation121_spill] sm:$0xff] }
 0x11e   : > { %v799_v8 = vmul.f32 %v735_v36, %v7931_v41  ;;  %v800_v50 = vmul.f32 %v736_v56, %v7933_v29  ;;  %v5407_v30 = vadd.f32 %v764_v43, %v7941_v28  ;;  %v5410_v1 = vadd.f32 %v765_v57, %v7942_v59  ;;  %v7943_v36 = vld [vmem:[#allocation99_spill] sm:$0xff]  ;;  %v7949_v43 = vld [vmem:[#allocation112_spill] sm:$0xff]  ;;  %v7951_v57 = vld [vmem:[#allocation113_spill] sm:$0xff] }
 0x11f   : > { %v801_v47 = vmul.f32 %v737_v49, %v7935_v3  ;;  %v5402_v60 = vmul.f32 %v738_v44, %v7937_v20  ;;  %v5413_v62 = vadd.f32 %v766_v55, %v7943_v36  ;;  %v888_v56 = vadd.f32 %v887_v45, %v825_v52  ;;  %v7945_v41 = vld [vmem:[#allocation103_spill] sm:$0xff]  ;;  %v7953_v52 = vld [vmem:[#allocation114_spill] sm:$0xff]  ;;  %v7969_v59 = vld [vmem:[#allocation128_spill] sm:$0xff] }
 0x120   : > { %v5416_v49 = vadd.f32 %v767_v63, %v7944_v35  ;;  %v5419_v44 = vadd.f32 %v768_v7, %v7945_v41  ;;  %v5422_v61 = vadd.f32 %v769_v42, %v7946_v46  ;;  %v5425_v29 = vadd.f32 %v770_v31, %v7947_v25  ;;  %v7955_v45 = vld [vmem:[#allocation118_spill] sm:$0xff]  ;;  %v7957_v42 = vld [vmem:[#allocation24_spill] sm:$0xff]  ;;  %v7965_v54 = vld [vmem:[#allocation79_spill] sm:$0xff] }
 0x121   : > { %7938 = vst [vmem:[#allocation17_spill] sm:$0xff] %v5402_v60  ;;  %v5428_v27 = vadd.f32 %v771_v4, %v7949_v43  ;;  %v5431_v55 = vadd.f32 %v772_v34, %v7951_v57  ;;  %v5434_v63 = vadd.f32 %v773_v6, %v7953_v52  ;;  %v5437_v7 = vadd.f32 %v774_v2, %v7955_v45  ;;  %v7959_v31 = vld [vmem:[#allocation74_spill] sm:$0xff]  ;;  %v7961_v4 = vld [vmem:[#allocation75_spill] sm:$0xff]  ;;  %v7971_v36 = vld [vmem:[#allocation129_spill] sm:$0xff] }
 0x122   : > { %7948 = vst [vmem:[#allocation88_spill] sm:$0xff] %v5425_v29  ;;  %v5440_v3 = vadd.f32 %v775_v18, %v7957_v42  ;;  %v5443_v19 = vadd.f32 %v776_v32, %v7959_v31  ;;  %v5446_v20 = vadd.f32 %v777_v48, %v7961_v4  ;;  %v5449_v34 = vadd.f32 %v778_v24, %v7963_v16  ;;  %v7967_v28 = vld [vmem:[#allocation122_spill] sm:$0xff]  ;;  %v7975_v41 = vld [vmem:[#allocation131_spill] sm:$0xff]  ;;  %v5494_v45 = vld [vmem:[%s3939_s28 + $0x218] sm:$0xff] }
 0x123   : > { %7950 = vst [vmem:[#allocation89_spill] sm:$0xff] %v5428_v27  ;;  %7952 = vst [vmem:[#allocation18_spill] sm:$0xff] %v5431_v55  ;;  %v5452_v6 = vadd.f32 %v779_v26, %v7965_v54  ;;  %v5455_v2 = vadd.f32 %v780_v5, %v7967_v28  ;;  %v5458_v18 = vadd.f32 %v781_v14, %v7969_v59  ;;  %v7973_v35 = vld [vmem:[#allocation130_spill] sm:$0xff]  ;;  %v7977_v26 = vld [vmem:[#allocation135_spill] sm:$0xff] }
 0x124   : > { %7954 = vst [vmem:[#allocation22_spill] sm:$0xff] %v5434_v63  ;;  %7956 = vst [vmem:[#allocation26_spill] sm:$0xff] %v5437_v7  ;;  %v889_v32 = vadd.f32 %v888_v56, %v826_v17  ;;  %v5461_v48 = vadd.f32 %v782_v10, %v7971_v36  ;;  %v5464_v24 = vadd.f32 %v783_v11, %v7973_v35  ;;  %v5473_v5 = vld [vmem:[%s3939_s28 + $0x200] sm:$0xff]  ;;  %v5476_v14 = vld [vmem:[%s3939_s28 + $0x208] sm:$0xff] }
 0x125   : > { %7958 = vst [vmem:[#allocation47_spill] sm:$0xff] %v5440_v3  ;;  %7960 = vst [vmem:[#allocation30_spill] sm:$0xff] %v5443_v19  ;;  %v5467_v46 = vadd.f32 %v784_v39, %v7975_v41  ;;  %v5470_v25 = vadd.f32 %v785_v51, %v7977_v26  ;;  %v5479_v17 = vld [vmem:[%s3939_s28 + $0x210] sm:$0xff]  ;;  %v7979_v10 = vld [vmem:[#allocation136_spill] sm:$0xff] }
 0x126   : > { %7962 = vst [vmem:[#allocation48_spill] sm:$0xff] %v5446_v20  ;;  %7964 = vst [vmem:[#allocation32_spill] sm:$0xff] %v5449_v34  ;;  %v5482_v56 = vadd.f32 %v786_v38, %v7979_v10  ;;  %v7981_v11 = vld [vmem:[#allocation137_spill] sm:$0xff]  ;;  %v7983_v39 = vld [vmem:[#allocation138_spill] sm:$0xff] }
 0x127   : > { %7966 = vst [vmem:[#allocation49_spill] sm:$0xff] %v5452_v6  ;;  %7968 = vst [vmem:[#allocation34_spill] sm:$0xff] %v5455_v2  ;;  %v5485_v43 = vadd.f32 %v787_v15, %v7981_v11  ;;  %v5488_v57 = vadd.f32 %v788_v40, %v7983_v39  ;;  %v7985_v51 = vld [vmem:[#allocation141_spill] sm:$0xff]  ;;  %v5500_v31 = vld [vmem:[%s3939_s28 + $0x228] sm:$0xff]  ;;  %v890_v11 = vadd.f32 %v889_v32, %v827_v33 }
 0x128   : > { %7970 = vst [vmem:[#allocation50_spill] sm:$0xff] %v5458_v18  ;;  %7972 = vst [vmem:[#allocation35_spill] sm:$0xff] %v5461_v48  ;;  %v5491_v52 = vadd.f32 %v789_v58, %v7985_v51  ;;  %v5497_v42 = vld [vmem:[%s3939_s28 + $0x220] sm:$0xff]  ;;  %v5503_v38 = vld [vmem:[%s3939_s28 + $0x230] sm:$0xff] }
 0x129   : > { %7974 = vst [vmem:[#allocation51_spill] sm:$0xff] %v5464_v24  ;;  %7976 = vst [vmem:[#allocation52_spill] sm:$0xff] %v5467_v46  ;;  %v7987_v15 = vld [vmem:[#allocation142_spill] sm:$0xff]  ;;  %v7989_v40 = vld [vmem:[#allocation143_spill] sm:$0xff] }
 0x12a   : > { %7978 = vst [vmem:[#allocation53_spill] sm:$0xff] %v5470_v25  ;;  %7980 = vst [vmem:[#allocation54_spill] sm:$0xff] %v5482_v56  ;;  %v5506_v4 = vadd.f32 %v790_v23, %v7987_v15  ;;  %v5509_v16 = vadd.f32 %v791_v53, %v7989_v40  ;;  %v7991_v58 = vld [vmem:[#allocation149_spill] sm:$0xff]  ;;  %v7993_v28 = vld [vmem:[#allocation150_spill] sm:$0xff] }
 0x12b   : > { %7982 = vst [vmem:[#allocation55_spill] sm:$0xff] %v5485_v43  ;;  %7984 = vst [vmem:[#allocation56_spill] sm:$0xff] %v5488_v57  ;;  %v5512_v54 = vadd.f32 %v792_v13, %v7991_v58  ;;  %v5515_v59 = vadd.f32 %v793_v0, %v7993_v28  ;;  %v5518_v36 = vld [vmem:[%s3939_s28 + $0x238] sm:$0xff]  ;;  %v5521_v35 = vld [vmem:[%s3939_s28 + $0x240] sm:$0xff] }
 0x12c   : > { %7986 = vst [vmem:[#allocation57_spill] sm:$0xff] %v5491_v52  ;;  %7988 = vst [vmem:[#allocation58_spill] sm:$0xff] %v5506_v4  ;;  %v5524_v41 = vld [vmem:[%s3939_s28 + $0x248] sm:$0xff]  ;;  %v7995_v23 = vld [vmem:[#allocation151_spill] sm:$0xff] }
 0x12d   : > { %7990 = vst [vmem:[#allocation59_spill] sm:$0xff] %v5509_v16  ;;  %7992 = vst [vmem:[#allocation60_spill] sm:$0xff] %v5512_v54  ;;  %v5527_v26 = vadd.f32 %v794_v37, %v7995_v23  ;;  %v7997_v53 = vld [vmem:[#allocation152_spill] sm:$0xff]  ;;  %v5536_v39 = vld [vmem:[%s3939_s28 + $0x250] sm:$0xff] }
 0x12e   : > { %7994 = vst [vmem:[#allocation61_spill] sm:$0xff] %v5515_v59  ;;  %v5530_v10 = vadd.f32 %v795_v22, %v7997_v53  ;;  %v7999_v13 = vld [vmem:[#allocation156_spill] sm:$0xff]  ;;  %v5542_v15 = vld [vmem:[%s3939_s28 + $0x260] sm:$0xff]  ;;  %v5545_v40 = vld [vmem:[%s3939_s28 + $0x268] sm:$0xff] }
 0x12f   : > { %7996 = vst [vmem:[#allocation38_spill] sm:$0xff] %v5527_v26  ;;  %v5533_v0 = vadd.f32 %v796_v21, %v7999_v13  ;;  %v5539_v51 = vld [vmem:[%s3939_s28 + $0x258] sm:$0xff]  ;;  %v8001_v37 = vld [vmem:[#allocation157_spill] sm:$0xff]  ;;  %v8003_v22 = vld [vmem:[#allocation158_spill] sm:$0xff] }
 0x130   : > { %7998 = vst [vmem:[#allocation62_spill] sm:$0xff] %v5530_v10  ;;  %v5548_v58 = vadd.f32 %v797_v9, %v8001_v37  ;;  %v5551_v28 = vadd.f32 %v798_v12, %v8003_v22  ;;  %v8005_v21 = vld [vmem:[#allocation14_spill] sm:$0xff]  ;;  %v8007_v32 = vld [vmem:[#allocation15_spill] sm:$0xff]  ;;  %v5563_v13 = vld [vmem:[%s3939_s28 + $0x278] sm:$0xff] }
 0x131   : > { %8000 = vst [vmem:[#allocation63_spill] sm:$0xff] %v5533_v0  ;;  %v5554_v33 = vadd.f32 %v799_v8, %v8005_v21  ;;  %v5557_v23 = vadd.f32 %v800_v50, %v8007_v32  ;;  %v5560_v53 = vld [vmem:[%s3939_s28 + $0x270] sm:$0xff]  ;;  %v5566_v60 = vld [vmem:[%s3939_s28 + $0x280] sm:$0xff]  ;;  %v5569_v9 = vld [vmem:[%s3939_s28 + $0x288] sm:$0xff] }
 0x132   : > { %8002 = vst [vmem:[#allocation64_spill] sm:$0xff] %v5548_v58  ;;  %8004 = vst [vmem:[#allocation65_spill] sm:$0xff] %v5551_v28  ;;  %v8009_v37 = vld [vmem:[#allocation85_spill] sm:$0xff]  ;;  %v5575_v12 = vld [vmem:[%s3939_s28 + $0x290] sm:$0xff] }
 0x133   : > { %8006 = vst [vmem:[#allocation66_spill] sm:$0xff] %v5554_v33  ;;  %8008 = vst [vmem:[#allocation67_spill] sm:$0xff] %v5557_v23  ;;  %v5572_v58 = vadd.f32 %v801_v47, %v8009_v37  ;;  %v5578_v8 = vld [vmem:[%s3939_s28 + $0x298] sm:$0xff]  ;;  %v5581_v50 = vld [vmem:[%s3939_s28 + $0x2a0] sm:$0xff]  ;;  %v891_v23 = vadd.f32 %v890_v11, %v5407_v30 }
 0x134   : > { %8011 = vst [vmem:[#allocation69_spill] sm:$0xff] %v5575_v12  ;;  %8012 = vst [vmem:[#allocation70_spill] sm:$0xff] %v5578_v8  ;;  %v5584_v22 = vld [vmem:[%s3939_s28 + $0x2a8] sm:$0xff]  ;;  %v5590_v47 = vld [vmem:[%s3939_s28 + $0x2b0] sm:$0xff] }
 0x135   : > { %8010 = vst [vmem:[#allocation68_spill] sm:$0xff] %v5572_v58  ;;  %8013 = vst [vmem:[#allocation71_spill] sm:$0xff] %v5581_v50  ;;  %v5593_v37 = vld [vmem:[%s3939_s28 + $0x2b8] sm:$0xff]  ;;  %v5596_v58 = vld [vmem:[%s3939_s28 + $0x2c0] sm:$0xff]  ;;  %v892_v21 = vadd.f32 %v891_v23, %v5410_v1 }
 0x136   : > { %8014 = vst [vmem:[#allocation72_spill] sm:$0xff] %v5584_v22  ;;  %8015 = vst [vmem:[#allocation73_spill] sm:$0xff] %v5590_v47  ;;  %v5604_v0 = vld [vmem:[%s3939_s28 + $0x2c8] sm:$0xff]  ;;  %v5607_v10 = vld [vmem:[%s3939_s28 + $0x2d0] sm:$0xff] }
 0x137   : > { %8016 = vst [vmem:[#allocation19_spill] sm:$0xff] %v5593_v37  ;;  %8017 = vst [vmem:[#allocation39_spill] sm:$0xff] %v5596_v58  ;;  %v5610_v26 = vld [vmem:[%s3939_s28 + $0x2d8] sm:$0xff]  ;;  %v5613_v59 = vld [vmem:[%s3939_s28 + $0x2e0] sm:$0xff]  ;;  %v893_v55 = vadd.f32 %v892_v21, %v5413_v62 }
 0x138   : > { %8018 = vst [vmem:[#allocation20_spill] sm:$0xff] %v5604_v0  ;;  %8019 = vst [vmem:[#allocation11_spill] sm:$0xff] %v5607_v10  ;;  %v5619_v33 = vld [vmem:[%s3939_s28 + $0x2e8] sm:$0xff]  ;;  %v5622_v30 = vld [vmem:[%s3939_s28 + $0x2f0] sm:$0xff] }
 0x139   : > { %8020 = vst [vmem:[#allocation21_spill] sm:$0xff] %v5610_v26  ;;  %8021 = vst [vmem:[#allocation23_spill] sm:$0xff] %v5613_v59  ;;  %v5625_v11 = vld [vmem:[%s3939_s28 + $0x2f8] sm:$0xff]  ;;  %v5628_v54 = vld [vmem:[%s3939_s28 + $0x300] sm:$0xff]  ;;  %v894_v26 = vadd.f32 %v893_v55, %v5416_v49  ;;  %v8053_v59 = vsub.f32 0.5, %v5473_v5  ;;  %v8057_v55 = vsub.f32 0.5, %v5497_v42 }
 0x13a   : > { %8022 = vst [vmem:[#allocation25_spill] sm:$0xff] %v5619_v33  ;;  %8023 = vst [vmem:[#allocation27_spill] sm:$0xff] %v5622_v30  ;;  %v5635_v32 = vld [vmem:[%s3939_s28 + $0x308] sm:$0xff]  ;;  %v5638_v52 = vld [vmem:[%s3939_s28 + $0x310] sm:$0xff] }
 0x13b   : > { %8024 = vst [vmem:[#allocation28_spill] sm:$0xff] %v5625_v11  ;;  %8025 = vst [vmem:[#allocation29_spill] sm:$0xff] %v5628_v54  ;;  %v5641_v57 = vld [vmem:[%s3939_s28 + $0x318] sm:$0xff]  ;;  %v5644_v43 = vld [vmem:[%s3939_s28 + $0x320] sm:$0xff] }
 0x13c   : > { %8026 = vst [vmem:[#allocation12_spill] sm:$0xff] %v5638_v52  ;;  %8027 = vst [vmem:[#allocation76_spill] sm:$0xff] %v5641_v57  ;;  %v5651_v56 = vld [vmem:[%s3939_s28 + $0x328] sm:$0xff]  ;;  %v5654_v25 = vld [vmem:[%s3939_s28 + $0x330] sm:$0xff] }
 0x13d   : > { %8028 = vst [vmem:[#allocation31_spill] sm:$0xff] %v5644_v43  ;;  %8029 = vst [vmem:[#allocation77_spill] sm:$0xff] %v5654_v25  ;;  %v5657_v46 = vld [vmem:[%s3939_s28 + $0x338] sm:$0xff]  ;;  %v5665_v48 = vld [vmem:[%s3939_s28 + $0x340] sm:$0xff]  ;;  %v8055_v43 = vsub.f32 0.5, %v5479_v17  ;;  %v8058_v25 = vsub.f32 0.5, %v5500_v31 }
 0x13e   : > { %8030 = vst [vmem:[#allocation78_spill] sm:$0xff] %v5657_v46  ;;  %v5668_v18 = vld [vmem:[%s3939_s28 + $0x348] sm:$0xff]  ;;  %v5671_v2 = vld [vmem:[%s3939_s28 + $0x350] sm:$0xff]  ;;  %v5674_v6 = vld [vmem:[%s3939_s28 + $0x358] sm:$0xff]  ;;  %v1128_v46 = vmax.f32 %v8057_v55, 0.0 }
 0x13f   : > { %8031 = vst [vmem:[#allocation40_spill] sm:$0xff] %v5671_v2  ;;  %8032 = vst [vmem:[#allocation33_spill] sm:$0xff] %v5674_v6  ;;  %v5680_v24 = vld [vmem:[%s3939_s28 + $0x360] sm:$0xff]  ;;  %v5683_v1 = vld [vmem:[%s3939_s28 + $0x368] sm:$0xff]  ;;  %v895_v6 = vadd.f32 %v894_v26, %v5419_v44  ;;  %v8056_v2 = vsub.f32 0.5, %v5494_v45  ;;  %v8061_v44 = vsub.f32 0.5, %v5521_v35 }
 0x140   : > { %8033 = vst [vmem:[#allocation80_spill] sm:$0xff] %v5680_v24  ;;  %8034 = vst [vmem:[#allocation81_spill] sm:$0xff] %v5683_v1  ;;  %v5686_v23 = vld [vmem:[%s3939_s28 + $0x370] sm:$0xff]  ;;  %v5689_v34 = vld [vmem:[%s3939_s28 + $0x378] sm:$0xff]  ;;  %v8062_v26 = vsub.f32 0.5, %v5524_v41 }
 0x141   : > { %8035 = vst [vmem:[#allocation13_spill] sm:$0xff] %v5686_v23  ;;  %8036 = vst [vmem:[#allocation82_spill] sm:$0xff] %v5689_v34  ;;  %v5696_v28 = vld [vmem:[%s3939_s28 + $0x380] sm:$0xff]  ;;  %v5699_v3 = vld [vmem:[%s3939_s28 + $0x388] sm:$0xff]  ;;  %v8054_v34 = vsub.f32 0.5, %v5476_v14  ;;  %v1127_v49 = vmax.f32 %v8056_v2, 0.0 }
 0x142   : > { %8037 = vst [vmem:[#allocation36_spill] sm:$0xff] %v5696_v28  ;;  %8038 = vst [vmem:[#allocation37_spill] sm:$0xff] %v5699_v3  ;;  %v5702_v7 = vld [vmem:[%s3939_s28 + $0x390] sm:$0xff]  ;;  %v5705_v63 = vld [vmem:[%s3939_s28 + $0x398] sm:$0xff]  ;;  %v5805_v2 = vmax.f32 %v8061_v44, 0.0  ;;  %v5809_v55 = vmax.f32 %v8062_v26, 0.0 }
 0x143   : > { %8039 = vst [vmem:[#allocation83_spill] sm:$0xff] %v5702_v7  ;;  %8040 = vst [vmem:[#allocation84_spill] sm:$0xff] %v5705_v63  ;;  %v5712_v19 = vld [vmem:[%s3939_s28 + $0x3a0] sm:$0xff]  ;;  %v5715_v27 = vld [vmem:[%s3939_s28 + $0x3a8] sm:$0xff]  ;;  %v1125_v20 = vmax.f32 %v8054_v34, 0.0  ;;  %v8067_v26 = vsub.f32 0.5, %v5560_v53  ;;  %v896_v63 = vadd.f32 %v895_v6, %v5422_v61 }
 0x144   : > { %8041 = vst [vmem:[#allocation41_spill] sm:$0xff] %v5712_v19  ;;  %8042 = vst [vmem:[#allocation90_spill] sm:$0xff] %v5715_v27  ;;  %v5723_v16 = vld [vmem:[%s3939_s28 + $0x3b0] sm:$0xff]  ;;  %v5726_v11 = vld [vmem:[%s3939_s28 + $0x3b8] sm:$0xff]  ;;  %v8072_v3 = vsub.f32 0.5, %v5575_v12  ;;  %v8074_v28 = vsub.f32 0.5, %v5578_v8 }
 0x145   : > { %8043 = vst [vmem:[#allocation91_spill] sm:$0xff] %v5723_v16  ;;  %8044 = vst [vmem:[#allocation93_spill] sm:$0xff] %v5726_v11  ;;  %v5729_v4 = vld [vmem:[%s3939_s28 + $0x3c0] sm:$0xff]  ;;  %v5735_v29 = vld [vmem:[%s3939_s28 + $0x3c8] sm:$0xff]  ;;  %v1124_v16 = vmax.f32 %v8053_v59, 0.0  ;;  %v8059_v59 = vsub.f32 0.5, %v5503_v38 }
 0x146   : > { %8045 = vst [vmem:[#allocation94_spill] sm:$0xff] %v5729_v4  ;;  %8046 = vst [vmem:[#allocation95_spill] sm:$0xff] %v5735_v29  ;;  %v5738_v57 = vld [vmem:[%s3939_s28 + $0x3d0] sm:$0xff]  ;;  %v5745_v52 = vld [vmem:[%s3939_s28 + $0x3d8] sm:$0xff]  ;;  %v1126_v29 = vmax.f32 %v8055_v43, 0.0  ;;  %v8060_v43 = vsub.f32 0.5, %v5518_v36 }
 0x147   : > { %8047 = vst [vmem:[#allocation100_spill] sm:$0xff] %v5738_v57  ;;  %8048 = vst [vmem:[#allocation101_spill] sm:$0xff] %v5745_v52  ;;  %v5748_v54 = vld [vmem:[%s3939_s28 + $0x3e0] sm:$0xff]  ;;  %v5755_v62 = vld [vmem:[%s3939_s28 + $0x3e8] sm:$0xff]  ;;  %v5797_v34 = vmax.f32 %v8059_v59, 0.0  ;;  %v8065_v52 = vsub.f32 0.5, %v5542_v15 }
 0x148   : > { %8049 = vst [vmem:[#allocation105_spill] sm:$0xff] %v5748_v54  ;;  %8050 = vst [vmem:[#allocation106_spill] sm:$0xff] %v5755_v62  ;;  %v5758_v21 = vld [vmem:[%s3939_s28 + $0x3f0] sm:$0xff]  ;;  %v5766_v24 = vld [vmem:[%s3939_s28 + $0x3f8] sm:$0xff]  ;;  %v8063_v62 = vsub.f32 0.5, %v5536_v39  ;;  %v8064_v54 = vsub.f32 0.5, %v5539_v51 }
 0x149   : > { %8051 = vst [vmem:[#allocation107_spill] sm:$0xff] %v5758_v21  ;;  %8052 = vst [vmem:[#allocation108_spill] sm:$0xff] %v5766_v24  ;;  %v5793_v24 = vmax.f32 %v8058_v25, 0.0  ;;  %v5801_v21 = vmax.f32 %v8060_v43, 0.0  ;;  %v5821_v43 = vmax.f32 %v8065_v52, 0.0  ;;  %v8066_v57 = vsub.f32 0.5, %v5545_v40 }
 0x14a   : > { %v5813_v25 = vmax.f32 %v8063_v62, 0.0  ;;  %v5817_v59 = vmax.f32 %v8064_v54, 0.0  ;;  %v5829_v4 = vmax.f32 %v8067_v26, 0.0  ;;  %v8068_v62 = vsub.f32 0.5, %v5563_v13  ;;  %v997_v7 = vld [vmem:[%s3946_s24 + $0x208] sm:$0xff] }
 0x14b   : > { %v5825_v44 = vmax.f32 %v8066_v57, 0.0  ;;  %v8069_v54 = vsub.f32 0.5, %v5566_v60  ;;  %v8070_v52 = vsub.f32 0.5, %v5569_v9  ;;  %v996_v57 = vld [vmem:[%s3946_s24 + $0x200] sm:$0xff]  ;;  %v5848_v26 = vmax.f32 %v8072_v3, 0.0 }
 0x14c   : > { %v5833_v11 = vmax.f32 %v8068_v62, 0.0  ;;  %v5852_v62 = vmax.f32 %v8074_v28, 0.0  ;;  %v8076_v23 = vsub.f32 0.5, %v5581_v50  ;;  %v8080_v61 = vsub.f32 0.5, %v5590_v47  ;;  %v998_v50 = vld [vmem:[%s3946_s24 + $0x210] sm:$0xff] }
 0x14d   : > { %v5837_v27 = vmax.f32 %v8069_v54, 0.0  ;;  %v5841_v19 = vmax.f32 %v8070_v52, 0.0  ;;  %8073 = vst [vmem:[#allocation110_spill] sm:$0xff] %v5848_v26  ;;  %v8078_v52 = vsub.f32 0.5, %v5584_v22  ;;  %v8082_v3 = vsub.f32 0.5, %v5593_v37  ;;  %v8090_v37 = vld [vmem:[#allocation88_spill] sm:$0xff] }
 0x14e   : > { %8075 = vst [vmem:[#allocation115_spill] sm:$0xff] %v5852_v62  ;;  %v5856_v54 = vmax.f32 %v8076_v23, 0.0  ;;  %v5864_v6 = vmax.f32 %v8080_v61, 0.0  ;;  %v8084_v28 = vsub.f32 0.5, %v5596_v58  ;;  %v8086_v23 = vsub.f32 0.5, %v5604_v0 }
 0x14f   : > { %8071 = vst [vmem:[#allocation109_spill] sm:$0xff] %v5841_v19  ;;  %v5860_v1 = vmax.f32 %v8078_v52, 0.0  ;;  %v5868_v26 = vmax.f32 %v8082_v3, 0.0  ;;  %v8088_v52 = vsub.f32 0.5, %v5607_v10  ;;  %v1188_v61 = vmul.f32 %v5473_v5, %v5473_v5 }
 0x150   : > { %8077 = vst [vmem:[#allocation42_spill] sm:$0xff] %v5856_v54  ;;  %8081 = vst [vmem:[#allocation117_spill] sm:$0xff] %v5864_v6  ;;  %v5872_v62 = vmax.f32 %v8084_v28, 0.0  ;;  %v5877_v54 = vmax.f32 %v8086_v23, 0.0  ;;  %v1189_v3 = vmul.f32 %v5476_v14, %v5476_v14  ;;  %v1317_v58 = vsub.f32 1.0, %v997_v7  ;;  %v999_v23 = vld [vmem:[%s3946_s24 + $0x218] sm:$0xff] }
 0x151   : > { %8079 = vst [vmem:[#allocation116_spill] sm:$0xff] %v5860_v1  ;;  %8083 = vst [vmem:[#allocation119_spill] sm:$0xff] %v5868_v26  ;;  %v5881_v1 = vmax.f32 %v8088_v52, 0.0  ;;  %v1316_v26 = vsub.f32 1.0, %v996_v57  ;;  %v1380_v28 = vmul.f32 %v1124_v16, %v1124_v16  ;;  %v897_v0 = vadd.f32 %v896_v63, %v8090_v37  ;;  %v8094_v52 = vld [vmem:[#allocation23_spill] sm:$0xff] }
 0x152   : > { %8085 = vst [vmem:[#allocation120_spill] sm:$0xff] %v5872_v62  ;;  %8087 = vst [vmem:[#allocation123_spill] sm:$0xff] %v5877_v54  ;;  %v1381_v62 = vmul.f32 %v1125_v20, %v1125_v20  ;;  %v8091_v54 = vld [vmem:[#allocation21_spill] sm:$0xff]  ;;  %v8097_v5 = vsub.f32 0.5, %v5619_v33  ;;  %v8099_v14 = vsub.f32 0.5, %v5622_v30  ;;  %v1190_v63 = vmul.f32 %v5479_v17, %v5479_v17  ;;  %v1001_v33 = vld [vmem:[%s3946_s24 + $0x228] sm:$0xff] }
 0x153   : > { %8089 = vst [vmem:[#allocation124_spill] sm:$0xff] %v5881_v1  ;;  %v8092_v6 = vsub.f32 0.5, %v8091_v54  ;;  %v8095_v1 = vsub.f32 0.5, %v8094_v52  ;;  %v1318_v20 = vsub.f32 1.0, %v998_v50  ;;  %v1382_v37 = vmul.f32 %v1126_v29, %v1126_v29  ;;  %v1000_v54 = vld [vmem:[%s3946_s24 + $0x220] sm:$0xff] }
 0x154   : > { %v5899_v22 = vmax.f32 %v8097_v5, 0.0  ;;  %v5903_v16 = vmax.f32 %v8099_v14, 0.0  ;;  %v1252_v5 = vmul.f32 %v1188_v61, %v996_v57  ;;  %v1319_v30 = vsub.f32 1.0, %v999_v23  ;;  %v8104_v17 = vld [vmem:[#allocation89_spill] sm:$0xff] }
 0x155   : > { %v5891_v10 = vmax.f32 %v8092_v6, 0.0  ;;  %v5895_v47 = vmax.f32 %v8095_v1, 0.0  ;;  %v8101_v6 = vld [vmem:[#allocation28_spill] sm:$0xff]  ;;  %v1191_v1 = vmul.f32 %v5494_v45, %v5494_v45  ;;  %v1383_v14 = vmul.f32 %v1127_v49, %v1127_v49  ;;  %v8105_v29 = vld [vmem:[#allocation29_spill] sm:$0xff] }
 0x156   : > { %8098 = vst [vmem:[#allocation126_spill] sm:$0xff] %v5899_v22  ;;  %8100 = vst [vmem:[#allocation127_spill] sm:$0xff] %v5903_v16  ;;  %v1253_v22 = vmul.f32 %v1189_v3, %v997_v7  ;;  %v1444_v16 = vmul.f32 %v1380_v28, %v1316_v26  ;;  %v898_v52 = vadd.f32 %v897_v0, %v8104_v17  ;;  %v8106_v12 = vsub.f32 0.5, %v8105_v29  ;;  %v1002_v26 = vld [vmem:[%s3946_s24 + $0x230] sm:$0xff]  ;;  %v1003_v17 = vld [vmem:[%s3946_s24 + $0x238] sm:$0xff] }
 0x157   : > { %8093 = vst [vmem:[#allocation125_spill] sm:$0xff] %v5891_v10  ;;  %8096 = vst [vmem:[#allocation44_spill] sm:$0xff] %v5895_v47  ;;  %v8102_v10 = vsub.f32 0.5, %v8101_v6  ;;  %v1445_v47 = vmul.f32 %v1381_v62, %v1317_v58  ;;  %v1192_v45 = vmul.f32 %v5497_v42, %v5497_v42  ;;  %v1254_v7 = vmul.f32 %v1190_v63, %v998_v50  ;;  %v8109_v58 = vld [vmem:[#allocation12_spill] sm:$0xff]  ;;  %v8112_v63 = vld [vmem:[#allocation18_spill] sm:$0xff] }
 0x158   : > { %v5918_v19 = vmax.f32 %v8106_v12, 0.0  ;;  %v1320_v57 = vsub.f32 1.0, %v1000_v54  ;;  %v1384_v61 = vmul.f32 %v1128_v46, %v1128_v46  ;;  %v1446_v49 = vmul.f32 %v1382_v37, %v1318_v20  ;;  %v8113_v37 = vld [vmem:[#allocation76_spill] sm:$0xff] }
 0x159   : > { %v5910_v8 = vmax.f32 %v8102_v10, 0.0  ;;  %v8107_v10 = vsub.f32 0.5, %v5635_v32  ;;  %v8110_v62 = vsub.f32 0.5, %v8109_v58  ;;  %v1193_v12 = vmul.f32 %v5500_v31, %v5500_v31 }
 0x15a   : > { %v1255_v3 = vmul.f32 %v1191_v1, %v999_v23  ;;  %v1321_v28 = vsub.f32 1.0, %v1001_v33  ;;  %v1447_v42 = vmul.f32 %v1383_v14, %v1319_v30  ;;  %v1508_v50 = vadd.f32 %v1444_v16, %v1252_v5  ;;  %v1004_v23 = vld [vmem:[%s3946_s24 + $0x240] sm:$0xff]  ;;  %v8115_v16 = vld [vmem:[#allocation31_spill] sm:$0xff]  ;;  %v1005_v14 = vld [vmem:[%s3946_s24 + $0x248] sm:$0xff] }
 0x15b   : > { %8103 = vst [vmem:[#allocation132_spill] sm:$0xff] %v5910_v8  ;;  %v5922_v8 = vmax.f32 %v8107_v10, 0.0  ;;  %v5929_v0 = vmax.f32 %v8110_v62, 0.0  ;;  %v1385_v10 = vmul.f32 %v5793_v24, %v5793_v24  ;;  %v1509_v46 = vadd.f32 %v1445_v47, %v1253_v22 }
 0x15c   : > { %v899_v20 = vadd.f32 %v898_v52, %v8112_v63  ;;  %v1194_v62 = vmul.f32 %v5503_v38, %v5503_v38  ;;  %v1256_v31 = vmul.f32 %v1192_v45, %v1000_v54  ;;  %v1322_v1 = vsub.f32 1.0, %v1002_v26  ;;  %v8118_v63 = vld [vmem:[#allocation22_spill] sm:$0xff] }
 0x15d   : > { %8108 = vst [vmem:[#allocation133_spill] sm:$0xff] %v5922_v8  ;;  %8111 = vst [vmem:[#allocation134_spill] sm:$0xff] %v5929_v0  ;;  %v8114_v8 = vsub.f32 0.5, %v8113_v37  ;;  %v1386_v0 = vmul.f32 %v5797_v34, %v5797_v34  ;;  %v1448_v24 = vmul.f32 %v1384_v61, %v1320_v57  ;;  %v1510_v30 = vadd.f32 %v1446_v49, %v1254_v7 }
 0x15e   : > { %v8116_v22 = vsub.f32 0.5, %v8115_v16  ;;  %v1257_v52 = vmul.f32 %v1193_v12, %v1001_v33  ;;  %v1323_v5 = vsub.f32 1.0, %v1003_v17  ;;  %v1387_v38 = vmul.f32 %v5801_v21, %v5801_v21 }
 0x15f   : > { %v5939_v58 = vmax.f32 %v8114_v8, 0.0  ;;  %v1195_v8 = vmul.f32 %v5518_v36, %v5518_v36  ;;  %v1449_v54 = vmul.f32 %v1385_v10, %v1321_v28  ;;  %v1511_v45 = vadd.f32 %v1447_v42, %v1255_v3 }
 0x160   : > { %v5948_v47 = vmax.f32 %v8116_v22, 0.0  ;;  %v1572_v34 = vadd.f32 %v1509_v46, %v1508_v50  ;;  %v900_v57 = vadd.f32 %v899_v20, %v8118_v63  ;;  %v1196_v7 = vmul.f32 %v5521_v35, %v5521_v35  ;;  %v1006_v22 = vld [vmem:[%s3946_s24 + $0x250] sm:$0xff]  ;;  %v1007_v35 = vld [vmem:[%s3946_s24 + $0x258] sm:$0xff]  ;;  %v8120_v46 = vld [vmem:[#allocation26_spill] sm:$0xff] }
 0x161   : > { %v1258_v61 = vmul.f32 %v1194_v62, %v1002_v26  ;;  %v1324_v49 = vsub.f32 1.0, %v1004_v23  ;;  %v1388_v36 = vmul.f32 %v5805_v2, %v5805_v2  ;;  %v1450_v33 = vmul.f32 %v1386_v0, %v1322_v1  ;;  %v8123_v63 = vld [vmem:[#allocation47_spill] sm:$0xff] }
 0x162   : > { %8117 = vst [vmem:[#allocation139_spill] sm:$0xff] %v5948_v47  ;;  %v1512_v12 = vadd.f32 %v1448_v24, %v1256_v31  ;;  %v1573_v47 = vadd.f32 %v1572_v34, %v1510_v30  ;;  %v8119_v21 = vsub.f32 0.5, %v5651_v56  ;;  %v1197_v3 = vmul.f32 %v5524_v41, %v5524_v41  ;;  %v1008_v24 = vld [vmem:[%s3946_s24 + $0x260] sm:$0xff] }
 0x163   : > { %v1259_v10 = vmul.f32 %v1195_v8, %v1003_v17  ;;  %v1325_v42 = vsub.f32 1.0, %v1005_v14  ;;  %v1389_v26 = vmul.f32 %v5809_v55, %v5809_v55  ;;  %v1451_v50 = vmul.f32 %v1387_v38, %v1323_v5  ;;  %v8121_v55 = vld [vmem:[#allocation77_spill] sm:$0xff] }
 0x164   : > { %v5963_v28 = vmax.f32 %v8119_v21, 0.0  ;;  %v1513_v2 = vadd.f32 %v1449_v54, %v1257_v52  ;;  %v1574_v0 = vadd.f32 %v1573_v47, %v1511_v45  ;;  %v901_v20 = vadd.f32 %v900_v57, %v8120_v46 }
 0x165   : > { %v1198_v62 = vmul.f32 %v5536_v39, %v5536_v39  ;;  %v1260_v31 = vmul.f32 %v1196_v7, %v1004_v23  ;;  %v1326_v1 = vsub.f32 1.0, %v1006_v22  ;;  %v1390_v41 = vmul.f32 %v5813_v25, %v5813_v25  ;;  %v1009_v39 = vld [vmem:[%s3946_s24 + $0x268] sm:$0xff] }
 0x166   : > { %v1452_v17 = vmul.f32 %v1388_v36, %v1324_v49  ;;  %v1514_v30 = vadd.f32 %v1450_v33, %v1258_v61  ;;  %v1575_v8 = vadd.f32 %v1574_v0, %v1512_v12  ;;  %v8122_v5 = vsub.f32 0.5, %v8121_v55  ;;  %v1010_v36 = vld [vmem:[%s3946_s24 + $0x270] sm:$0xff]  ;;  %v8126_v0 = vld [vmem:[#allocation30_spill] sm:$0xff] }
 0x167   : > { %v1199_v47 = vmul.f32 %v5539_v51, %v5539_v51  ;;  %v1261_v52 = vmul.f32 %v1197_v3, %v1005_v14  ;;  %v1327_v54 = vsub.f32 1.0, %v1007_v35  ;;  %v1391_v23 = vmul.f32 %v5817_v59, %v5817_v59  ;;  %v8124_v59 = vld [vmem:[#allocation78_spill] sm:$0xff] }
 0x168   : > { %v5978_v38 = vmax.f32 %v8122_v5, 0.0  ;;  %v1453_v45 = vmul.f32 %v1389_v26, %v1325_v42  ;;  %v1515_v25 = vadd.f32 %v1451_v50, %v1259_v10  ;;  %v1576_v34 = vadd.f32 %v1575_v8, %v1513_v2 }
 0x169   : > { %v902_v57 = vadd.f32 %v901_v20, %v8123_v63  ;;  %v1200_v7 = vmul.f32 %v5542_v15, %v5542_v15  ;;  %v1262_v61 = vmul.f32 %v1198_v62, %v1006_v22  ;;  %v1328_v49 = vsub.f32 1.0, %v1008_v24  ;;  %v1011_v15 = vld [vmem:[%s3946_s24 + $0x278] sm:$0xff] }
 0x16a   : > { %v1392_v51 = vmul.f32 %v5821_v43, %v5821_v43  ;;  %v1454_v14 = vmul.f32 %v1390_v41, %v1326_v1  ;;  %v1516_v33 = vadd.f32 %v1452_v17, %v1260_v31  ;;  %v1577_v12 = vadd.f32 %v1576_v34, %v1514_v30  ;;  %v1012_v1 = vld [vmem:[%s3946_s24 + $0x280] sm:$0xff] }
 0x16b   : > { %v8125_v21 = vsub.f32 0.5, %v8124_v59  ;;  %v1201_v10 = vmul.f32 %v5545_v40, %v5545_v40  ;;  %v1263_v42 = vmul.f32 %v1199_v47, %v1007_v35  ;;  %v1329_v26 = vsub.f32 1.0, %v1009_v39 }
 0x16c   : > { %v1393_v22 = vmul.f32 %v5825_v44, %v5825_v44  ;;  %v1455_v50 = vmul.f32 %v1391_v23, %v1327_v54  ;;  %v1517_v43 = vadd.f32 %v1453_v45, %v1261_v52  ;;  %v1578_v2 = vadd.f32 %v1577_v12, %v1515_v25  ;;  %v8128_v23 = vld [vmem:[#allocation48_spill] sm:$0xff] }
 0x16d   : > { %v5993_v3 = vmax.f32 %v8125_v21, 0.0  ;;  %v903_v46 = vadd.f32 %v902_v57, %v8126_v0  ;;  %v1202_v20 = vmul.f32 %v5560_v53, %v5560_v53  ;;  %v1264_v62 = vmul.f32 %v1200_v7, %v1008_v24  ;;  %v1013_v53 = vld [vmem:[%s3946_s24 + $0x288] sm:$0xff]  ;;  %v1014_v57 = vld [vmem:[%s3946_s24 + $0x290] sm:$0xff]  ;;  %v1016_v0 = vld [vmem:[%s3946_s24 + $0x2a0] sm:$0xff] }
 0x16e   : > { %v1330_v31 = vsub.f32 1.0, %v1010_v36  ;;  %v1394_v40 = vmul.f32 %v5829_v4, %v5829_v4  ;;  %v1456_v35 = vmul.f32 %v1392_v51, %v1328_v49  ;;  %v1518_v41 = vadd.f32 %v1454_v14, %v1262_v61 }
 0x16f   : > { %v1579_v17 = vadd.f32 %v1578_v2, %v1516_v33  ;;  %v8127_v44 = vsub.f32 0.5, %v5665_v48  ;;  %v1203_v8 = vmul.f32 %v5563_v13, %v5563_v13  ;;  %v1265_v5 = vmul.f32 %v1201_v10, %v1009_v39 }
 0x170   : > { %v1331_v47 = vsub.f32 1.0, %v1011_v15  ;;  %v1395_v24 = vmul.f32 %v5833_v11, %v5833_v11  ;;  %v1457_v52 = vmul.f32 %v1393_v22, %v1329_v26  ;;  %v1519_v4 = vadd.f32 %v1455_v50, %v1263_v42  ;;  %v8131_v42 = vld [vmem:[#allocation32_spill] sm:$0xff]  ;;  %v8132_v22 = vld [vmem:[#allocation69_spill] sm:$0xff] }
 0x171   : > { %v6008_v30 = vmax.f32 %v8127_v44, 0.0  ;;  %v1580_v54 = vadd.f32 %v1579_v17, %v1517_v43  ;;  %v904_v45 = vadd.f32 %v903_v46, %v8128_v23  ;;  %v1204_v25 = vmul.f32 %v5566_v60, %v5566_v60  ;;  %v1015_v60 = vld [vmem:[%s3946_s24 + $0x298] sm:$0xff]  ;;  %v8133_v46 = vld [vmem:[#allocation110_spill] sm:$0xff] }
 0x172   : > { %v1266_v34 = vmul.f32 %v1202_v20, %v1010_v36  ;;  %v1332_v63 = vsub.f32 1.0, %v1012_v1  ;;  %v1396_v13 = vmul.f32 %v5837_v27, %v5837_v27  ;;  %v1458_v39 = vmul.f32 %v1394_v40, %v1330_v31  ;;  %v8130_v36 = vld [vmem:[#allocation109_spill] sm:$0xff]  ;;  %v8134_v31 = vld [vmem:[#allocation40_spill] sm:$0xff] }
 0x173   : > { %v1520_v7 = vadd.f32 %v1456_v35, %v1264_v62  ;;  %v1581_v61 = vadd.f32 %v1580_v54, %v1518_v41  ;;  %v8129_v11 = vsub.f32 0.5, %v5668_v18  ;;  %v1205_v51 = vmul.f32 %v5569_v9, %v5569_v9  ;;  %v8136_v41 = vld [vmem:[#allocation70_spill] sm:$0xff]  ;;  %v8138_v54 = vld [vmem:[#allocation49_spill] sm:$0xff] }
 0x174   : > { %v1267_v14 = vmul.f32 %v1203_v8, %v1011_v15  ;;  %v1333_v33 = vsub.f32 1.0, %v1013_v53  ;;  %v1397_v12 = vmul.f32 %v8130_v36, %v8130_v36  ;;  %v1459_v21 = vmul.f32 %v1395_v24, %v1331_v47 }
 0x175   : > { %v6023_v49 = vmax.f32 %v8129_v11, 0.0  ;;  %v1521_v27 = vadd.f32 %v1457_v52, %v1265_v5  ;;  %v1582_v10 = vadd.f32 %v1581_v61, %v1519_v4  ;;  %v905_v26 = vadd.f32 %v904_v45, %v8131_v42  ;;  %v1017_v5 = vld [vmem:[%s3946_s24 + $0x2a8] sm:$0xff]  ;;  %v8139_v45 = vld [vmem:[#allocation71_spill] sm:$0xff] }
 0x176   : > { %v1206_v50 = vmul.f32 %v8132_v22, %v8132_v22  ;;  %v1268_v43 = vmul.f32 %v1204_v25, %v1012_v1  ;;  %v1334_v2 = vsub.f32 1.0, %v1014_v57  ;;  %v1398_v9 = vmul.f32 %v8133_v46, %v8133_v46  ;;  %v8137_v1 = vld [vmem:[#allocation115_spill] sm:$0xff]  ;;  %v8146_v46 = vld [vmem:[#allocation73_spill] sm:$0xff] }
 0x177   : > { %v1460_v15 = vmul.f32 %v1396_v13, %v1332_v63  ;;  %v1522_v20 = vadd.f32 %v1458_v39, %v1266_v34  ;;  %v1583_v62 = vadd.f32 %v1582_v10, %v1520_v7  ;;  %v8135_v40 = vsub.f32 0.5, %v8134_v31  ;;  %v1018_v13 = vld [vmem:[%s3946_s24 + $0x2b0] sm:$0xff]  ;;  %v8140_v39 = vld [vmem:[#allocation42_spill] sm:$0xff]  ;;  %v1019_v10 = vld [vmem:[%s3946_s24 + $0x2b8] sm:$0xff] }
 0x178   : > { %v1207_v17 = vmul.f32 %v8136_v41, %v8136_v41  ;;  %v1269_v44 = vmul.f32 %v1205_v51, %v1013_v53  ;;  %v1335_v8 = vsub.f32 1.0, %v1015_v60  ;;  %v1399_v47 = vmul.f32 %v8137_v1, %v8137_v1  ;;  %v8141_v51 = vld [vmem:[#allocation33_spill] sm:$0xff] }
 0x179   : > { %v6038_v35 = vmax.f32 %v8135_v40, 0.0  ;;  %v1461_v24 = vmul.f32 %v1397_v12, %v1333_v33  ;;  %v1523_v52 = vadd.f32 %v1459_v21, %v1267_v14  ;;  %v1584_v4 = vadd.f32 %v1583_v62, %v1521_v27  ;;  %v8143_v14 = vld [vmem:[#allocation72_spill] sm:$0xff]  ;;  %v1020_v62 = vld [vmem:[%s3946_s24 + $0x2c0] sm:$0xff] }
 0x17a   : > { %v906_v23 = vadd.f32 %v905_v26, %v8138_v54  ;;  %v1208_v25 = vmul.f32 %v8139_v45, %v8139_v45  ;;  %v1270_v34 = vmul.f32 %v1206_v50, %v1014_v57  ;;  %v1336_v63 = vsub.f32 1.0, %v1016_v0  ;;  %v8144_v57 = vld [vmem:[#allocation116_spill] sm:$0xff]  ;;  %v8147_v40 = vld [vmem:[#allocation117_spill] sm:$0xff] }
 0x17b   : > { %v1400_v53 = vmul.f32 %v8140_v39, %v8140_v39  ;;  %v1462_v7 = vmul.f32 %v1398_v9, %v1334_v2  ;;  %v1524_v61 = vadd.f32 %v1460_v15, %v1268_v43  ;;  %v1585_v11 = vadd.f32 %v1584_v4, %v1522_v20  ;;  %v8145_v2 = vld [vmem:[#allocation34_spill] sm:$0xff]  ;;  %v8148_v4 = vld [vmem:[#allocation80_spill] sm:$0xff] }
 0x17c   : > { %v8142_v33 = vsub.f32 0.5, %v8141_v51  ;;  %v1209_v12 = vmul.f32 %v8143_v14, %v8143_v14  ;;  %v1271_v21 = vmul.f32 %v1207_v17, %v1015_v60  ;;  %v1337_v27 = vsub.f32 1.0, %v1017_v5  ;;  %v1022_v14 = vld [vmem:[%s3946_s24 + $0x2d0] sm:$0xff] }
 0x17d   : > { %v1401_v42 = vmul.f32 %v8144_v57, %v8144_v57  ;;  %v1463_v26 = vmul.f32 %v1399_v47, %v1335_v8  ;;  %v1525_v22 = vadd.f32 %v1461_v24, %v1269_v44  ;;  %v1586_v50 = vadd.f32 %v1585_v11, %v1523_v52  ;;  %v8150_v44 = vld [vmem:[#allocation19_spill] sm:$0xff]  ;;  %v8154_v57 = vld [vmem:[#allocation120_spill] sm:$0xff] }
 0x17e   : > { %v6053_v36 = vmax.f32 %v8142_v33, 0.0  ;;  %v907_v43 = vadd.f32 %v906_v23, %v8145_v2  ;;  %v1210_v9 = vmul.f32 %v8146_v46, %v8146_v46  ;;  %v1272_v15 = vmul.f32 %v1208_v25, %v1016_v0  ;;  %v1021_v23 = vld [vmem:[%s3946_s24 + $0x2c8] sm:$0xff]  ;;  %v8151_v0 = vld [vmem:[#allocation119_spill] sm:$0xff]  ;;  %v8155_v46 = vld [vmem:[#allocation81_spill] sm:$0xff] }
 0x17f   : > { %v1338_v20 = vsub.f32 1.0, %v1018_v13  ;;  %v1402_v60 = vmul.f32 %v8147_v40, %v8147_v40  ;;  %v1464_v41 = vmul.f32 %v1400_v53, %v1336_v63  ;;  %v1526_v17 = vadd.f32 %v1462_v7, %v1270_v34  ;;  %v8152_v53 = vld [vmem:[#allocation50_spill] sm:$0xff]  ;;  %v8153_v7 = vld [vmem:[#allocation39_spill] sm:$0xff]  ;;  %v1023_v40 = vld [vmem:[%s3946_s24 + $0x2d8] sm:$0xff] }
 0x180   : > { %v1587_v1 = vadd.f32 %v1586_v50, %v1524_v61  ;;  %v8149_v8 = vsub.f32 0.5, %v8148_v4  ;;  %v1211_v24 = vmul.f32 %v8150_v44, %v8150_v44  ;;  %v1273_v52 = vmul.f32 %v1209_v12, %v1017_v5 }
 0x181   : > { %v1339_v54 = vsub.f32 1.0, %v1019_v10  ;;  %v1403_v45 = vmul.f32 %v8151_v0, %v8151_v0  ;;  %v1465_v25 = vmul.f32 %v1401_v42, %v1337_v27  ;;  %v1527_v39 = vadd.f32 %v1463_v26, %v1271_v21  ;;  %v8157_v21 = vld [vmem:[#allocation20_spill] sm:$0xff] }
 0x182   : > { %v6068_v47 = vmax.f32 %v8149_v8, 0.0  ;;  %v1588_v63 = vadd.f32 %v1587_v1, %v1525_v22  ;;  %v908_v34 = vadd.f32 %v907_v43, %v8152_v53  ;;  %v1212_v61 = vmul.f32 %v8153_v7, %v8153_v7  ;;  %v8161_v53 = vld [vmem:[#allocation124_spill] sm:$0xff] }
 0x183   : > { %v1274_v11 = vmul.f32 %v1210_v9, %v1018_v13  ;;  %v1340_v33 = vsub.f32 1.0, %v1020_v62  ;;  %v1404_v5 = vmul.f32 %v8154_v57, %v8154_v57  ;;  %v1466_v12 = vmul.f32 %v1402_v60, %v1338_v20  ;;  %v8158_v13 = vld [vmem:[#allocation123_spill] sm:$0xff] }
 0x184   : > { %v1528_v50 = vadd.f32 %v1464_v41, %v1272_v15  ;;  %v1589_v2 = vadd.f32 %v1588_v63, %v1526_v17  ;;  %v8156_v27 = vsub.f32 0.5, %v8155_v46  ;;  %v1213_v26 = vmul.f32 %v8157_v21, %v8157_v21  ;;  %v8159_v60 = vld [vmem:[#allocation35_spill] sm:$0xff]  ;;  %v1024_v63 = vld [vmem:[%s3946_s24 + $0x2e0] sm:$0xff] }
 0x185   : > { %v1275_v22 = vmul.f32 %v1211_v24, %v1019_v10  ;;  %v1341_v43 = vsub.f32 1.0, %v1021_v23  ;;  %v1405_v9 = vmul.f32 %v8158_v13, %v8158_v13  ;;  %v1467_v1 = vmul.f32 %v1403_v45, %v1339_v54  ;;  %v8160_v41 = vld [vmem:[#allocation11_spill] sm:$0xff] }
 0x186   : > { %v6083_v42 = vmax.f32 %v8156_v27, 0.0  ;;  %v1529_v8 = vadd.f32 %v1465_v25, %v1273_v52  ;;  %v1590_v20 = vadd.f32 %v1589_v2, %v1527_v39  ;;  %v909_v15 = vadd.f32 %v908_v34, %v8159_v60  ;;  %v8162_v27 = vld [vmem:[#allocation13_spill] sm:$0xff]  ;;  %v1025_v2 = vld [vmem:[%s3946_s24 + $0x2e8] sm:$0xff] }
 0x187   : > { %v1214_v17 = vmul.f32 %v8160_v41, %v8160_v41  ;;  %v1276_v44 = vmul.f32 %v1212_v61, %v1020_v62  ;;  %v1342_v0 = vsub.f32 1.0, %v1022_v14  ;;  %v1406_v10 = vmul.f32 %v8161_v53, %v8161_v53  ;;  %v8164_v52 = vld [vmem:[#allocation21_spill] sm:$0xff]  ;;  %v1026_v41 = vld [vmem:[%s3946_s24 + $0x2f0] sm:$0xff]  ;;  %v8168_v53 = vld [vmem:[#allocation44_spill] sm:$0xff] }
 0x188   : > { %v1468_v24 = vmul.f32 %v1404_v5, %v1340_v33  ;;  %v1530_v7 = vadd.f32 %v1466_v12, %v1274_v11  ;;  %v1591_v57 = vadd.f32 %v1590_v20, %v1528_v50  ;;  %v8163_v54 = vsub.f32 0.5, %v8162_v27  ;;  %v8165_v62 = vld [vmem:[#allocation125_spill] sm:$0xff]  ;;  %v8166_v5 = vld [vmem:[#allocation51_spill] sm:$0xff] }
 0x189   : > { %v1215_v25 = vmul.f32 %v8164_v52, %v8164_v52  ;;  %v1277_v39 = vmul.f32 %v1213_v26, %v1021_v23  ;;  %v1343_v34 = vsub.f32 1.0, %v1023_v40  ;;  %v1407_v61 = vmul.f32 %v8165_v62, %v8165_v62  ;;  %v8167_v12 = vld [vmem:[#allocation23_spill] sm:$0xff]  ;;  %v8169_v62 = vld [vmem:[#allocation82_spill] sm:$0xff] }
 0x18a   : > { %v6098_v45 = vmax.f32 %v8163_v54, 0.0  ;;  %v1469_v21 = vmul.f32 %v1405_v9, %v1341_v43  ;;  %v1531_v13 = vadd.f32 %v1467_v1, %v1275_v22  ;;  %v1592_v33 = vadd.f32 %v1591_v57, %v1529_v8  ;;  %v8172_v22 = vld [vmem:[#allocation25_spill] sm:$0xff]  ;;  %v1027_v57 = vld [vmem:[%s3946_s24 + $0x2f8] sm:$0xff] }
 0x18b   : > { %v910_v11 = vadd.f32 %v909_v15, %v8166_v5  ;;  %v1216_v50 = vmul.f32 %v8167_v12, %v8167_v12  ;;  %v1278_v20 = vmul.f32 %v1214_v17, %v1022_v14  ;;  %v1344_v60 = vsub.f32 1.0, %v1024_v63  ;;  %v8173_v14 = vld [vmem:[#allocation126_spill] sm:$0xff] }
 0x18c   : > { %v1408_v23 = vmul.f32 %v8168_v53, %v8168_v53  ;;  %v1470_v26 = vmul.f32 %v1406_v10, %v1342_v0  ;;  %v1532_v54 = vadd.f32 %v1468_v24, %v1276_v44  ;;  %v1593_v52 = vadd.f32 %v1592_v33, %v1530_v7  ;;  %v8174_v10 = vld [vmem:[#allocation52_spill] sm:$0xff]  ;;  %v8175_v24 = vld [vmem:[#allocation27_spill] sm:$0xff] }
 0x18d   : > { %v8170_v43 = vsub.f32 0.5, %v8169_v62  ;;  %v1217_v1 = vmul.f32 %v8172_v22, %v8172_v22  ;;  %v1279_v8 = vmul.f32 %v1215_v25, %v1023_v40  ;;  %v1345_v15 = vsub.f32 1.0, %v1025_v2 }
 0x18e   : > { %v1409_v17 = vmul.f32 %v8173_v14, %v8173_v14  ;;  %v1471_v5 = vmul.f32 %v1407_v61, %v1343_v34  ;;  %v1533_v12 = vadd.f32 %v1469_v21, %v1277_v39  ;;  %v1594_v0 = vadd.f32 %v1593_v52, %v1531_v13  ;;  %v8177_v14 = vld [vmem:[#allocation36_spill] sm:$0xff] }
 0x18f   : > { %v6113_v9 = vmax.f32 %v8170_v43, 0.0  ;;  %v911_v44 = vadd.f32 %v910_v11, %v8174_v10  ;;  %v1218_v7 = vmul.f32 %v8175_v24, %v8175_v24  ;;  %v1280_v33 = vmul.f32 %v1216_v50, %v1024_v63  ;;  %v1028_v43 = vld [vmem:[%s3946_s24 + $0x300] sm:$0xff]  ;;  %v1029_v11 = vld [vmem:[%s3946_s24 + $0x308] sm:$0xff]  ;;  %v8179_v63 = vld [vmem:[#allocation132_spill] sm:$0xff] }
 0x190   : > { %v1346_v53 = vsub.f32 1.0, %v1026_v41  ;;  %v1472_v25 = vmul.f32 %v1408_v23, %v1344_v60  ;;  %v1534_v22 = vadd.f32 %v1470_v26, %v1278_v20  ;;  %v1595_v62 = vadd.f32 %v1594_v0, %v1532_v54  ;;  %v8180_v23 = vld [vmem:[#allocation53_spill] sm:$0xff]  ;;  %v1030_v10 = vld [vmem:[%s3946_s24 + $0x310] sm:$0xff] }
 0x191   : > { %8171 = vst [vmem:[#allocation92_spill] sm:$0xff] %v6113_v9  ;;  %v8176_v9 = vld [vmem:[#allocation127_spill] sm:$0xff]  ;;  %v8178_v34 = vsub.f32 0.5, %v8177_v14  ;;  %v1219_v39 = vmul.f32 %v8101_v6, %v8101_v6  ;;  %v1281_v21 = vmul.f32 %v1217_v1, %v1025_v2  ;;  %v1347_v13 = vsub.f32 1.0, %v1027_v57 }
 0x192   : > { %v1410_v40 = vmul.f32 %v8176_v9, %v8176_v9  ;;  %v1411_v50 = vmul.f32 %v8179_v63, %v8179_v63  ;;  %v1473_v52 = vmul.f32 %v1409_v17, %v1345_v15  ;;  %v1535_v9 = vadd.f32 %v1471_v5, %v1279_v8 }
 0x193   : > { %v6128_v61 = vmax.f32 %v8178_v34, 0.0  ;;  %v1596_v60 = vadd.f32 %v1595_v62, %v1533_v12  ;;  %v912_v20 = vadd.f32 %v911_v44, %v8180_v23  ;;  %v1220_v26 = vmul.f32 %v8105_v29, %v8105_v29  ;;  %v8181_v34 = vld [vmem:[#allocation37_spill] sm:$0xff]  ;;  %v1031_v29 = vld [vmem:[%s3946_s24 + $0x318] sm:$0xff]  ;;  %v8186_v23 = vld [vmem:[#allocation134_spill] sm:$0xff] }
 0x194   : > { %v1282_v54 = vmul.f32 %v1218_v7, %v1026_v41  ;;  %v1348_v0 = vsub.f32 1.0, %v1028_v43  ;;  %v1412_v6 = vmul.f32 %v5918_v19, %v5918_v19  ;;  %v1474_v2 = vmul.f32 %v1410_v40, %v1346_v53  ;;  %v8183_v41 = vld [vmem:[#allocation133_spill] sm:$0xff]  ;;  %v8184_v53 = vld [vmem:[#allocation54_spill] sm:$0xff]  ;;  %v8185_v40 = vld [vmem:[#allocation12_spill] sm:$0xff] }
 0x195   : > { %v1536_v1 = vadd.f32 %v1472_v25, %v1280_v33  ;;  %v1597_v24 = vadd.f32 %v1596_v60, %v1534_v22  ;;  %v8182_v15 = vsub.f32 0.5, %v8181_v34  ;;  %v1221_v62 = vmul.f32 %v5635_v32, %v5635_v32  ;;  %v1032_v60 = vld [vmem:[%s3946_s24 + $0x320] sm:$0xff] }
 0x196   : > { %v1283_v8 = vmul.f32 %v1219_v39, %v1027_v57  ;;  %v1349_v5 = vsub.f32 1.0, %v1029_v11  ;;  %v1413_v12 = vmul.f32 %v8183_v41, %v8183_v41  ;;  %v1475_v44 = vmul.f32 %v1411_v50, %v1347_v13 }
 0x197   : > { %v6143_v17 = vmax.f32 %v8182_v15, 0.0  ;;  %v1537_v19 = vadd.f32 %v1473_v52, %v1281_v21  ;;  %v1598_v7 = vadd.f32 %v1597_v24, %v1535_v9  ;;  %v913_v33 = vadd.f32 %v912_v20, %v8184_v53  ;;  %v8187_v15 = vld [vmem:[#allocation83_spill] sm:$0xff]  ;;  %v1033_v20 = vld [vmem:[%s3946_s24 + $0x328] sm:$0xff] }
 0x198   : > { %v1222_v25 = vmul.f32 %v8185_v40, %v8185_v40  ;;  %v1284_v22 = vmul.f32 %v1220_v26, %v1028_v43  ;;  %v1350_v63 = vsub.f32 1.0, %v1030_v10  ;;  %v1414_v32 = vmul.f32 %v8186_v23, %v8186_v23  ;;  %v8190_v53 = vld [vmem:[#allocation139_spill] sm:$0xff]  ;;  %v8193_v23 = vld [vmem:[#allocation56_spill] sm:$0xff] }
 0x199   : > { %v1476_v57 = vmul.f32 %v1412_v6, %v1348_v0  ;;  %v1538_v39 = vadd.f32 %v1474_v2, %v1282_v54  ;;  %v1599_v34 = vadd.f32 %v1598_v7, %v1536_v1  ;;  %v8188_v13 = vsub.f32 0.5, %v8187_v15  ;;  %v8189_v6 = vld [vmem:[#allocation55_spill] sm:$0xff] }
 0x19a   : > { %v1223_v21 = vmul.f32 %v8113_v37, %v8113_v37  ;;  %v1285_v52 = vmul.f32 %v1221_v62, %v1029_v11  ;;  %v1351_v9 = vsub.f32 1.0, %v1031_v29  ;;  %v1415_v43 = vmul.f32 %v5939_v58, %v5939_v58  ;;  %v1034_v7 = vld [vmem:[%s3946_s24 + $0x330] sm:$0xff]  ;;  %v8191_v58 = vld [vmem:[#allocation84_spill] sm:$0xff] }
 0x19b   : > { %v6158_v50 = vmax.f32 %v8188_v13, 0.0  ;;  %v1477_v26 = vmul.f32 %v1413_v12, %v1349_v5  ;;  %v1539_v24 = vadd.f32 %v1475_v44, %v1283_v8  ;;  %v1600_v0 = vadd.f32 %v1599_v34, %v1537_v19  ;;  %v1036_v34 = vld [vmem:[%s3946_s24 + $0x340] sm:$0xff] }
 0x19c   : > { %v914_v54 = vadd.f32 %v913_v33, %v8189_v6  ;;  %v1224_v2 = vmul.f32 %v8115_v16, %v8115_v16  ;;  %v1286_v1 = vmul.f32 %v1222_v25, %v1030_v10  ;;  %v1352_v41 = vsub.f32 1.0, %v1032_v60  ;;  %v1035_v16 = vld [vmem:[%s3946_s24 + $0x338] sm:$0xff]  ;;  %v8196_v6 = vld [vmem:[#allocation57_spill] sm:$0xff] }
 0x19d   : > { %v1416_v37 = vmul.f32 %v8190_v53, %v8190_v53  ;;  %v1478_v11 = vmul.f32 %v1414_v32, %v1350_v63  ;;  %v1540_v62 = vadd.f32 %v1476_v57, %v1284_v22  ;;  %v1601_v40 = vadd.f32 %v1600_v0, %v1538_v39  ;;  %v1038_v53 = vld [vmem:[%s3946_s24 + $0x350] sm:$0xff] }
 0x19e   : > { %v8192_v5 = vsub.f32 0.5, %v8191_v58  ;;  %v1225_v8 = vmul.f32 %v5651_v56, %v5651_v56  ;;  %v1287_v44 = vmul.f32 %v1223_v21, %v1031_v29  ;;  %v1353_v19 = vsub.f32 1.0, %v1033_v20 }
 0x19f   : > { %v1417_v10 = vmul.f32 %v5963_v28, %v5963_v28  ;;  %v1479_v33 = vmul.f32 %v1415_v43, %v1351_v9  ;;  %v1541_v25 = vadd.f32 %v1477_v26, %v1285_v52  ;;  %v1602_v63 = vadd.f32 %v1601_v40, %v1539_v24  ;;  %v8194_v28 = vld [vmem:[#allocation41_spill] sm:$0xff] }
 0x1a0   : > { %v6173_v12 = vmax.f32 %v8192_v5, 0.0  ;;  %v915_v22 = vadd.f32 %v914_v54, %v8193_v23  ;;  %v1226_v32 = vmul.f32 %v8121_v55, %v8121_v55  ;;  %v1288_v57 = vmul.f32 %v1224_v2, %v1032_v60  ;;  %v1037_v55 = vld [vmem:[%s3946_s24 + $0x348] sm:$0xff] }
 0x1a1   : > { %v1354_v39 = vsub.f32 1.0, %v1034_v7  ;;  %v1418_v56 = vmul.f32 %v5978_v38, %v5978_v38  ;;  %v1480_v29 = vmul.f32 %v1416_v37, %v1352_v41  ;;  %v1542_v15 = vadd.f32 %v1478_v11, %v1286_v1 }
 0x1a2   : > { %v1603_v13 = vadd.f32 %v1602_v63, %v1540_v62  ;;  %v8195_v21 = vsub.f32 0.5, %v8194_v28  ;;  %v1227_v52 = vmul.f32 %v8124_v59, %v8124_v59  ;;  %v1289_v43 = vmul.f32 %v1225_v8, %v1033_v20 }
 0x1a3   : > { %v1355_v26 = vsub.f32 1.0, %v1035_v16  ;;  %v1419_v60 = vmul.f32 %v5993_v3, %v5993_v3  ;;  %v1481_v24 = vmul.f32 %v1417_v10, %v1353_v19  ;;  %v1543_v38 = vadd.f32 %v1479_v33, %v1287_v44  ;;  %v8197_v3 = vld [vmem:[#allocation90_spill] sm:$0xff] }
 0x1a4   : > { %v6188_v9 = vmax.f32 %v8195_v21, 0.0  ;;  %v1604_v0 = vadd.f32 %v1603_v13, %v1541_v25  ;;  %v916_v54 = vadd.f32 %v915_v22, %v8196_v6  ;;  %v1228_v2 = vmul.f32 %v5665_v48, %v5665_v48  ;;  %v1039_v48 = vld [vmem:[%s3946_s24 + $0x358] sm:$0xff]  ;;  %v8199_v10 = vld [vmem:[#allocation58_spill] sm:$0xff]  ;;  %v1040_v22 = vld [vmem:[%s3946_s24 + $0x360] sm:$0xff] }
 0x1a5   : > { %v1290_v1 = vmul.f32 %v1226_v32, %v1034_v7  ;;  %v1356_v41 = vsub.f32 1.0, %v1036_v34  ;;  %v1420_v59 = vmul.f32 %v6008_v30, %v6008_v30  ;;  %v1482_v20 = vmul.f32 %v1418_v56, %v1354_v39 }
 0x1a6   : > { %v1544_v37 = vadd.f32 %v1480_v29, %v1288_v57  ;;  %v1605_v11 = vadd.f32 %v1604_v0, %v1542_v15  ;;  %v8198_v62 = vsub.f32 0.5, %v8197_v3  ;;  %v1229_v58 = vmul.f32 %v5668_v18, %v5668_v18 }
 0x1a7   : > { %v1291_v5 = vmul.f32 %v1227_v52, %v1035_v16  ;;  %v1357_v8 = vsub.f32 1.0, %v1037_v55  ;;  %v1421_v7 = vmul.f32 %v6023_v49, %v6023_v49  ;;  %v1483_v44 = vmul.f32 %v1419_v60, %v1355_v26  ;;  %v8200_v49 = vld [vmem:[#allocation91_spill] sm:$0xff] }
 0x1a8   : > { %v6203_v40 = vmax.f32 %v8198_v62, 0.0  ;;  %v1545_v30 = vadd.f32 %v1481_v24, %v1289_v43  ;;  %v1606_v19 = vadd.f32 %v1605_v11, %v1543_v38  ;;  %v917_v33 = vadd.f32 %v916_v54, %v8199_v10  ;;  %v8202_v52 = vld [vmem:[#allocation59_spill] sm:$0xff]  ;;  %v8205_v11 = vld [vmem:[#allocation60_spill] sm:$0xff]  ;;  %v8208_v10 = vld [vmem:[#allocation82_spill] sm:$0xff] }
 0x1a9   : > { %v1230_v25 = vmul.f32 %v8134_v31, %v8134_v31  ;;  %v1292_v63 = vmul.f32 %v1228_v2, %v1036_v34  ;;  %v1358_v23 = vsub.f32 1.0, %v1038_v53  ;;  %v1422_v18 = vmul.f32 %v6038_v35, %v6038_v35  ;;  %v1041_v31 = vld [vmem:[%s3946_s24 + $0x368] sm:$0xff]  ;;  %v1042_v38 = vld [vmem:[%s3946_s24 + $0x370] sm:$0xff] }
 0x1aa   : > { %v1484_v16 = vmul.f32 %v1420_v59, %v1356_v41  ;;  %v1546_v32 = vadd.f32 %v1482_v20, %v1290_v1  ;;  %v1607_v57 = vadd.f32 %v1606_v19, %v1544_v37  ;;  %v8201_v39 = vsub.f32 0.5, %v8200_v49 }
 0x1ab   : > { %v1231_v29 = vmul.f32 %v8141_v51, %v8141_v51  ;;  %v1293_v15 = vmul.f32 %v1229_v58, %v1037_v55  ;;  %v1359_v13 = vsub.f32 1.0, %v1039_v48  ;;  %v1423_v34 = vmul.f32 %v6053_v36, %v6053_v36  ;;  %v8203_v36 = vld [vmem:[#allocation93_spill] sm:$0xff] }
 0x1ac   : > { %v6218_v56 = vmax.f32 %v8201_v39, 0.0  ;;  %v1485_v28 = vmul.f32 %v1421_v7, %v1357_v8  ;;  %v1547_v35 = vadd.f32 %v1483_v44, %v1291_v5  ;;  %v1608_v21 = vadd.f32 %v1607_v57, %v1545_v30  ;;  %v1044_v8 = vld [vmem:[%s3946_s24 + $0x380] sm:$0xff] }
 0x1ad   : > { %v918_v43 = vadd.f32 %v917_v33, %v8202_v52  ;;  %v1232_v26 = vmul.f32 %v8148_v4, %v8148_v4  ;;  %v1294_v60 = vmul.f32 %v1230_v25, %v1038_v53  ;;  %v1360_v24 = vsub.f32 1.0, %v1040_v22  ;;  %v1043_v4 = vld [vmem:[%s3946_s24 + $0x378] sm:$0xff] }
 0x1ae   : > { %v1424_v51 = vmul.f32 %v6068_v47, %v6068_v47  ;;  %v1486_v55 = vmul.f32 %v1422_v18, %v1358_v23  ;;  %v1548_v0 = vadd.f32 %v1484_v16, %v1292_v63  ;;  %v1609_v6 = vadd.f32 %v1608_v21, %v1546_v32  ;;  %v8209_v23 = vld [vmem:[#allocation92_spill] sm:$0xff]  ;;  %v8210_v32 = vld [vmem:[#allocation61_spill] sm:$0xff] }
 0x1af   : > { %v8204_v54 = vsub.f32 0.5, %v8203_v36  ;;  %v1233_v1 = vmul.f32 %v8155_v46, %v8155_v46  ;;  %v1295_v41 = vmul.f32 %v1231_v29, %v1039_v48  ;;  %v1361_v59 = vsub.f32 1.0, %v1041_v31 }
 0x1b0   : > { %v1425_v53 = vmul.f32 %v6083_v42, %v6083_v42  ;;  %v1487_v20 = vmul.f32 %v1423_v34, %v1359_v13  ;;  %v1549_v47 = vadd.f32 %v1485_v28, %v1293_v15  ;;  %v1610_v37 = vadd.f32 %v1609_v6, %v1547_v35  ;;  %v8206_v42 = vld [vmem:[#allocation94_spill] sm:$0xff]  ;;  %v1046_v15 = vld [vmem:[%s3946_s24 + $0x390] sm:$0xff] }
 0x1b1   : > { %v6233_v2 = vmax.f32 %v8204_v54, 0.0  ;;  %v919_v3 = vadd.f32 %v918_v43, %v8205_v11  ;;  %v1234_v62 = vmul.f32 %v8162_v27, %v8162_v27  ;;  %v1296_v58 = vmul.f32 %v1232_v26, %v1040_v22  ;;  %v1045_v27 = vld [vmem:[%s3946_s24 + $0x388] sm:$0xff]  ;;  %v8211_v35 = vld [vmem:[#allocation95_spill] sm:$0xff] }
 0x1b2   : > { %v1362_v5 = vsub.f32 1.0, %v1042_v38  ;;  %v1426_v46 = vmul.f32 %v6098_v45, %v6098_v45  ;;  %v1488_v48 = vmul.f32 %v1424_v51, %v1360_v24  ;;  %v1550_v7 = vadd.f32 %v1486_v55, %v1294_v60  ;;  %v3616_v43 = vld [vmem:[%s3939_s28 + $0x388] sm:$0xff] }
 0x1b3   : > { %v1611_v44 = vadd.f32 %v1610_v37, %v1548_v0  ;;  %v8207_v30 = vsub.f32 0.5, %v8206_v42  ;;  %v1235_v33 = vmul.f32 %v8208_v10, %v8208_v10  ;;  %v1297_v25 = vmul.f32 %v1233_v1, %v1041_v31  ;;  %v3617_v0 = vld [vmem:[%s3939_s28 + $0x390] sm:$0xff]  ;;  %v8214_v37 = vld [vmem:[#allocation100_spill] sm:$0xff] }
 0x1b4   : > { %v1363_v63 = vsub.f32 1.0, %v1043_v4  ;;  %v1427_v22 = vmul.f32 %v8209_v23, %v8209_v23  ;;  %v1489_v18 = vmul.f32 %v1425_v53, %v1361_v59  ;;  %v1551_v45 = vadd.f32 %v1487_v20, %v1295_v41  ;;  %v8213_v41 = vld [vmem:[#allocation38_spill] sm:$0xff] }
 0x1b5   : > { %v6248_v19 = vmax.f32 %v8207_v30, 0.0  ;;  %v1612_v16 = vadd.f32 %v1611_v44, %v1549_v47  ;;  %v920_v57 = vadd.f32 %v919_v3, %v8210_v32  ;;  %v1236_v49 = vmul.f32 %v8177_v14, %v8177_v14  ;;  %v1047_v14 = vld [vmem:[%s3946_s24 + $0x398] sm:$0xff]  ;;  %v3619_v44 = vld [vmem:[%s3939_s28 + $0x3a0] sm:$0xff]  ;;  %v3620_v32 = vld [vmem:[%s3939_s28 + $0x3a8] sm:$0xff] }
 0x1b6   : > { %v1298_v39 = vmul.f32 %v1234_v62, %v1042_v38  ;;  %v1364_v29 = vsub.f32 1.0, %v1044_v8  ;;  %v1428_v13 = vmul.f32 %v6128_v61, %v6128_v61  ;;  %v1490_v31 = vmul.f32 %v1426_v46, %v1362_v5  ;;  %v3618_v3 = vld [vmem:[%s3939_s28 + $0x398] sm:$0xff] }
 0x1b7   : > { %v1552_v34 = vadd.f32 %v1488_v48, %v1296_v58  ;;  %v1613_v28 = vadd.f32 %v1612_v16, %v1550_v7  ;;  %v8212_v21 = vsub.f32 0.5, %v8211_v35  ;;  %v1237_v26 = vmul.f32 %v3616_v43, %v3616_v43 }
 0x1b8   : > { %v1299_v60 = vmul.f32 %v1235_v33, %v1043_v4  ;;  %v1365_v24 = vsub.f32 1.0, %v1045_v27  ;;  %v1429_v38 = vmul.f32 %v6143_v17, %v6143_v17  ;;  %v1491_v51 = vmul.f32 %v1427_v22, %v1363_v63  ;;  %v1048_v4 = vld [vmem:[%s3946_s24 + $0x3a0] sm:$0xff] }
 0x1b9   : > { %v6263_v52 = vmax.f32 %v8212_v21, 0.0  ;;  %v1553_v55 = vadd.f32 %v1489_v18, %v1297_v25  ;;  %v1614_v61 = vadd.f32 %v1613_v28, %v1551_v45  ;;  %v1238_v6 = vmul.f32 %v3617_v0, %v3617_v0  ;;  %v8216_v25 = vld [vmem:[#allocation62_spill] sm:$0xff]  ;;  %v8217_v45 = vld [vmem:[#allocation101_spill] sm:$0xff]  ;;  %v3622_v0 = vld [vmem:[%s3939_s28 + $0x3b8] sm:$0xff] }
 0x1ba   : > { %v1300_v36 = vmul.f32 %v1236_v49, %v1044_v8  ;;  %v1366_v54 = vsub.f32 1.0, %v1046_v15  ;;  %v1430_v1 = vmul.f32 %v6158_v50, %v6158_v50  ;;  %v921_v59 = vadd.f32 %v920_v57, %v8213_v41  ;;  %v1049_v8 = vld [vmem:[%s3946_s24 + $0x3a8] sm:$0xff] }
 0x1bb   : > { %v1492_v53 = vmul.f32 %v1428_v13, %v1364_v29  ;;  %v1554_v20 = vadd.f32 %v1490_v31, %v1298_v39  ;;  %v1615_v47 = vadd.f32 %v1614_v61, %v1552_v34  ;;  %v8215_v17 = vsub.f32 0.5, %v8214_v37  ;;  %v1051_v29 = vld [vmem:[%s3946_s24 + $0x3b8] sm:$0xff]  ;;  %v3621_v34 = vld [vmem:[%s3939_s28 + $0x3b0] sm:$0xff] }
 0x1bc   : > { %v1239_v62 = vmul.f32 %v3618_v3, %v3618_v3  ;;  %v1301_v58 = vmul.f32 %v1237_v26, %v1045_v27  ;;  %v1367_v5 = vsub.f32 1.0, %v1047_v14  ;;  %v1431_v50 = vmul.f32 %v6173_v12, %v6173_v12  ;;  %v1050_v27 = vld [vmem:[%s3946_s24 + $0x3b0] sm:$0xff]  ;;  %v8222_v3 = vld [vmem:[#allocation64_spill] sm:$0xff] }
 0x1bd   : > { %v6276_v11 = vmax.f32 %v8215_v17, 0.0  ;;  %v1493_v46 = vmul.f32 %v1429_v38, %v1365_v24  ;;  %v1555_v48 = vadd.f32 %v1491_v51, %v1299_v60  ;;  %v1616_v7 = vadd.f32 %v1615_v47, %v1553_v55  ;;  %v8219_v26 = vld [vmem:[#allocation63_spill] sm:$0xff]  ;;  %v1052_v24 = vld [vmem:[%s3946_s24 + $0x3c0] sm:$0xff] }
 0x1be   : > { %v1240_v42 = vmul.f32 %v3619_v44, %v3619_v44  ;;  %v1302_v30 = vmul.f32 %v1238_v6, %v1046_v15  ;;  %v1368_v10 = vsub.f32 1.0, %v1048_v4  ;;  %v1432_v33 = vmul.f32 %v6188_v9, %v6188_v9  ;;  %v8220_v55 = vld [vmem:[#allocation105_spill] sm:$0xff] }
 0x1bf   : > { %v922_v63 = vadd.f32 %v921_v59, %v8216_v25  ;;  %v1494_v23 = vmul.f32 %v1430_v1, %v1366_v54  ;;  %v1556_v22 = vadd.f32 %v1492_v53, %v1300_v36  ;;  %v1617_v18 = vadd.f32 %v1616_v7, %v1554_v20  ;;  %v1053_v1 = vld [vmem:[%s3946_s24 + $0x3c8] sm:$0xff]  ;;  %v3623_v53 = vld [vmem:[%s3939_s28 + $0x3c0] sm:$0xff] }
 0x1c0   : > { %v8218_v12 = vsub.f32 0.5, %v8217_v45  ;;  %v1241_v57 = vmul.f32 %v3620_v32, %v3620_v32  ;;  %v1303_v49 = vmul.f32 %v1239_v62, %v1047_v14  ;;  %v1369_v39 = vsub.f32 1.0, %v1049_v8  ;;  %v3624_v7 = vld [vmem:[%s3939_s28 + $0x3c8] sm:$0xff] }
 0x1c1   : > { %v1433_v9 = vmul.f32 %v6203_v40, %v6203_v40  ;;  %v1495_v15 = vmul.f32 %v1431_v50, %v1367_v5  ;;  %v1557_v13 = vadd.f32 %v1493_v46, %v1301_v58  ;;  %v1618_v31 = vadd.f32 %v1617_v18, %v1555_v48  ;;  %v1054_v58 = vld [vmem:[%s3946_s24 + $0x3d0] sm:$0xff]  ;;  %v8223_v46 = vld [vmem:[#allocation106_spill] sm:$0xff] }
 0x1c2   : > { %v6289_v16 = vmax.f32 %v8218_v12, 0.0  ;;  %v1242_v28 = vmul.f32 %v3621_v34, %v3621_v34  ;;  %v1304_v35 = vmul.f32 %v1240_v42, %v1048_v4  ;;  %v1370_v21 = vsub.f32 1.0, %v1050_v27  ;;  %v8225_v12 = vld [vmem:[#allocation65_spill] sm:$0xff] }
 0x1c3   : > { %v1434_v43 = vmul.f32 %v6218_v56, %v6218_v56  ;;  %v923_v60 = vadd.f32 %v922_v63, %v8219_v26  ;;  %v1496_v14 = vmul.f32 %v1432_v33, %v1368_v10  ;;  %v1558_v38 = vadd.f32 %v1494_v23, %v1302_v30  ;;  %v1055_v10 = vld [vmem:[%s3946_s24 + $0x3d8] sm:$0xff] }
 0x1c4   : > { %v1619_v51 = vadd.f32 %v1618_v31, %v1556_v22  ;;  %v8221_v40 = vsub.f32 0.5, %v8220_v55  ;;  %v1243_v6 = vmul.f32 %v3622_v0, %v3622_v0  ;;  %v1305_v36 = vmul.f32 %v1241_v57, %v1049_v8  ;;  %v1056_v57 = vld [vmem:[%s3946_s24 + $0x3e0] sm:$0xff]  ;;  %v8228_v55 = vld [vmem:[#allocation66_spill] sm:$0xff]  ;;  %v1058_v0 = vld [vmem:[%s3946_s24 + $0x3f0] sm:$0xff] }
 0x1c5   : > { %v1371_v54 = vsub.f32 1.0, %v1051_v29  ;;  %v1435_v56 = vmul.f32 %v6233_v2, %v6233_v2  ;;  %v1497_v41 = vmul.f32 %v1433_v9, %v1369_v39  ;;  %v1559_v59 = vadd.f32 %v1495_v15, %v1303_v49  ;;  %v8226_v9 = vld [vmem:[#allocation107_spill] sm:$0xff] }
 0x1c6   : > { %v1184_v61 = vmax.f32 %v8221_v40, 0.0  ;;  %v1620_v4 = vadd.f32 %v1619_v51, %v1557_v13  ;;  %v1244_v20 = vmul.f32 %v3623_v53, %v3623_v53  ;;  %v1306_v47 = vmul.f32 %v1242_v28, %v1050_v27  ;;  %v3625_v27 = vld [vmem:[%s3939_s28 + $0x3d0] sm:$0xff]  ;;  %v3626_v13 = vld [vmem:[%s3939_s28 + $0x3d8] sm:$0xff] }
 0x1c7   : > { %v1372_v37 = vsub.f32 1.0, %v1052_v24  ;;  %v1436_v17 = vmul.f32 %v6248_v19, %v6248_v19  ;;  %v924_v62 = vadd.f32 %v923_v60, %v8222_v3  ;;  %v1498_v5 = vmul.f32 %v1434_v43, %v1370_v21  ;;  %v3627_v60 = vld [vmem:[%s3939_s28 + $0x3e0] sm:$0xff]  ;;  %v3629_v3 = vld [vmem:[%s3939_s28 + $0x3f0] sm:$0xff] }
 0x1c8   : > { %v1560_v8 = vadd.f32 %v1496_v14, %v1304_v35  ;;  %v1621_v50 = vadd.f32 %v1620_v4, %v1558_v38  ;;  %v8224_v2 = vsub.f32 0.5, %v8223_v46  ;;  %v1245_v44 = vmul.f32 %v3624_v7, %v3624_v7  ;;  %v1057_v35 = vld [vmem:[%s3946_s24 + $0x3e8] sm:$0xff] }
 0x1c9   : > { %v1307_v42 = vmul.f32 %v1243_v6, %v1051_v29  ;;  %v1373_v30 = vsub.f32 1.0, %v1053_v1  ;;  %v1437_v19 = vmul.f32 %v6263_v52, %v6263_v52  ;;  %v1499_v33 = vmul.f32 %v1435_v56, %v1371_v54 }
 0x1ca   : > { %v1185_v48 = vmax.f32 %v8224_v2, 0.0  ;;  %v1561_v25 = vadd.f32 %v1497_v41, %v1305_v36  ;;  %v1622_v63 = vadd.f32 %v1621_v50, %v1559_v59  ;;  %v1246_v23 = vmul.f32 %v3625_v27, %v3625_v27  ;;  %v8231_v50 = vld [vmem:[#allocation67_spill] sm:$0xff]  ;;  %v3631_v27 = vld [vmem:[%s3946_s24 + $0x1f8] sm:$0xff] }
 0x1cb   : > { %v1308_v22 = vmul.f32 %v1244_v20, %v1052_v24  ;;  %v1374_v18 = vsub.f32 1.0, %v1054_v58  ;;  %v1438_v45 = vmul.f32 %v6276_v11, %v6276_v11  ;;  %v925_v32 = vadd.f32 %v924_v62, %v8225_v12  ;;  %v1059_v20 = vld [vmem:[%s3946_s24 + $0x3f8] sm:$0xff]  ;;  %v8235_v12 = vld [vmem:[#allocation46_spill] sm:$0xff] }
 0x1cc   : > { %v1500_v49 = vmul.f32 %v1436_v17, %v1372_v37  ;;  %v1562_v39 = vadd.f32 %v1498_v5, %v1306_v47  ;;  %v1623_v29 = vadd.f32 %v1622_v63, %v1560_v8  ;;  %v8227_v52 = vsub.f32 0.5, %v8226_v9  ;;  %v8238_v9 = vld [vmem:[#allocation68_spill] sm:$0xff] }
 0x1cd   : > { %v1247_v31 = vmul.f32 %v3626_v13, %v3626_v13  ;;  %v1309_v34 = vmul.f32 %v1245_v44, %v1053_v1  ;;  %v1375_v28 = vsub.f32 1.0, %v1055_v10  ;;  %v1439_v11 = vmul.f32 %v6289_v16, %v6289_v16  ;;  %v8229_v1 = vld [vmem:[#allocation108_spill] sm:$0xff]  ;;  %v3628_v16 = vld [vmem:[%s3939_s28 + $0x3e8] sm:$0xff] }
 0x1ce   : > { %v1186_v15 = vmax.f32 %v8227_v52, 0.0  ;;  %v1501_v21 = vmul.f32 %v1437_v19, %v1373_v30  ;;  %v1563_v43 = vadd.f32 %v1499_v33, %v1307_v42  ;;  %v1624_v26 = vadd.f32 %v1623_v29, %v1561_v25  ;;  %v3630_v42 = vld [vmem:[%s3939_s28 + $0x3f8] sm:$0xff] }
 0x1cf   : > { %v1248_v24 = vmul.f32 %v3627_v60, %v3627_v60  ;;  %v1310_v14 = vmul.f32 %v1246_v23, %v1054_v58  ;;  %v1376_v38 = vsub.f32 1.0, %v1056_v57  ;;  %v1440_v51 = vmul.f32 %v1184_v61, %v1184_v61  ;;  %v8232_v23 = vld [vmem:[#allocation87_spill] sm:$0xff] }
 0x1d0   : > { %v926_v40 = vadd.f32 %v925_v32, %v8228_v55  ;;  %v1502_v6 = vmul.f32 %v1438_v45, %v1374_v18  ;;  %v1564_v36 = vadd.f32 %v1500_v49, %v1308_v22  ;;  %v1625_v54 = vadd.f32 %v1624_v26, %v1562_v39  ;;  %v8233_v18 = vld [vmem:[#allocation16_spill] sm:$0xff]  ;;  %v8237_v49 = vld [vmem:[#allocation17_spill] sm:$0xff] }
 0x1d1   : > { %v8230_v56 = vsub.f32 0.5, %v8229_v1  ;;  %v1249_v59 = vmul.f32 %v3628_v16, %v3628_v16  ;;  %v1311_v4 = vmul.f32 %v1247_v31, %v1055_v10  ;;  %v1377_v53 = vsub.f32 1.0, %v1057_v35 }
 0x1d2   : > { %v1441_v47 = vmul.f32 %v1185_v48, %v1185_v48  ;;  %v1503_v37 = vmul.f32 %v1439_v11, %v1375_v28  ;;  %v1565_v17 = vadd.f32 %v1501_v21, %v1309_v34  ;;  %v1626_v61 = vadd.f32 %v1625_v54, %v1563_v43 }
 0x1d3   : > { %v1187_v41 = vmax.f32 %v8230_v56, 0.0  ;;  %v1250_v62 = vmul.f32 %v3629_v3, %v3629_v3  ;;  %v1312_v58 = vmul.f32 %v1248_v24, %v1056_v57  ;;  %v1378_v5 = vsub.f32 1.0, %v1058_v0  ;;  %v8236_v57 = vld [vmem:[#allocation86_spill] sm:$0xff] }
 0x1d4   : > { %v1442_v8 = vmul.f32 %v1186_v15, %v1186_v15  ;;  %v927_v46 = vadd.f32 %v926_v40, %v8231_v50  ;;  %v1504_v2 = vmul.f32 %v1440_v51, %v1376_v38  ;;  %v1566_v7 = vadd.f32 %v1502_v6, %v1310_v14 }
 0x1d5   : > { %v1627_v44 = vadd.f32 %v1626_v61, %v1564_v36  ;;  %v1251_v30 = vmul.f32 %v3630_v42, %v3630_v42  ;;  %v1313_v10 = vmul.f32 %v1249_v59, %v1057_v35  ;;  %v1379_v19 = vsub.f32 1.0, %v1059_v20 }
 0x1d6   : > { %v1443_v33 = vmul.f32 %v1187_v41, %v1187_v41  ;;  %v1505_v48 = vmul.f32 %v1441_v47, %v1377_v53  ;;  %v1567_v25 = vadd.f32 %v1503_v37, %v1311_v4  ;;  %v611_v22 = vmul.f32 %v3631_v27, %v8232_v23 }
 0x1d7   : > { %v1628_v63 = vadd.f32 %v1627_v44, %v1565_v17  ;;  %v8234_v45 = vsub.f32 1.0, %v8233_v18  ;;  %v866_v39 = vadd.f32 %v8237_v49, %v8236_v57  ;;  %v1314_v29 = vmul.f32 %v1250_v62, %v1058_v0 }
 0x1d8   : > { %v928_v52 = vadd.f32 %v927_v46, %v8238_v9  ;;  %v1506_v15 = vmul.f32 %v1442_v8, %v1378_v5  ;;  %v1568_v13 = vadd.f32 %v1504_v2, %v1312_v58  ;;  %v1315_v34 = vmul.f32 %v1251_v30, %v1059_v20 }
 0x1d9   : > { %v803_v32 = vmul.f32 %v8235_v12, %v8234_v45  ;;  %v1629_v31 = vadd.f32 %v1628_v63, %v1566_v7  ;;  %v1507_v28 = vmul.f32 %v1443_v33, %v1379_v19  ;;  %v1569_v35 = vadd.f32 %v1505_v48, %v1313_v10 }
 0x1da   : > { %v929_v43 = vadd.f32 %v928_v52, %v866_v39  ;;  %v1570_v26 = vadd.f32 %v1506_v15, %v1314_v29 }
 0x1db   : > { %v1630_v11 = vadd.f32 %v1629_v31, %v1567_v25  ;;  %v867_v21 = vadd.f32 %v803_v32, %v611_v22  ;;  %v1571_v24 = vadd.f32 %v1507_v28, %v1315_v34 }
 0x1dd   : > { %v1631_v60 = vadd.f32 %v1630_v11, %v1568_v13  ;;  %v930_v38 = vadd.f32 %v929_v43, %v867_v21 }
 0x1df   : > { %v1632_v14 = vadd.f32 %v1631_v60, %v1569_v35 }
 0x1e1   : > { %v1633_v51 = vadd.f32 %v1632_v14, %v1570_v26 }
 0x1e3   : > { %v1634_v55 = vadd.f32 %v1633_v51, %v1571_v24 }
 0x1e5   : > { %v1635_v40 = vadd.f32 %v1634_v55, %v930_v38 }
 0x1e7   : > { %1636 = vst [vmem:[%s3953_s25] sm:$0xff] %v1635_v40 }
 0x1e8 PF: > { %p3564_p6 = scmp.ne.s32.totalorder %s3804_s13, 1 }
 0x1ea   : > { %1640 = sbr.rel (%p3564_p6) target bundleno = 677 (0x2a5), region = 44 }
 0x1f1   : > { %v6349_v0 = vld [vmem:[%s3939_s28] sm:$0xff]  ;;  %v6352_v6 = vld [vmem:[%s3939_s28 + $0x8] sm:$0xff]  ;;  %v6355_v36 = vld [vmem:[%s3939_s28 + $0x10] sm:$0xff] }
 0x1f2   : > { %v6358_v54 = vld [vmem:[%s3939_s28 + $0x18] sm:$0xff]  ;;  %v6361_v1 = vld [vmem:[%s3939_s28 + $0x20] sm:$0xff]  ;;  %v6364_v56 = vld [vmem:[%s3939_s28 + $0x28] sm:$0xff]  ;;  %v6393_v62 = vmul.f32 %v6349_v0, %v6349_v0  ;;  %v6409_v7 = vmul.f32 %v6352_v6, %v6352_v6  ;;  %v6425_v48 = vmul.f32 %v6355_v36, %v6355_v36 }
 0x1f3   : > { %v6367_v41 = vld [vmem:[%s3939_s28 + $0x30] sm:$0xff]  ;;  %v6370_v16 = vld [vmem:[%s3939_s28 + $0x38] sm:$0xff]  ;;  %v6373_v59 = vld [vmem:[%s3939_s28 + $0x40] sm:$0xff]  ;;  %v6441_v45 = vmul.f32 %v6358_v54, %v6358_v54  ;;  %v6457_v9 = vmul.f32 %v6361_v1, %v6361_v1  ;;  %v6473_v35 = vmul.f32 %v6364_v56, %v6364_v56 }
 0x1f4   : > { %v6376_v4 = vld [vmem:[%s3939_s28 + $0x48] sm:$0xff]  ;;  %v6380_v20 = vld [vmem:[%s3939_s28 + $0x50] sm:$0xff]  ;;  %v6383_v47 = vld [vmem:[%s3939_s28 + $0x58] sm:$0xff]  ;;  %v6489_v14 = vmul.f32 %v6367_v41, %v6367_v41  ;;  %v6505_v24 = vmul.f32 %v6370_v16, %v6370_v16  ;;  %v6521_v60 = vmul.f32 %v6373_v59, %v6373_v59 }
 0x1f5   : > { %v6386_v37 = vld [vmem:[%s3939_s28 + $0x60] sm:$0xff]  ;;  %v6396_v58 = vld [vmem:[%s3939_s28 + $0x68] sm:$0xff]  ;;  %v6399_v5 = vld [vmem:[%s3939_s28 + $0x70] sm:$0xff]  ;;  %v6537_v26 = vmul.f32 %v6376_v4, %v6376_v4  ;;  %v6553_v40 = vmul.f32 %v6380_v20, %v6380_v20  ;;  %v6569_v29 = vmul.f32 %v6383_v47, %v6383_v47 }
 0x1f6   : > { %v6402_v8 = vld [vmem:[%s3939_s28 + $0x78] sm:$0xff]  ;;  %v6412_v44 = vld [vmem:[%s3939_s28 + $0x80] sm:$0xff]  ;;  %v6415_v42 = vld [vmem:[%s3939_s28 + $0x88] sm:$0xff]  ;;  %v6585_v22 = vmul.f32 %v6386_v37, %v6386_v37  ;;  %v6598_v10 = vmul.f32 %v6396_v58, %v6396_v58 }
 0x1f7   : > { %v6418_v30 = vld [vmem:[%s3939_s28 + $0x90] sm:$0xff]  ;;  %v6428_v25 = vld [vmem:[%s3939_s28 + $0x98] sm:$0xff]  ;;  %v6431_v63 = vld [vmem:[%s3939_s28 + $0xa0] sm:$0xff] }
 0x1f8   : > { %v6434_v27 = vld [vmem:[%s3939_s28 + $0xa8] sm:$0xff]  ;;  %v6444_v12 = vld [vmem:[%s3939_s28 + $0xb0] sm:$0xff]  ;;  %v6447_v32 = vld [vmem:[%s3939_s28 + $0xb8] sm:$0xff]  ;;  %8262 = vst [vmem:[#allocation182_spill] sm:$0xff] %v6598_v10 }
 0x1f9   : > { %v6450_v57 = vld [vmem:[%s3939_s28 + $0xc0] sm:$0xff]  ;;  %v6460_v52 = vld [vmem:[%s3939_s28 + $0xc8] sm:$0xff]  ;;  %v6463_v15 = vld [vmem:[%s3939_s28 + $0xd0] sm:$0xff] }
 0x1fa   : > { %v6466_v13 = vld [vmem:[%s3939_s28 + $0xd8] sm:$0xff]  ;;  %v6476_v11 = vld [vmem:[%s3939_s28 + $0xe0] sm:$0xff]  ;;  %v6479_v21 = vld [vmem:[%s3939_s28 + $0xe8] sm:$0xff] }
 0x1fb   : > { %8239 = vst [vmem:[#allocation159_spill] sm:$0xff] %v6476_v11  ;;  %8240 = vst [vmem:[#allocation160_spill] sm:$0xff] %v6479_v21  ;;  %v6482_v43 = vld [vmem:[%s3939_s28 + $0xf0] sm:$0xff]  ;;  %v6492_v38 = vld [vmem:[%s3939_s28 + $0xf8] sm:$0xff]  ;;  %v6665_v21 = vmul.f32 %v6415_v42, %v6415_v42 }
 0x1fc   : > { %8241 = vst [vmem:[#allocation161_spill] sm:$0xff] %v6482_v43  ;;  %8242 = vst [vmem:[#allocation162_spill] sm:$0xff] %v6492_v38  ;;  %v6495_v51 = vld [vmem:[%s3939_s28 + $0x100] sm:$0xff]  ;;  %v6498_v55 = vld [vmem:[%s3939_s28 + $0x108] sm:$0xff]  ;;  %v6677_v43 = vmul.f32 %v6418_v30, %v6418_v30 }
 0x1fd   : > { %8243 = vst [vmem:[#allocation163_spill] sm:$0xff] %v6495_v51  ;;  %8244 = vst [vmem:[#allocation164_spill] sm:$0xff] %v6498_v55  ;;  %v6508_v28 = vld [vmem:[%s3939_s28 + $0x110] sm:$0xff]  ;;  %v6511_v34 = vld [vmem:[%s3939_s28 + $0x118] sm:$0xff]  ;;  %v6614_v55 = vmul.f32 %v6399_v5, %v6399_v5  ;;  %v6627_v51 = vmul.f32 %v6402_v8, %v6402_v8 }
 0x1fe   : > { %8245 = vst [vmem:[#allocation165_spill] sm:$0xff] %v6508_v28  ;;  %8246 = vst [vmem:[#allocation166_spill] sm:$0xff] %v6511_v34  ;;  %v6514_v31 = vld [vmem:[%s3939_s28 + $0x120] sm:$0xff]  ;;  %v6524_v39 = vld [vmem:[%s3939_s28 + $0x128] sm:$0xff] }
 0x1ff   : > { %8247 = vst [vmem:[#allocation167_spill] sm:$0xff] %v6514_v31  ;;  %8248 = vst [vmem:[#allocation168_spill] sm:$0xff] %v6524_v39  ;;  %v6527_v49 = vld [vmem:[%s3939_s28 + $0x130] sm:$0xff]  ;;  %v6530_v18 = vld [vmem:[%s3939_s28 + $0x138] sm:$0xff] }
 0x200   : > { %8249 = vst [vmem:[#allocation169_spill] sm:$0xff] %v6527_v49  ;;  %8250 = vst [vmem:[#allocation170_spill] sm:$0xff] %v6530_v18  ;;  %v6540_v23 = vld [vmem:[%s3939_s28 + $0x140] sm:$0xff]  ;;  %v6543_v33 = vld [vmem:[%s3939_s28 + $0x148] sm:$0xff] }
 0x201   : > { %8251 = vst [vmem:[#allocation171_spill] sm:$0xff] %v6540_v23  ;;  %8252 = vst [vmem:[#allocation172_spill] sm:$0xff] %v6543_v33  ;;  %v6546_v19 = vld [vmem:[%s3939_s28 + $0x150] sm:$0xff]  ;;  %v6556_v2 = vld [vmem:[%s3939_s28 + $0x158] sm:$0xff]  ;;  %v8272_v23 = vsub.f32 0.5, %v6349_v0 }
 0x202   : > { %8253 = vst [vmem:[#allocation173_spill] sm:$0xff] %v6546_v19  ;;  %8254 = vst [vmem:[#allocation174_spill] sm:$0xff] %v6556_v2  ;;  %v6559_v46 = vld [vmem:[%s3939_s28 + $0x160] sm:$0xff]  ;;  %v6562_v50 = vld [vmem:[%s3939_s28 + $0x168] sm:$0xff]  ;;  %v6648_v2 = vmul.f32 %v6412_v44, %v6412_v44 }
 0x203   : > { %8255 = vst [vmem:[#allocation175_spill] sm:$0xff] %v6559_v46  ;;  %8256 = vst [vmem:[#allocation176_spill] sm:$0xff] %v6562_v50  ;;  %v6572_v61 = vld [vmem:[%s3939_s28 + $0x170] sm:$0xff]  ;;  %v6575_v17 = vld [vmem:[%s3939_s28 + $0x178] sm:$0xff]  ;;  %v1833_v38 = vmax.f32 %v8272_v23, 0.0 }
 0x204   : > { %8257 = vst [vmem:[#allocation177_spill] sm:$0xff] %v6572_v61  ;;  %8258 = vst [vmem:[#allocation178_spill] sm:$0xff] %v6575_v17  ;;  %v6578_v53 = vld [vmem:[%s3939_s28 + $0x180] sm:$0xff]  ;;  %v6588_v31 = vld [vmem:[%s3939_s28 + $0x188] sm:$0xff]  ;;  %v8273_v17 = vsub.f32 0.5, %v6352_v6 }
 0x205   : > { %8259 = vst [vmem:[#allocation179_spill] sm:$0xff] %v6578_v53  ;;  %8260 = vst [vmem:[#allocation180_spill] sm:$0xff] %v6588_v31  ;;  %v6591_v34 = vld [vmem:[%s3939_s28 + $0x190] sm:$0xff]  ;;  %v6601_v3 = vld [vmem:[%s3939_s28 + $0x198] sm:$0xff]  ;;  %v8281_v31 = vsub.f32 0.5, %v6358_v54 }
 0x206   : > { %8261 = vst [vmem:[#allocation181_spill] sm:$0xff] %v6591_v34  ;;  %8263 = vst [vmem:[#allocation183_spill] sm:$0xff] %v6601_v3  ;;  %v6604_v18 = vld [vmem:[%s3939_s28 + $0x1a0] sm:$0xff]  ;;  %v6607_v49 = vld [vmem:[%s3939_s28 + $0x1a8] sm:$0xff]  ;;  %v1834_v39 = vmax.f32 %v8273_v17, 0.0  ;;  %v8287_v34 = vsub.f32 0.5, %v6364_v56  ;;  %v6708_v56 = vmul.f32 %v6431_v63, %v6431_v63 }
 0x207   : > { %8264 = vst [vmem:[#allocation184_spill] sm:$0xff] %v6604_v18  ;;  %8265 = vst [vmem:[#allocation185_spill] sm:$0xff] %v6607_v49  ;;  %v6617_v19 = vld [vmem:[%s3939_s28 + $0x1b0] sm:$0xff]  ;;  %v6620_v33 = vld [vmem:[%s3939_s28 + $0x1b8] sm:$0xff]  ;;  %v1836_v17 = vmax.f32 %v8281_v31, 0.0  ;;  %v6688_v31 = vmul.f32 %v6428_v25, %v6428_v25 }
 0x208   : > { %8266 = vst [vmem:[#allocation186_spill] sm:$0xff] %v6614_v55  ;;  %8267 = vst [vmem:[#allocation187_spill] sm:$0xff] %v6617_v19  ;;  %v6630_v28 = vld [vmem:[%s3939_s28 + $0x1c0] sm:$0xff]  ;;  %v6633_v50 = vld [vmem:[%s3939_s28 + $0x1c8] sm:$0xff]  ;;  %v2089_v19 = vmul.f32 %v1833_v38, %v1833_v38 }
 0x209   : > { %8268 = vst [vmem:[#allocation188_spill] sm:$0xff] %v6620_v33  ;;  %8269 = vst [vmem:[#allocation189_spill] sm:$0xff] %v6627_v51  ;;  %v1705_v53 = vld [vmem:[%s3946_s24] sm:$0xff]  ;;  %v1706_v61 = vld [vmem:[%s3946_s24 + $0x8] sm:$0xff]  ;;  %v8278_v51 = vsub.f32 0.5, %v6355_v36  ;;  %v2092_v11 = vmul.f32 %v1836_v17, %v1836_v17 }
 0x20a   : > { %8270 = vst [vmem:[#allocation190_spill] sm:$0xff] %v6630_v28  ;;  %8271 = vst [vmem:[#allocation191_spill] sm:$0xff] %v6633_v50  ;;  %v6651_v0 = vld [vmem:[%s3939_s28 + $0x1d0] sm:$0xff]  ;;  %v6654_v23 = vld [vmem:[%s3939_s28 + $0x1d8] sm:$0xff]  ;;  %v2026_v33 = vsub.f32 1.0, %v1706_v61  ;;  %v1961_v54 = vmul.f32 %v6393_v62, %v1705_v53 }
 0x20b   : > { %8274 = vst [vmem:[#allocation192_spill] sm:$0xff] %v6648_v2  ;;  %8275 = vst [vmem:[#allocation193_spill] sm:$0xff] %v6651_v0  ;;  %v6657_v6 = vld [vmem:[%s3939_s28 + $0x1e0] sm:$0xff]  ;;  %v1835_v46 = vmax.f32 %v8278_v51, 0.0  ;;  %v6668_v49 = vld [vmem:[%s3939_s28 + $0x1e8] sm:$0xff]  ;;  %v2025_v51 = vsub.f32 1.0, %v1705_v53  ;;  %v6712_v53 = vmul.f32 %v6434_v27, %v6434_v27 }
 0x20c   : > { %8276 = vst [vmem:[#allocation194_spill] sm:$0xff] %v6654_v23  ;;  %8277 = vst [vmem:[#allocation195_spill] sm:$0xff] %v6657_v6  ;;  %v1707_v18 = vld [vmem:[%s3946_s24 + $0x10] sm:$0xff]  ;;  %v1708_v2 = vld [vmem:[%s3946_s24 + $0x18] sm:$0xff]  ;;  %v1838_v23 = vmax.f32 %v8287_v34, 0.0  ;;  %v1962_v6 = vmul.f32 %v6409_v7, %v1706_v61  ;;  %v8289_v34 = vsub.f32 0.5, %v6370_v16 }
 0x20d   : > { %8279 = vst [vmem:[#allocation196_spill] sm:$0xff] %v6665_v21  ;;  %8280 = vst [vmem:[#allocation197_spill] sm:$0xff] %v6668_v49  ;;  %v6680_v36 = vld [vmem:[%s3939_s28 + $0x1f0] sm:$0xff]  ;;  %v2090_v21 = vmul.f32 %v1834_v39, %v1834_v39  ;;  %v6691_v50 = vld [vmem:[%s3939_s28 + $0x1f8] sm:$0xff]  ;;  %v2027_v39 = vsub.f32 1.0, %v1707_v18  ;;  %v2091_v55 = vmul.f32 %v1835_v46, %v1835_v46  ;;  %v2153_v28 = vmul.f32 %v2089_v19, %v2025_v51 }
 0x20e   : > { %8282 = vst [vmem:[#allocation198_spill] sm:$0xff] %v6677_v43  ;;  %8283 = vst [vmem:[#allocation199_spill] sm:$0xff] %v6680_v36  ;;  %v8286_v43 = vsub.f32 0.5, %v6361_v1  ;;  %v1709_v10 = vld [vmem:[%s3946_s24 + $0x20] sm:$0xff]  ;;  %v1710_v0 = vld [vmem:[%s3946_s24 + $0x28] sm:$0xff]  ;;  %v8288_v46 = vsub.f32 0.5, %v6367_v41  ;;  %v1963_v61 = vmul.f32 %v6425_v48, %v1707_v18  ;;  %v6720_v41 = vmul.f32 %v6444_v12, %v6444_v12 }
 0x20f   : > { %8284 = vst [vmem:[#allocation200_spill] sm:$0xff] %v6688_v31  ;;  %8285 = vst [vmem:[#allocation201_spill] sm:$0xff] %v6691_v50  ;;  %v2028_v31 = vsub.f32 1.0, %v1708_v2  ;;  %v2154_v1 = vmul.f32 %v2090_v21, %v2026_v33  ;;  %v2029_v62 = vsub.f32 1.0, %v1709_v10  ;;  %v2155_v19 = vmul.f32 %v2091_v55, %v2027_v39  ;;  %v1711_v33 = vld [vmem:[%s3946_s24 + $0x30] sm:$0xff] }
 0x210   : > { %v1837_v38 = vmax.f32 %v8286_v43, 0.0  ;;  %v1839_v49 = vmax.f32 %v8288_v46, 0.0  ;;  %v1840_v21 = vmax.f32 %v8289_v34, 0.0  ;;  %v1964_v17 = vmul.f32 %v6441_v45, %v1708_v2  ;;  %v1712_v46 = vld [vmem:[%s3946_s24 + $0x38] sm:$0xff]  ;;  %v1713_v2 = vld [vmem:[%s3946_s24 + $0x40] sm:$0xff] }
 0x211   : > { %v2030_v51 = vsub.f32 1.0, %v1710_v0  ;;  %v2094_v43 = vmul.f32 %v1838_v23, %v1838_v23  ;;  %v2156_v3 = vmul.f32 %v2092_v11, %v2028_v31  ;;  %v2217_v48 = vadd.f32 %v2153_v28, %v1961_v54  ;;  %v1714_v31 = vld [vmem:[%s3946_s24 + $0x48] sm:$0xff] }
 0x212   : > { %v2093_v7 = vmul.f32 %v1837_v38, %v1837_v38  ;;  %v2218_v18 = vadd.f32 %v2154_v1, %v1962_v6  ;;  %v8290_v38 = vsub.f32 0.5, %v6373_v59  ;;  %v8291_v39 = vsub.f32 0.5, %v6376_v4 }
 0x213   : > { %v6730_v34 = vmul.f32 %v6447_v32, %v6447_v32  ;;  %v1965_v50 = vmul.f32 %v6457_v9, %v1709_v10  ;;  %v2031_v45 = vsub.f32 1.0, %v1711_v33  ;;  %v2095_v36 = vmul.f32 %v1839_v49, %v1839_v49 }
 0x214   : > { %v1841_v55 = vmax.f32 %v8290_v38, 0.0  ;;  %v1842_v16 = vmax.f32 %v8291_v39, 0.0  ;;  %v2157_v11 = vmul.f32 %v2093_v7, %v2029_v62  ;;  %v2219_v23 = vadd.f32 %v2155_v19, %v1963_v61  ;;  %v1715_v39 = vld [vmem:[%s3946_s24 + $0x50] sm:$0xff] }
 0x215   : > { %v8292_v28 = vsub.f32 0.5, %v6380_v20  ;;  %v6738_v59 = vmul.f32 %v6450_v57, %v6450_v57  ;;  %v1966_v4 = vmul.f32 %v6473_v35, %v1710_v0  ;;  %v2032_v54 = vsub.f32 1.0, %v1712_v46 }
 0x216   : > { %v2096_v1 = vmul.f32 %v1840_v21, %v1840_v21  ;;  %v2158_v38 = vmul.f32 %v2094_v43, %v2030_v51  ;;  %v2220_v10 = vadd.f32 %v2156_v3, %v1964_v17  ;;  %v2474_v9 = vadd.f32 %v2218_v18, %v2217_v48  ;;  %v1716_v17 = vld [vmem:[%s3946_s24 + $0x58] sm:$0xff] }
 0x217   : > { %v1843_v6 = vmax.f32 %v8292_v28, 0.0  ;;  %8293 = vst [vmem:[#allocation202_spill] sm:$0xff] %v6738_v59  ;;  %v8294_v49 = vsub.f32 0.5, %v6383_v47  ;;  %v8295_v61 = vsub.f32 0.5, %v6386_v37  ;;  %v1967_v7 = vmul.f32 %v6489_v14, %v1711_v33 }
 0x218   : > { %v2033_v19 = vsub.f32 1.0, %v1713_v2  ;;  %v2097_v28 = vmul.f32 %v1841_v55, %v1841_v55  ;;  %v2159_v59 = vmul.f32 %v2095_v36, %v2031_v45  ;;  %v2221_v35 = vadd.f32 %v2157_v11, %v1965_v50  ;;  %v1717_v11 = vld [vmem:[%s3946_s24 + $0x60] sm:$0xff] }
 0x219   : > { %v1844_v62 = vmax.f32 %v8294_v49, 0.0  ;;  %v1845_v20 = vmax.f32 %v8295_v61, 0.0  ;;  %v2475_v0 = vadd.f32 %v2474_v9, %v2219_v23  ;;  %v8296_v43 = vsub.f32 0.5, %v6396_v58 }
 0x21a   : > { %v6752_v3 = vmul.f32 %v6460_v52, %v6460_v52  ;;  %v1968_v47 = vmul.f32 %v6505_v24, %v1712_v46  ;;  %v2034_v37 = vsub.f32 1.0, %v1714_v31  ;;  %v2098_v51 = vmul.f32 %v1842_v16, %v1842_v16 }
 0x21b   : > { %v1846_v21 = vmax.f32 %v8296_v43, 0.0  ;;  %v2160_v14 = vmul.f32 %v2096_v1, %v2032_v54  ;;  %v2222_v33 = vadd.f32 %v2158_v38, %v1966_v4  ;;  %v2476_v48 = vadd.f32 %v2475_v0, %v2220_v10  ;;  %v1718_v1 = vld [vmem:[%s3946_s24 + $0x68] sm:$0xff] }
 0x21c   : > { %v8297_v36 = vsub.f32 0.5, %v6399_v5  ;;  %v8298_v18 = vsub.f32 0.5, %v6402_v8  ;;  %v1969_v55 = vmul.f32 %v6521_v60, %v1713_v2  ;;  %v2035_v45 = vsub.f32 1.0, %v1715_v39 }
 0x21d   : > { %v2099_v23 = vmul.f32 %v1843_v6, %v1843_v6  ;;  %v2161_v9 = vmul.f32 %v2097_v28, %v2033_v19  ;;  %v2223_v24 = vadd.f32 %v2159_v59, %v1967_v7  ;;  %v2477_v46 = vadd.f32 %v2476_v48, %v2221_v35  ;;  %v1719_v19 = vld [vmem:[%s3946_s24 + $0x70] sm:$0xff] }
 0x21e   : > { %v1847_v50 = vmax.f32 %v8297_v36, 0.0  ;;  %v1848_v58 = vmax.f32 %v8298_v18, 0.0  ;;  %v8299_v16 = vsub.f32 0.5, %v6412_v44  ;;  %v6766_v4 = vmul.f32 %v6463_v15, %v6463_v15  ;;  %v1721_v18 = vld [vmem:[%s3946_s24 + $0x80] sm:$0xff] }
 0x21f   : > { %v1970_v5 = vmul.f32 %v6537_v26, %v1714_v31  ;;  %v2036_v8 = vsub.f32 1.0, %v1716_v17  ;;  %v2100_v38 = vmul.f32 %v1844_v62, %v1844_v62  ;;  %v2162_v60 = vmul.f32 %v2098_v51, %v2034_v37 }
 0x220   : > { %v1849_v54 = vmax.f32 %v8299_v16, 0.0  ;;  %v2224_v2 = vadd.f32 %v2160_v14, %v1968_v47  ;;  %v2478_v6 = vadd.f32 %v2477_v46, %v2222_v33  ;;  %v8300_v10 = vsub.f32 0.5, %v6415_v42  ;;  %v1720_v47 = vld [vmem:[%s3946_s24 + $0x78] sm:$0xff]  ;;  %v1722_v16 = vld [vmem:[%s3946_s24 + $0x88] sm:$0xff] }
 0x221   : > { %v8301_v49 = vsub.f32 0.5, %v6418_v30  ;;  %v1971_v61 = vmul.f32 %v6553_v40, %v1715_v39  ;;  %v2037_v7 = vsub.f32 1.0, %v1717_v11  ;;  %v2101_v28 = vmul.f32 %v1845_v20, %v1845_v20 }
 0x222   : > { %v1850_v59 = vmax.f32 %v8300_v10, 0.0  ;;  %v2163_v35 = vmul.f32 %v2099_v23, %v2035_v45  ;;  %v2225_v26 = vadd.f32 %v2161_v9, %v1969_v55  ;;  %v2479_v31 = vadd.f32 %v2478_v6, %v2223_v24  ;;  %v8306_v9 = vld [vmem:[#allocation159_spill] sm:$0xff] }
 0x223   : > { %v1851_v44 = vmax.f32 %v8301_v49, 0.0  ;;  %v8302_v62 = vsub.f32 0.5, %v6428_v25  ;;  %v6780_v43 = vmul.f32 %v6466_v13, %v6466_v13  ;;  %v1972_v42 = vmul.f32 %v6569_v29, %v1716_v17  ;;  %v1723_v49 = vld [vmem:[%s3946_s24 + $0x90] sm:$0xff] }
 0x224   : > { %v2038_v30 = vsub.f32 1.0, %v1718_v1  ;;  %v2102_v37 = vmul.f32 %v1846_v21, %v1846_v21  ;;  %v2164_v40 = vmul.f32 %v2100_v38, %v2036_v8  ;;  %v2226_v39 = vadd.f32 %v2162_v60, %v1970_v5 }
 0x225   : > { %v1852_v0 = vmax.f32 %v8302_v62, 0.0  ;;  %v2480_v20 = vadd.f32 %v2479_v31, %v2224_v2  ;;  %v8303_v51 = vsub.f32 0.5, %v6431_v63  ;;  %v8304_v33 = vsub.f32 0.5, %v6434_v27  ;;  %v8307_v27 = vld [vmem:[#allocation182_spill] sm:$0xff] }
 0x226   : > { %v1973_v48 = vmul.f32 %v6585_v22, %v1717_v11  ;;  %v2039_v36 = vsub.f32 1.0, %v1719_v19  ;;  %v2103_v55 = vmul.f32 %v1847_v50, %v1847_v50  ;;  %v2165_v29 = vmul.f32 %v2101_v28, %v2037_v7  ;;  %v8310_v2 = vld [vmem:[#allocation186_spill] sm:$0xff] }
 0x227   : > { %v1853_v14 = vmax.f32 %v8303_v51, 0.0  ;;  %v6788_v25 = vmax.f32 %v8304_v33, 0.0  ;;  %v2227_v17 = vadd.f32 %v2163_v35, %v1971_v61  ;;  %v2481_v21 = vadd.f32 %v2480_v20, %v2225_v26  ;;  %v8316_v51 = vld [vmem:[#allocation192_spill] sm:$0xff] }
 0x228   : > { %v8305_v45 = vsub.f32 0.5, %v6444_v12  ;;  %v6798_v63 = vmul.f32 %v8306_v9, %v8306_v9  ;;  %v1974_v24 = vmul.f32 %v8307_v27, %v1718_v1  ;;  %v2040_v46 = vsub.f32 1.0, %v1720_v47 }
 0x229   : > { %v2104_v22 = vmul.f32 %v1848_v58, %v1848_v58  ;;  %v2166_v11 = vmul.f32 %v2102_v37, %v2038_v30  ;;  %v2228_v50 = vadd.f32 %v2164_v40, %v1972_v42  ;;  %v2482_v5 = vadd.f32 %v2481_v21, %v2226_v39  ;;  %v1724_v42 = vld [vmem:[%s3946_s24 + $0x98] sm:$0xff] }
 0x22a   : > { %v6794_v23 = vmax.f32 %v8305_v45, 0.0  ;;  %v8308_v8 = vsub.f32 0.5, %v6447_v32  ;;  %v8309_v12 = vsub.f32 0.5, %v6450_v57  ;;  %v1975_v6 = vmul.f32 %v8310_v2, %v1719_v19  ;;  %v8312_v32 = vld [vmem:[#allocation160_spill] sm:$0xff]  ;;  %v8313_v57 = vld [vmem:[#allocation189_spill] sm:$0xff] }
 0x22b   : > { %v2041_v10 = vsub.f32 1.0, %v1721_v18  ;;  %v2105_v1 = vmul.f32 %v1849_v54, %v1849_v54  ;;  %v2167_v61 = vmul.f32 %v2103_v55, %v2039_v36  ;;  %v2229_v58 = vadd.f32 %v2165_v29, %v1973_v48  ;;  %v1725_v36 = vld [vmem:[%s3946_s24 + $0xa0] sm:$0xff] }
 0x22c   : > { %v6804_v38 = vmax.f32 %v8308_v8, 0.0  ;;  %v6808_v60 = vmax.f32 %v8309_v12, 0.0  ;;  %v2483_v7 = vadd.f32 %v2482_v5, %v2227_v17  ;;  %v8311_v28 = vsub.f32 0.5, %v6460_v52  ;;  %v8322_v12 = vld [vmem:[#allocation198_spill] sm:$0xff] }
 0x22d   : > { %v6818_v26 = vmul.f32 %v8312_v32, %v8312_v32  ;;  %v1976_v31 = vmul.f32 %v8313_v57, %v1720_v47  ;;  %v2042_v62 = vsub.f32 1.0, %v1722_v16  ;;  %v2106_v19 = vmul.f32 %v1850_v59, %v1850_v59  ;;  %v8325_v57 = vld [vmem:[#allocation200_spill] sm:$0xff] }
 0x22e   : > { %v6814_v35 = vmax.f32 %v8311_v28, 0.0  ;;  %v2168_v30 = vmul.f32 %v2104_v22, %v2040_v46  ;;  %v2230_v54 = vadd.f32 %v2166_v11, %v1974_v24  ;;  %v2484_v37 = vadd.f32 %v2483_v7, %v2228_v50  ;;  %v1726_v46 = vld [vmem:[%s3946_s24 + $0xa8] sm:$0xff] }
 0x22f   : > { %v8314_v40 = vsub.f32 0.5, %v6463_v15  ;;  %v8315_v52 = vsub.f32 0.5, %v6466_v13  ;;  %v1977_v33 = vmul.f32 %v8316_v51, %v1721_v18  ;;  %v2043_v48 = vsub.f32 1.0, %v1723_v49  ;;  %v8318_v15 = vld [vmem:[#allocation161_spill] sm:$0xff]  ;;  %v8319_v13 = vld [vmem:[#allocation196_spill] sm:$0xff] }
 0x230   : > { %v2107_v47 = vmul.f32 %v1851_v44, %v1851_v44  ;;  %v2169_v55 = vmul.f32 %v2105_v1, %v2041_v10  ;;  %v2231_v59 = vadd.f32 %v2167_v61, %v1975_v6  ;;  %v2485_v29 = vadd.f32 %v2484_v37, %v2229_v58  ;;  %v1727_v10 = vld [vmem:[%s3946_s24 + $0xb0] sm:$0xff]  ;;  %v8323_v58 = vld [vmem:[#allocation162_spill] sm:$0xff]  ;;  %v8328_v51 = vld [vmem:[#allocation164_spill] sm:$0xff] }
 0x231   : > { %v6824_v39 = vmax.f32 %v8314_v40, 0.0  ;;  %v6828_v20 = vmax.f32 %v8315_v52, 0.0  ;;  %v8317_v17 = vsub.f32 0.5, %v8306_v9  ;;  %v6838_v45 = vmul.f32 %v8318_v15, %v8318_v15  ;;  %v8326_v37 = vld [vmem:[#allocation163_spill] sm:$0xff] }
 0x232   : > { %v1978_v27 = vmul.f32 %v8319_v13, %v1722_v16  ;;  %v2044_v24 = vsub.f32 1.0, %v1724_v42  ;;  %v2108_v18 = vmul.f32 %v1852_v0, %v1852_v0  ;;  %v2170_v22 = vmul.f32 %v2106_v19, %v2042_v62  ;;  %v1728_v19 = vld [vmem:[%s3946_s24 + $0xb8] sm:$0xff] }
 0x233   : > { %v6834_v21 = vmax.f32 %v8317_v17, 0.0  ;;  %v2232_v44 = vadd.f32 %v2168_v30, %v1976_v31  ;;  %v2486_v11 = vadd.f32 %v2485_v29, %v2230_v54  ;;  %v8320_v50 = vsub.f32 0.5, %v8312_v32 }
 0x234   : > { %v8321_v9 = vsub.f32 0.5, %v8318_v15  ;;  %v1979_v2 = vmul.f32 %v8322_v12, %v1723_v49  ;;  %v2045_v6 = vsub.f32 1.0, %v1725_v36  ;;  %v2109_v16 = vmul.f32 %v1853_v14, %v1853_v14  ;;  %v8330_v15 = vld [vmem:[#allocation165_spill] sm:$0xff] }
 0x235   : > { %v6844_v5 = vmax.f32 %v8320_v50, 0.0  ;;  %v2171_v1 = vmul.f32 %v2107_v47, %v2043_v48  ;;  %v2233_v0 = vadd.f32 %v2169_v55, %v1977_v33  ;;  %v2487_v61 = vadd.f32 %v2486_v11, %v2231_v59  ;;  %v1729_v55 = vld [vmem:[%s3946_s24 + $0xc0] sm:$0xff]  ;;  %v8332_v50 = vld [vmem:[#allocation166_spill] sm:$0xff] }
 0x236   : > { %v6848_v8 = vmax.f32 %v8321_v9, 0.0  ;;  %v8324_v7 = vsub.f32 0.5, %v8323_v58  ;;  %v6858_v32 = vmul.f32 %v8323_v58, %v8323_v58  ;;  %v1980_v31 = vmul.f32 %v8325_v57, %v1724_v42 }
 0x237   : > { %v2046_v62 = vsub.f32 1.0, %v1726_v46  ;;  %v2110_v49 = vmul.f32 %v6788_v25, %v6788_v25  ;;  %v2172_v14 = vmul.f32 %v2108_v18, %v2044_v24  ;;  %v2234_v30 = vadd.f32 %v2170_v22, %v1978_v27 }
 0x238   : > { %v6854_v28 = vmax.f32 %v8324_v7, 0.0  ;;  %v2488_v54 = vadd.f32 %v2487_v61, %v2232_v44  ;;  %v8327_v40 = vsub.f32 0.5, %v8326_v37  ;;  %v8329_v33 = vsub.f32 0.5, %v8328_v51  ;;  %v8336_v7 = vld [vmem:[#allocation168_spill] sm:$0xff] }
 0x239   : > { %v1981_v47 = vmul.f32 %v6708_v56, %v1725_v36  ;;  %v2047_v42 = vsub.f32 1.0, %v1727_v10  ;;  %v2111_v59 = vmul.f32 %v6794_v23, %v6794_v23  ;;  %v2173_v25 = vmul.f32 %v2109_v16, %v2045_v6  ;;  %v1730_v36 = vld [vmem:[%s3946_s24 + $0xc8] sm:$0xff] }
 0x23a   : > { %v6866_v52 = vmax.f32 %v8327_v40, 0.0  ;;  %v6870_v48 = vmax.f32 %v8329_v33, 0.0  ;;  %v2235_v29 = vadd.f32 %v2171_v1, %v1979_v2  ;;  %v2489_v17 = vadd.f32 %v2488_v54, %v2233_v0  ;;  %v8334_v2 = vld [vmem:[#allocation167_spill] sm:$0xff] }
 0x23b   : > { %v8331_v13 = vsub.f32 0.5, %v8330_v15  ;;  %v6882_v24 = vmul.f32 %v8326_v37, %v8326_v37  ;;  %v1982_v18 = vmul.f32 %v6712_v53, %v1726_v46  ;;  %v2048_v56 = vsub.f32 1.0, %v1728_v19  ;;  %v1731_v46 = vld [vmem:[%s3946_s24 + $0xd0] sm:$0xff]  ;;  %v8338_v37 = vld [vmem:[#allocation169_spill] sm:$0xff] }
 0x23c   : > { %v2112_v22 = vmul.f32 %v6804_v38, %v6804_v38  ;;  %v2174_v23 = vmul.f32 %v2110_v49, %v2046_v62  ;;  %v2236_v44 = vadd.f32 %v2172_v14, %v1980_v31  ;;  %v2490_v11 = vadd.f32 %v2489_v17, %v2234_v30 }
 0x23d   : > { %v6878_v27 = vmax.f32 %v8331_v13, 0.0  ;;  %v8333_v9 = vsub.f32 0.5, %v8332_v50  ;;  %v8335_v6 = vsub.f32 0.5, %v8334_v2  ;;  %v1983_v1 = vmul.f32 %v6720_v41, %v1727_v10  ;;  %v1732_v10 = vld [vmem:[%s3946_s24 + $0xd8] sm:$0xff] }
 0x23e   : > { %v2049_v53 = vsub.f32 1.0, %v1729_v55  ;;  %v2113_v0 = vmul.f32 %v6808_v60, %v6808_v60  ;;  %v2175_v38 = vmul.f32 %v2111_v59, %v2047_v42  ;;  %v2237_v61 = vadd.f32 %v2173_v25, %v1981_v47  ;;  %v8340_v47 = vld [vmem:[#allocation170_spill] sm:$0xff] }
 0x23f   : > { %v6890_v12 = vmax.f32 %v8333_v9, 0.0  ;;  %v6894_v16 = vmax.f32 %v8335_v6, 0.0  ;;  %v2491_v58 = vadd.f32 %v2490_v11, %v2235_v29  ;;  %v8337_v57 = vsub.f32 0.5, %v8336_v7  ;;  %v1734_v11 = vld [vmem:[%s3946_s24 + $0xe8] sm:$0xff] }
 0x240   : > { %v6906_v62 = vmul.f32 %v8328_v51, %v8328_v51  ;;  %v1984_v49 = vmul.f32 %v6730_v34, %v1728_v19  ;;  %v2050_v41 = vsub.f32 1.0, %v1730_v36  ;;  %v2114_v14 = vmul.f32 %v6814_v35, %v6814_v35  ;;  %v8342_v51 = vld [vmem:[#allocation202_spill] sm:$0xff]  ;;  %v1733_v19 = vld [vmem:[%s3946_s24 + $0xe0] sm:$0xff] }
 0x241   : > { %v6902_v31 = vmax.f32 %v8337_v57, 0.0  ;;  %v2176_v60 = vmul.f32 %v2112_v22, %v2048_v56  ;;  %v2238_v30 = vadd.f32 %v2174_v23, %v1982_v18  ;;  %v2492_v54 = vadd.f32 %v2491_v58, %v2236_v44  ;;  %v8343_v18 = vld [vmem:[#allocation171_spill] sm:$0xff] }
 0x242   : > { %v8339_v40 = vsub.f32 0.5, %v8338_v37  ;;  %v8341_v42 = vsub.f32 0.5, %v8340_v47  ;;  %v1985_v25 = vmul.f32 %v8342_v51, %v1729_v55  ;;  %v2051_v34 = vsub.f32 1.0, %v1731_v46 }
 0x243   : > { %v2115_v29 = vmul.f32 %v6824_v39, %v6824_v39  ;;  %v2177_v35 = vmul.f32 %v2113_v0, %v2049_v53  ;;  %v2239_v17 = vadd.f32 %v2175_v38, %v1983_v1  ;;  %v2493_v13 = vadd.f32 %v2492_v54, %v2237_v61  ;;  %v8345_v53 = vld [vmem:[#allocation172_spill] sm:$0xff]  ;;  %v8347_v61 = vld [vmem:[#allocation173_spill] sm:$0xff] }
 0x244   : > { %v6914_v33 = vmax.f32 %v8339_v40, 0.0  ;;  %v6918_v59 = vmax.f32 %v8341_v42, 0.0  ;;  %v8344_v56 = vsub.f32 0.5, %v8343_v18  ;;  %v6930_v23 = vmul.f32 %v8330_v15, %v8330_v15 }
 0x245   : > { %v1986_v44 = vmul.f32 %v6752_v3, %v1730_v36  ;;  %v2052_v55 = vsub.f32 1.0, %v1732_v10  ;;  %v2116_v9 = vmul.f32 %v6828_v20, %v6828_v20  ;;  %v2178_v39 = vmul.f32 %v2114_v14, %v2050_v41  ;;  %v1735_v36 = vld [vmem:[%s3946_s24 + $0xf0] sm:$0xff]  ;;  %v8349_v14 = vld [vmem:[#allocation174_spill] sm:$0xff] }
 0x246   : > { %v6926_v22 = vmax.f32 %v8344_v56, 0.0  ;;  %v2240_v6 = vadd.f32 %v2176_v60, %v1984_v49  ;;  %v2494_v1 = vadd.f32 %v2493_v13, %v2238_v30  ;;  %v8346_v0 = vsub.f32 0.5, %v8345_v53  ;;  %v8353_v13 = vld [vmem:[#allocation176_spill] sm:$0xff] }
 0x247   : > { %v8348_v58 = vsub.f32 0.5, %v8347_v61  ;;  %v1987_v15 = vmul.f32 %v6766_v4, %v1731_v46  ;;  %v2053_v3 = vsub.f32 1.0, %v1733_v19  ;;  %v2117_v54 = vmul.f32 %v6834_v21, %v6834_v21  ;;  %v1736_v46 = vld [vmem:[%s3946_s24 + $0xf8] sm:$0xff] }
 0x248   : > { %v6938_v38 = vmax.f32 %v8346_v0, 0.0  ;;  %v2179_v20 = vmul.f32 %v2115_v29, %v2051_v34  ;;  %v2241_v41 = vadd.f32 %v2177_v35, %v1985_v25  ;;  %v2495_v49 = vadd.f32 %v2494_v1, %v2239_v17  ;;  %v8351_v29 = vld [vmem:[#allocation175_spill] sm:$0xff] }
 0x249   : > { %v6942_v57 = vmax.f32 %v8348_v58, 0.0  ;;  %v8350_v60 = vsub.f32 0.5, %v8349_v14  ;;  %v6954_v40 = vmul.f32 %v8332_v50, %v8332_v50  ;;  %v1988_v42 = vmul.f32 %v6780_v43, %v1732_v10  ;;  %v1737_v10 = vld [vmem:[%s3946_s24 + $0x100] sm:$0xff] }
 0x24a   : > { %v2054_v4 = vsub.f32 1.0, %v1734_v11  ;;  %v2118_v51 = vmul.f32 %v6844_v5, %v6844_v5  ;;  %v2180_v21 = vmul.f32 %v2116_v9, %v2052_v55  ;;  %v2242_v34 = vadd.f32 %v2178_v39, %v1986_v44  ;;  %v8355_v9 = vld [vmem:[#allocation177_spill] sm:$0xff] }
 0x24b   : > { %v6950_v30 = vmax.f32 %v8350_v60, 0.0  ;;  %v2496_v25 = vadd.f32 %v2495_v49, %v2240_v6  ;;  %v8352_v35 = vsub.f32 0.5, %v8351_v29  ;;  %v8354_v56 = vsub.f32 0.5, %v8353_v13 }
 0x24c   : > { %v1989_v50 = vmul.f32 %v6798_v63, %v1733_v19  ;;  %v2055_v43 = vsub.f32 1.0, %v1735_v36  ;;  %v2119_v0 = vmul.f32 %v6848_v8, %v6848_v8  ;;  %v2181_v5 = vmul.f32 %v2117_v54, %v2053_v3  ;;  %v1738_v19 = vld [vmem:[%s3946_s24 + $0x108] sm:$0xff] }
 0x24d   : > { %v6962_v17 = vmax.f32 %v8352_v35, 0.0  ;;  %v6966_v1 = vmax.f32 %v8354_v56, 0.0  ;;  %v2243_v55 = vadd.f32 %v2179_v20, %v1987_v15  ;;  %v2497_v44 = vadd.f32 %v2496_v25, %v2241_v41  ;;  %v8357_v54 = vld [vmem:[#allocation178_spill] sm:$0xff]  ;;  %v8359_v25 = vld [vmem:[#allocation179_spill] sm:$0xff] }
 0x24e   : > { %v8356_v39 = vsub.f32 0.5, %v8355_v9  ;;  %v6978_v58 = vmul.f32 %v8334_v2, %v8334_v2  ;;  %v1990_v49 = vmul.f32 %v6818_v26, %v1734_v11  ;;  %v2056_v63 = vsub.f32 1.0, %v1736_v46  ;;  %v1739_v11 = vld [vmem:[%s3946_s24 + $0x110] sm:$0xff] }
 0x24f   : > { %v2120_v60 = vmul.f32 %v6854_v28, %v6854_v28  ;;  %v2182_v8 = vmul.f32 %v2118_v51, %v2054_v4  ;;  %v2244_v3 = vadd.f32 %v2180_v21, %v1988_v42  ;;  %v2498_v15 = vadd.f32 %v2497_v44, %v2242_v34  ;;  %v8362_v51 = vld [vmem:[#allocation180_spill] sm:$0xff] }
 0x250   : > { %v6974_v6 = vmax.f32 %v8356_v39, 0.0  ;;  %v8358_v20 = vsub.f32 0.5, %v8357_v54  ;;  %v8360_v35 = vsub.f32 0.5, %v8359_v25  ;;  %v1991_v2 = vmul.f32 %v6838_v45, %v1735_v36  ;;  %v1740_v45 = vld [vmem:[%s3946_s24 + $0x118] sm:$0xff] }
 0x251   : > { %v2057_v26 = vsub.f32 1.0, %v1737_v10  ;;  %v2121_v39 = vmul.f32 %v6866_v52, %v6866_v52  ;;  %v2183_v28 = vmul.f32 %v2119_v0, %v2055_v43  ;;  %v2245_v4 = vadd.f32 %v2181_v5, %v1989_v50  ;;  %v8365_v50 = vld [vmem:[#allocation181_spill] sm:$0xff] }
 0x252   : > { %v6986_v41 = vmax.f32 %v8358_v20, 0.0  ;;  %v6990_v56 = vmax.f32 %v8360_v35, 0.0  ;;  %v2499_v42 = vadd.f32 %v2498_v15, %v2243_v55  ;;  %v8363_v21 = vsub.f32 0.5, %v8362_v51  ;;  %v8367_v55 = vld [vmem:[#allocation183_spill] sm:$0xff] }
 0x253   : > { %v1934_v44 = vmul.f32 %v8336_v7, %v8336_v7  ;;  %v1992_v20 = vmul.f32 %v6858_v32, %v1736_v46  ;;  %v2058_v35 = vsub.f32 1.0, %v1738_v19  ;;  %v2122_v36 = vmul.f32 %v6870_v48, %v6870_v48  ;;  %v1741_v46 = vld [vmem:[%s3946_s24 + $0x120] sm:$0xff] }
 0x254   : > { %8361 = vst [vmem:[#allocation159_spill] sm:$0xff] %v6990_v56  ;;  %v6998_v34 = vmax.f32 %v8363_v21, 0.0  ;;  %v2184_v56 = vmul.f32 %v2120_v60, %v2056_v63  ;;  %v2246_v52 = vadd.f32 %v2182_v8, %v1990_v49  ;;  %v2500_v43 = vadd.f32 %v2499_v42, %v2244_v3  ;;  %v8370_v60 = vld [vmem:[#allocation184_spill] sm:$0xff] }
 0x255   : > { %v8366_v0 = vsub.f32 0.5, %v8365_v50  ;;  %v8368_v15 = vsub.f32 0.5, %v8367_v55  ;;  %v1993_v7 = vmul.f32 %v6882_v24, %v1737_v10  ;;  %v2059_v32 = vsub.f32 1.0, %v1739_v11  ;;  %v1742_v24 = vld [vmem:[%s3946_s24 + $0x128] sm:$0xff] }
 0x256   : > { %8364 = vst [vmem:[#allocation182_spill] sm:$0xff] %v6998_v34  ;;  %v2123_v34 = vmul.f32 %v6878_v27, %v6878_v27  ;;  %v2185_v48 = vmul.f32 %v2121_v39, %v2057_v26  ;;  %v2247_v63 = vadd.f32 %v2183_v28, %v1991_v2  ;;  %v2501_v49 = vadd.f32 %v2500_v43, %v2245_v4  ;;  %v8373_v2 = vld [vmem:[#allocation185_spill] sm:$0xff]  ;;  %v8375_v4 = vld [vmem:[#allocation187_spill] sm:$0xff] }
 0x257   : > { %v7008_v5 = vmax.f32 %v8366_v0, 0.0  ;;  %v7012_v21 = vmax.f32 %v8368_v15, 0.0  ;;  %v8371_v8 = vsub.f32 0.5, %v8370_v60  ;;  %v1935_v42 = vmul.f32 %v8338_v37, %v8338_v37 }
 0x258   : > { %v1994_v0 = vmul.f32 %v6906_v62, %v1738_v19  ;;  %v2060_v15 = vsub.f32 1.0, %v1740_v45  ;;  %v2124_v10 = vmul.f32 %v6890_v12, %v6890_v12  ;;  %v2248_v27 = vadd.f32 %v2184_v56, %v1992_v20  ;;  %v1743_v19 = vld [vmem:[%s3946_s24 + $0x130] sm:$0xff]  ;;  %v8378_v20 = vld [vmem:[#allocation188_spill] sm:$0xff] }
 0x259   : > { %8369 = vst [vmem:[#allocation186_spill] sm:$0xff] %v7012_v21  ;;  %v7020_v3 = vmax.f32 %v8371_v8, 0.0  ;;  %v2186_v21 = vmul.f32 %v2122_v36, %v2058_v35  ;;  %v2502_v26 = vadd.f32 %v2501_v49, %v2246_v52  ;;  %v8374_v39 = vsub.f32 0.5, %v8373_v2 }
 0x25a   : > { %v8376_v43 = vsub.f32 0.5, %v8375_v4  ;;  %v1995_v37 = vmul.f32 %v6930_v23, %v1739_v11  ;;  %v2061_v62 = vsub.f32 1.0, %v1741_v46  ;;  %v2187_v12 = vmul.f32 %v2123_v34, %v2059_v32  ;;  %v1744_v23 = vld [vmem:[%s3946_s24 + $0x138] sm:$0xff] }
 0x25b   : > { %8372 = vst [vmem:[#allocation160_spill] sm:$0xff] %v7020_v3  ;;  %v7030_v28 = vmax.f32 %v8374_v39, 0.0  ;;  %v2125_v3 = vmul.f32 %v6894_v16, %v6894_v16  ;;  %v2249_v35 = vadd.f32 %v2185_v48, %v1993_v7  ;;  %v2503_v56 = vadd.f32 %v2502_v26, %v2247_v63  ;;  %v8381_v7 = vld [vmem:[#allocation190_spill] sm:$0xff]  ;;  %v8384_v63 = vld [vmem:[#allocation191_spill] sm:$0xff] }
 0x25c   : > { %v7034_v8 = vmax.f32 %v8376_v43, 0.0  ;;  %v8379_v36 = vsub.f32 0.5, %v8378_v20  ;;  %v1936_v49 = vmul.f32 %v8340_v47, %v8340_v47  ;;  %v1996_v39 = vmul.f32 %v6954_v40, %v1740_v45  ;;  %v1745_v45 = vld [vmem:[%s3946_s24 + $0x140] sm:$0xff] }
 0x25d   : > { %v2062_v43 = vsub.f32 1.0, %v1742_v24  ;;  %v2126_v11 = vmul.f32 %v6902_v31, %v6902_v31  ;;  %v2250_v16 = vadd.f32 %v2186_v21, %v1994_v0  ;;  %v2504_v34 = vadd.f32 %v2503_v56, %v2248_v27  ;;  %v8387_v0 = vld [vmem:[#allocation193_spill] sm:$0xff] }
 0x25e   : > { %8377 = vst [vmem:[#allocation189_spill] sm:$0xff] %v7034_v8  ;;  %v7042_v52 = vmax.f32 %v8379_v36, 0.0  ;;  %v2188_v8 = vmul.f32 %v2124_v10, %v2060_v15  ;;  %v8382_v32 = vsub.f32 0.5, %v8381_v7  ;;  %v8385_v26 = vsub.f32 0.5, %v8384_v63 }
 0x25f   : > { %v1997_v47 = vmul.f32 %v6978_v58, %v1741_v46  ;;  %v2063_v40 = vsub.f32 1.0, %v1743_v19  ;;  %v2189_v31 = vmul.f32 %v2125_v3, %v2061_v62  ;;  %v2251_v15 = vadd.f32 %v2187_v12, %v1995_v37  ;;  %v8390_v62 = vld [vmem:[#allocation194_spill] sm:$0xff] }
 0x260   : > { %8380 = vst [vmem:[#allocation192_spill] sm:$0xff] %v7042_v52  ;;  %v7052_v48 = vmax.f32 %v8382_v32, 0.0  ;;  %v7056_v36 = vmax.f32 %v8385_v26, 0.0  ;;  %v2127_v52 = vmul.f32 %v6914_v33, %v6914_v33  ;;  %v2505_v21 = vadd.f32 %v2504_v34, %v2249_v35  ;;  %v8392_v35 = vld [vmem:[#allocation195_spill] sm:$0xff] }
 0x261   : > { %v8388_v10 = vsub.f32 0.5, %v8387_v0  ;;  %v1937_v56 = vmul.f32 %v8343_v18, %v8343_v18  ;;  %v1998_v32 = vmul.f32 %v1934_v44, %v1742_v24  ;;  %v2064_v26 = vsub.f32 1.0, %v1744_v23  ;;  %v1747_v44 = vld [vmem:[%s3946_s24 + $0x150] sm:$0xff] }
 0x262   : > { %8383 = vst [vmem:[#allocation161_spill] sm:$0xff] %v7052_v48  ;;  %8386 = vst [vmem:[#allocation196_spill] sm:$0xff] %v7056_v36  ;;  %v1746_v36 = vld [vmem:[%s3946_s24 + $0x148] sm:$0xff]  ;;  %v2128_v58 = vmul.f32 %v6918_v59, %v6918_v59  ;;  %v2190_v46 = vmul.f32 %v2126_v11, %v2062_v43  ;;  %v2252_v33 = vadd.f32 %v2188_v8, %v1996_v39  ;;  %v8391_v37 = vsub.f32 0.5, %v8390_v62  ;;  %v8394_v8 = vld [vmem:[#allocation197_spill] sm:$0xff] }
 0x263   : > { %v7064_v27 = vmax.f32 %v8388_v10, 0.0  ;;  %v2506_v3 = vadd.f32 %v2505_v21, %v2250_v16  ;;  %v8393_v34 = vsub.f32 0.5, %v8392_v35  ;;  %v2065_v18 = vsub.f32 1.0, %v1745_v45 }
 0x264   : > { %v7073_v12 = vmax.f32 %v8391_v37, 0.0  ;;  %v2129_v24 = vmul.f32 %v6926_v22, %v6926_v22  ;;  %v2191_v48 = vmul.f32 %v2127_v52, %v2063_v40  ;;  %v2253_v59 = vadd.f32 %v2189_v31, %v1997_v47  ;;  %v8396_v40 = vld [vmem:[#allocation199_spill] sm:$0xff] }
 0x265   : > { %8389 = vst [vmem:[#allocation198_spill] sm:$0xff] %v7064_v27  ;;  %v7077_v10 = vmax.f32 %v8393_v34, 0.0  ;;  %v1999_v27 = vmul.f32 %v1935_v42, %v1743_v19  ;;  %v2507_v43 = vadd.f32 %v2506_v3, %v2251_v15  ;;  %v8395_v39 = vsub.f32 0.5, %v8394_v8  ;;  %v1748_v34 = vld [vmem:[%s3946_s24 + $0x158] sm:$0xff] }
 0x266   : > { %v1938_v16 = vmul.f32 %v8345_v53, %v8345_v53  ;;  %v2000_v21 = vmul.f32 %v1936_v49, %v1744_v23  ;;  %v2066_v37 = vsub.f32 1.0, %v1746_v36  ;;  %v2130_v42 = vmul.f32 %v6938_v38, %v6938_v38  ;;  %v1749_v53 = vld [vmem:[%s3946_s24 + $0x160] sm:$0xff] }
 0x267   : > { %v7084_v11 = vmax.f32 %v8395_v39, 0.0  ;;  %v2192_v19 = vmul.f32 %v2128_v58, %v2064_v26  ;;  %v2254_v22 = vadd.f32 %v2190_v46, %v1998_v32  ;;  %v2508_v52 = vadd.f32 %v2507_v43, %v2252_v33  ;;  %v8398_v58 = vld [vmem:[#allocation201_spill] sm:$0xff] }
 0x268   : > { %v8397_v47 = vsub.f32 0.5, %v8396_v40  ;;  %v1939_v15 = vmul.f32 %v8347_v61, %v8347_v61  ;;  %v2001_v3 = vmul.f32 %v1937_v56, %v1745_v45  ;;  %v2067_v39 = vsub.f32 1.0, %v1747_v44  ;;  %v1750_v61 = vld [vmem:[%s3946_s24 + $0x168] sm:$0xff] }
 0x269   : > { %v2131_v49 = vmul.f32 %v6942_v57, %v6942_v57  ;;  %v2193_v23 = vmul.f32 %v2129_v24, %v2065_v18  ;;  %v2255_v38 = vadd.f32 %v2191_v48, %v1999_v27  ;;  %v2509_v26 = vadd.f32 %v2508_v52, %v2253_v59  ;;  %v1751_v52 = vld [vmem:[%s3946_s24 + $0x170] sm:$0xff] }
 0x26a   : > { %v7093_v31 = vmax.f32 %v8397_v47, 0.0  ;;  %v8399_v32 = vsub.f32 0.5, %v8398_v58  ;;  %v1940_v33 = vmul.f32 %v8349_v14, %v8349_v14  ;;  %v2002_v43 = vmul.f32 %v1938_v16, %v1746_v36 }
 0x26b   : > { %v2068_v47 = vsub.f32 1.0, %v1748_v34  ;;  %v2132_v45 = vmul.f32 %v6950_v30, %v6950_v30  ;;  %v2194_v56 = vmul.f32 %v2130_v42, %v2066_v37  ;;  %v2256_v57 = vadd.f32 %v2192_v19, %v2000_v21  ;;  %v1752_v19 = vld [vmem:[%s3946_s24 + $0x178] sm:$0xff] }
 0x26c   : > { %v7102_v46 = vmax.f32 %v8399_v32, 0.0  ;;  %v2510_v18 = vadd.f32 %v2509_v26, %v2254_v22  ;;  %v1941_v48 = vmul.f32 %v8351_v29, %v8351_v29  ;;  %v1942_v27 = vmul.f32 %v8353_v13, %v8353_v13  ;;  %v1754_v32 = vld [vmem:[%s3946_s24 + $0x188] sm:$0xff] }
 0x26d   : > { %v2003_v24 = vmul.f32 %v1939_v15, %v1747_v44  ;;  %v2069_v59 = vsub.f32 1.0, %v1749_v53  ;;  %v2133_v14 = vmul.f32 %v6962_v17, %v6962_v17  ;;  %v2195_v36 = vmul.f32 %v2131_v49, %v2067_v39  ;;  %v1753_v49 = vld [vmem:[%s3946_s24 + $0x180] sm:$0xff] }
 0x26e   : > { %v2257_v16 = vadd.f32 %v2193_v23, %v2001_v3  ;;  %v2511_v30 = vadd.f32 %v2510_v18, %v2255_v38  ;;  %v1943_v21 = vmul.f32 %v8355_v9, %v8355_v9  ;;  %v1944_v37 = vmul.f32 %v8357_v54, %v8357_v54 }
 0x26f   : > { %v2004_v29 = vmul.f32 %v1940_v33, %v1748_v34  ;;  %v2070_v42 = vsub.f32 1.0, %v1750_v61  ;;  %v2134_v13 = vmul.f32 %v6966_v1, %v6966_v1  ;;  %v2196_v44 = vmul.f32 %v2132_v45, %v2068_v47 }
 0x270   : > { %v2258_v22 = vadd.f32 %v2194_v56, %v2002_v43  ;;  %v2512_v17 = vadd.f32 %v2511_v30, %v2256_v57  ;;  %v1945_v15 = vmul.f32 %v8359_v25, %v8359_v25  ;;  %v1946_v3 = vmul.f32 %v8362_v51, %v8362_v51  ;;  %v1755_v56 = vld [vmem:[%s3946_s24 + $0x190] sm:$0xff] }
 0x271   : > { %v2005_v9 = vmul.f32 %v1941_v48, %v1749_v53  ;;  %v2071_v39 = vsub.f32 1.0, %v1751_v52  ;;  %v2135_v54 = vmul.f32 %v6974_v6, %v6974_v6  ;;  %v2197_v34 = vmul.f32 %v2133_v14, %v2069_v59  ;;  %v1756_v59 = vld [vmem:[%s3946_s24 + $0x198] sm:$0xff] }
 0x272   : > { %v2259_v23 = vadd.f32 %v2195_v36, %v2003_v24  ;;  %v2513_v1 = vadd.f32 %v2512_v17, %v2257_v16  ;;  %v1947_v38 = vmul.f32 %v8365_v50, %v8365_v50  ;;  %v1948_v26 = vmul.f32 %v8367_v55, %v8367_v55  ;;  %v8400_v55 = vld [vmem:[#allocation159_spill] sm:$0xff] }
 0x273   : > { %v2006_v25 = vmul.f32 %v1942_v27, %v1750_v61  ;;  %v2072_v58 = vsub.f32 1.0, %v1752_v19  ;;  %v2136_v51 = vmul.f32 %v6986_v41, %v6986_v41  ;;  %v2198_v53 = vmul.f32 %v2134_v13, %v2070_v42  ;;  %v1757_v42 = vld [vmem:[%s3946_s24 + $0x1a0] sm:$0xff] }
 0x274   : > { %v2260_v33 = vadd.f32 %v2196_v44, %v2004_v29  ;;  %v2514_v6 = vadd.f32 %v2513_v1, %v2258_v22  ;;  %v1949_v43 = vmul.f32 %v8370_v60, %v8370_v60  ;;  %v1950_v47 = vmul.f32 %v8373_v2, %v8373_v2  ;;  %v8401_v2 = vld [vmem:[#allocation182_spill] sm:$0xff] }
 0x275   : > { %v2007_v50 = vmul.f32 %v1943_v21, %v1751_v52  ;;  %v2073_v45 = vsub.f32 1.0, %v1753_v49  ;;  %v2137_v61 = vmul.f32 %v8400_v55, %v8400_v55  ;;  %v2199_v57 = vmul.f32 %v2135_v54, %v2071_v39 }
 0x276   : > { %v2261_v18 = vadd.f32 %v2197_v34, %v2005_v9  ;;  %v2515_v41 = vadd.f32 %v2514_v6, %v2259_v23  ;;  %v1951_v48 = vmul.f32 %v8375_v4, %v8375_v4  ;;  %v1952_v27 = vmul.f32 %v8378_v20, %v8378_v20  ;;  %v1758_v9 = vld [vmem:[%s3946_s24 + $0x1a8] sm:$0xff]  ;;  %v8403_v23 = vld [vmem:[#allocation160_spill] sm:$0xff] }
 0x277   : > { %v2008_v60 = vmul.f32 %v1944_v37, %v1752_v19  ;;  %v2074_v24 = vsub.f32 1.0, %v1754_v32  ;;  %v2138_v52 = vmul.f32 %v8401_v2, %v8401_v2  ;;  %v2200_v14 = vmul.f32 %v2136_v51, %v2072_v58  ;;  %v1760_v6 = vld [vmem:[%s3946_s24 + $0x1b8] sm:$0xff] }
 0x278   : > { %v2262_v36 = vadd.f32 %v2198_v53, %v2006_v25  ;;  %v2516_v16 = vadd.f32 %v2515_v41, %v2260_v33  ;;  %v1953_v30 = vmul.f32 %v8381_v7, %v8381_v7  ;;  %v1954_v21 = vmul.f32 %v8384_v63, %v8384_v63  ;;  %v8402_v63 = vld [vmem:[#allocation186_spill] sm:$0xff]  ;;  %v8405_v2 = vld [vmem:[#allocation192_spill] sm:$0xff] }
 0x279   : > { %v2009_v4 = vmul.f32 %v1945_v15, %v1753_v49  ;;  %v2075_v29 = vsub.f32 1.0, %v1755_v56  ;;  %v2139_v20 = vmul.f32 %v7008_v5, %v7008_v5  ;;  %v2201_v37 = vmul.f32 %v2137_v61, %v2073_v45 }
 0x27a   : > { %v2263_v19 = vadd.f32 %v2199_v57, %v2007_v50  ;;  %v2517_v13 = vadd.f32 %v2516_v16, %v2261_v18  ;;  %v1955_v44 = vmul.f32 %v8387_v0, %v8387_v0  ;;  %v1956_v22 = vmul.f32 %v8390_v62, %v8390_v62  ;;  %v1761_v50 = vld [vmem:[%s3946_s24 + $0x1c0] sm:$0xff]  ;;  %v1764_v16 = vld [vmem:[%s3946_s24 + $0x1d8] sm:$0xff] }
 0x27b   : > { %v2010_v7 = vmul.f32 %v1946_v3, %v1754_v32  ;;  %v2076_v17 = vsub.f32 1.0, %v1756_v59  ;;  %v2140_v15 = vmul.f32 %v8402_v63, %v8402_v63  ;;  %v2202_v39 = vmul.f32 %v2138_v52, %v2074_v24  ;;  %v1759_v3 = vld [vmem:[%s3946_s24 + $0x1b0] sm:$0xff]  ;;  %v8404_v57 = vld [vmem:[#allocation189_spill] sm:$0xff] }
 0x27c   : > { %v2264_v49 = vadd.f32 %v2200_v14, %v2008_v60  ;;  %v2518_v5 = vadd.f32 %v2517_v13, %v2262_v36  ;;  %v1957_v54 = vmul.f32 %v8392_v35, %v8392_v35  ;;  %v7169_v0 = vmul.f32 %v8394_v8, %v8394_v8  ;;  %v2538_v14 = vld [vmem:[%s3939_s28 + $0x200] sm:$0xff]  ;;  %v1762_v36 = vld [vmem:[%s3946_s24 + $0x1c8] sm:$0xff]  ;;  %v2540_v63 = vld [vmem:[%s3939_s28 + $0x210] sm:$0xff] }
 0x27d   : > { %v2011_v34 = vmul.f32 %v1947_v38, %v1755_v56  ;;  %v2077_v62 = vsub.f32 1.0, %v1757_v42  ;;  %v2141_v1 = vmul.f32 %v8403_v23, %v8403_v23  ;;  %v2203_v25 = vmul.f32 %v2139_v20, %v2075_v29 }
 0x27e   : > { %v2265_v58 = vadd.f32 %v2201_v37, %v2009_v4  ;;  %v2519_v32 = vadd.f32 %v2518_v5, %v2263_v19  ;;  %v7176_v51 = vmul.f32 %v8396_v40, %v8396_v40  ;;  %v2012_v53 = vmul.f32 %v1948_v26, %v1756_v59  ;;  %v8406_v4 = vld [vmem:[#allocation161_spill] sm:$0xff] }
 0x27f   : > { %v2013_v33 = vmul.f32 %v1949_v43, %v1757_v42  ;;  %v2078_v35 = vsub.f32 1.0, %v1758_v9  ;;  %v2142_v8 = vmul.f32 %v7030_v28, %v7030_v28  ;;  %v2204_v38 = vmul.f32 %v2140_v15, %v2076_v17 }
 0x280   : > { %v2266_v45 = vadd.f32 %v2202_v39, %v2010_v7  ;;  %v2520_v56 = vadd.f32 %v2519_v32, %v2264_v49  ;;  %v2014_v55 = vmul.f32 %v1950_v47, %v1758_v9  ;;  %v2015_v61 = vmul.f32 %v1951_v48, %v1759_v3  ;;  %v2539_v47 = vld [vmem:[%s3939_s28 + $0x208] sm:$0xff]  ;;  %v1763_v48 = vld [vmem:[%s3946_s24 + $0x1d0] sm:$0xff]  ;;  %v1765_v7 = vld [vmem:[%s3946_s24 + $0x1e0] sm:$0xff] }
 0x281   : > { %v2079_v40 = vsub.f32 1.0, %v1759_v3  ;;  %v2143_v26 = vmul.f32 %v8404_v57, %v8404_v57  ;;  %v2016_v43 = vmul.f32 %v1952_v27, %v1760_v6  ;;  %v2205_v18 = vmul.f32 %v2141_v1, %v2077_v62  ;;  %v8408_v3 = vld [vmem:[#allocation198_spill] sm:$0xff] }
 0x282   : > { %v2267_v41 = vadd.f32 %v2203_v25, %v2011_v34  ;;  %v2521_v60 = vadd.f32 %v2520_v56, %v2265_v58  ;;  %v2017_v24 = vmul.f32 %v1953_v30, %v1761_v50  ;;  %v2080_v28 = vsub.f32 1.0, %v1760_v6  ;;  %v8407_v34 = vld [vmem:[#allocation196_spill] sm:$0xff]  ;;  %v2603_v57 = vld [vmem:[%s3946_s24 + $0x208] sm:$0xff] }
 0x283   : > { %v2081_v59 = vsub.f32 1.0, %v1761_v50  ;;  %v2144_v52 = vmul.f32 %v8405_v2, %v8405_v2  ;;  %v2145_v29 = vmul.f32 %v8406_v4, %v8406_v4  ;;  %v2206_v27 = vmul.f32 %v2142_v8, %v2078_v35  ;;  %v2602_v50 = vld [vmem:[%s3946_s24 + $0x200] sm:$0xff] }
 0x284   : > { %v2268_v42 = vadd.f32 %v2204_v38, %v2012_v53  ;;  %v2522_v20 = vadd.f32 %v2521_v60, %v2266_v45  ;;  %v2018_v30 = vmul.f32 %v1954_v21, %v1762_v36  ;;  %v2019_v37 = vmul.f32 %v1955_v44, %v1763_v48  ;;  %v1766_v21 = vld [vmem:[%s3946_s24 + $0x1e8] sm:$0xff] }
 0x285   : > { %v7193_v19 = vmul.f32 %v1956_v22, %v1764_v16  ;;  %v2207_v13 = vmul.f32 %v2143_v26, %v2079_v40  ;;  %v2269_v17 = vadd.f32 %v2205_v18, %v2013_v33  ;;  %v2666_v15 = vsub.f32 0.5, %v2538_v14  ;;  %v1767_v26 = vld [vmem:[%s3946_s24 + $0x1f0] sm:$0xff] }
 0x286   : > { %v2523_v9 = vadd.f32 %v2522_v20, %v2267_v41  ;;  %v2667_v39 = vsub.f32 0.5, %v2539_v47  ;;  %v2082_v49 = vsub.f32 1.0, %v1762_v36  ;;  %v2083_v5 = vsub.f32 1.0, %v1763_v48  ;;  %v2604_v36 = vld [vmem:[%s3946_s24 + $0x210] sm:$0xff] }
 0x287   : > { %v2146_v62 = vmul.f32 %v8407_v34, %v8407_v34  ;;  %v2147_v23 = vmul.f32 %v8408_v3, %v8408_v3  ;;  %v2208_v44 = vmul.f32 %v2144_v52, %v2080_v28  ;;  %v2209_v22 = vmul.f32 %v2145_v29, %v2081_v59 }
 0x288   : > { %v2270_v1 = vadd.f32 %v2206_v27, %v2014_v55  ;;  %v2524_v25 = vadd.f32 %v2523_v9, %v2268_v42  ;;  %v2021_v58 = vmul.f32 %v1957_v54, %v1765_v7  ;;  %v2084_v32 = vsub.f32 1.0, %v1764_v16 }
 0x289   : > { %v2085_v53 = vsub.f32 1.0, %v1765_v7  ;;  %v2668_v33 = vsub.f32 0.5, %v2540_v63  ;;  %v2271_v35 = vadd.f32 %v2207_v13, %v2015_v61  ;;  %v2730_v8 = vmax.f32 %v2666_v15, 0.0 }
 0x28a   : > { %v2525_v6 = vadd.f32 %v2524_v25, %v2269_v17  ;;  %v2731_v38 = vmax.f32 %v2667_v39, 0.0  ;;  %v2086_v45 = vsub.f32 1.0, %v1766_v21  ;;  %v2148_v56 = vmul.f32 %v7073_v12, %v7073_v12 }
 0x28b   : > { %v2149_v40 = vmul.f32 %v7077_v10, %v7077_v10  ;;  %v2210_v55 = vmul.f32 %v2146_v62, %v2082_v49  ;;  %v2211_v54 = vmul.f32 %v2147_v23, %v2083_v5  ;;  %v2272_v18 = vadd.f32 %v2208_v44, %v2016_v43  ;;  %v3632_v5 = vld [vmem:[%s3939_s28 + $0x1f8] sm:$0xff] }
 0x28c   : > { %v2273_v41 = vadd.f32 %v2209_v22, %v2017_v24  ;;  %v2526_v61 = vadd.f32 %v2525_v6, %v2270_v1  ;;  %v2732_v60 = vmax.f32 %v2668_v33, 0.0  ;;  %v2794_v28 = vmul.f32 %v2538_v14, %v2538_v14  ;;  %v1768_v24 = vld [vmem:[%s3946_s24 + $0x1f8] sm:$0xff] }
 0x28d   : > { %v2795_v59 = vmul.f32 %v2539_v47, %v2539_v47  ;;  %v2922_v2 = vsub.f32 1.0, %v2602_v50  ;;  %v2923_v48 = vsub.f32 1.0, %v2603_v57  ;;  %v2986_v16 = vmul.f32 %v2730_v8, %v2730_v8 }
 0x28e   : > { %v2527_v52 = vadd.f32 %v2526_v61, %v2271_v35  ;;  %v2987_v12 = vmul.f32 %v2731_v38, %v2731_v38  ;;  %v2087_v4 = vsub.f32 1.0, %v1767_v26  ;;  %v2150_v10 = vmul.f32 %v7084_v11, %v7084_v11 }
 0x28f   : > { %v2151_v43 = vmul.f32 %v7093_v31, %v7093_v31  ;;  %v2212_v29 = vmul.f32 %v2148_v56, %v2084_v32  ;;  %v2213_v27 = vmul.f32 %v2149_v40, %v2085_v53  ;;  %v2274_v42 = vadd.f32 %v2210_v55, %v2018_v30 }
 0x290   : > { %v2275_v14 = vadd.f32 %v2211_v54, %v2019_v37  ;;  %v2528_v47 = vadd.f32 %v2527_v52, %v2272_v18  ;;  %v2796_v20 = vmul.f32 %v2540_v63, %v2540_v63  ;;  %v2858_v13 = vmul.f32 %v2794_v28, %v2602_v50 }
 0x291   : > { %v2859_v7 = vmul.f32 %v2795_v59, %v2603_v57  ;;  %v2924_v17 = vsub.f32 1.0, %v2604_v36  ;;  %v2988_v15 = vmul.f32 %v2732_v60, %v2732_v60  ;;  %v3050_v39 = vmul.f32 %v2986_v16, %v2922_v2 }
 0x292   : > { %v2529_v9 = vadd.f32 %v2528_v47, %v2273_v41  ;;  %v3051_v49 = vmul.f32 %v2987_v12, %v2923_v48  ;;  %v1960_v11 = vmul.f32 %v3632_v5, %v3632_v5  ;;  %v2022_v34 = vmul.f32 %v7169_v0, %v1766_v21 }
 0x293   : > { %v2088_v62 = vsub.f32 1.0, %v1768_v24  ;;  %v2152_v31 = vmul.f32 %v7102_v46, %v7102_v46  ;;  %v2214_v3 = vmul.f32 %v2150_v10, %v2086_v45  ;;  %v2276_v30 = vadd.f32 %v2212_v29, %v7193_v19 }
 0x294   : > { %v2530_v37 = vadd.f32 %v2529_v9, %v2274_v42  ;;  %v2023_v63 = vmul.f32 %v7176_v51, %v1767_v26  ;;  %v2215_v23 = vmul.f32 %v2151_v43, %v2087_v4  ;;  %v2277_v44 = vadd.f32 %v2213_v27, %v2021_v58 }
 0x295   : > { %v2860_v22 = vmul.f32 %v2796_v20, %v2604_v36  ;;  %v3052_v25 = vmul.f32 %v2988_v15, %v2924_v17  ;;  %v3114_v32 = vadd.f32 %v3050_v39, %v2858_v13  ;;  %v3115_v53 = vadd.f32 %v3051_v49, %v2859_v7 }
 0x296   : > { %v2531_v1 = vadd.f32 %v2530_v37, %v2275_v14  ;;  %v2024_v33 = vmul.f32 %v1960_v11, %v1768_v24  ;;  %v2216_v0 = vmul.f32 %v2152_v31, %v2088_v62  ;;  %v2278_v21 = vadd.f32 %v2214_v3, %v2022_v34 }
 0x297   : > { %v2279_v6 = vadd.f32 %v2215_v23, %v2023_v63  ;;  %v3116_v50 = vadd.f32 %v3052_v25, %v2860_v22  ;;  %v3370_v8 = vadd.f32 %v3115_v53, %v3114_v32 }
 0x298   : > { %v2532_v35 = vadd.f32 %v2531_v1, %v2276_v30  ;;  %v2280_v19 = vadd.f32 %v2216_v0, %v2024_v33 }
 0x299   : > { %v3371_v51 = vadd.f32 %v3370_v8, %v3116_v50 }
 0x29a   : > { %v2533_v46 = vadd.f32 %v2532_v35, %v2277_v44 }
 0x29c   : > { %v2534_v38 = vadd.f32 %v2533_v46, %v2278_v21 }
 0x29e   : > { %v2535_v45 = vadd.f32 %v2534_v38, %v2279_v6 }
 0x2a0   : > { %v2536_v56 = vadd.f32 %v2535_v45, %v2280_v19 }
 0x2a2   : > { %v3433_v58 = vadd.f32 %v3371_v51, %v2536_v56 }
 0x2a4   : > { %3434 = vst [vmem:[%s3953_s25] sm:$0xff] %v3433_v58 }
 0x2a5 PF: > { %s3566_s20 = sshll.u32 %s3804_s13, 7  ;;  %s3449_s5 = sshll.u32 %s3953_s25, 4  ;;  %s3450_s5 = int_to_ptr.vmem [resolvable:$true] %s3449_s5 }
 0x2a6   : > { %s7226_s4 = scalar_lea.hbm %s7267_s2, %s3566_s20  ;;  %s3436_s8 = scalar_lea.sflag [#allocation4], %s3935_s29 }
 0x2a7   : > { %s3689_s14 = scalar_lea.vmem %s3450_s5, 128  ;;  %p8409_p3 = scmp.ne.s32.totalorder %s7479_s21, 0 }
 0x2a8   : > { %p3690_p1 = scmp.ne.s32.totalorder %s3450_s5, %s3689_s14  ;;  %s3767_s16 = smov [#allocation7]  }
 0x2a9   : > { %s3693_s23 = sshll.u32 %s3767_s16, 4  ;;  %s3694_s23 = int_to_ptr.vmem [resolvable:$false] %s3693_s23 }
 0x2aa   : > { %p3691_p4 = pnand %p3690_p1, %p8409_p3  ;;  %s3695_s27 = scalar_lea.vmem %s3694_s23, 256 }
 0x2ab   : > { %p3696_p7 = scmp.lt.s32.totalorder %s3450_s5, %s3694_s23  ;;  %p3697_p9 = scmp.lt.s32.totalorder %s3695_s27, %s3689_s14 }
 0x2ac   : > { %p3692_p8 = pneg %p3691_p4 }
 0x2ad   : > { %p3698_p10 = por %p3697_p9, %p3696_p7 }
 0x2af   : > { %p3699_p13 = pnand %p3698_p10, %p3692_p8 }
 0x2b1   : > { %3702 = shalt.err (!%p3699_p13)
}
 0x2b2   : > { %s3703_s13 = scalar_lea.hbm %s7226_s4, 128  ;;  %s3707_s6 = scalar_lea.hbm %s7267_s2, 256 }
 0x2b3   : > { %p3704_p2 = scmp.ne.s32.totalorder %s7226_s4, %s3703_s13  ;;  %p3708_p0 = scmp.lt.u32.totalorder %s7226_s4, %s7267_s2 }
 0x2b4   : > { %p3709_p5 = scmp.lt.u32.totalorder %s3707_s6, %s3703_s13  ;;  %p3711_p1 = scmp.lt.u32.totalorder %s3703_s13, %s7226_s4 }
 0x2b5   : > { %p3705_p11 = pnand %p3704_p2, %p8409_p3 }
 0x2b6   : > { %p3710_p6 = por %p3709_p5, %p3708_p0 }
 0x2b7   : > { %p3706_p12 = pneg %p3705_p11 }
 0x2b8   : > { %p3712_p4 = por %p3711_p1, %p3710_p6 }
 0x2ba   : > { %p3713_p8 = pnand %p3712_p4, %p3706_p12 }
 0x2bc   : > { %3716 = shalt.err (!%p3713_p8)
}
 0x2bd   : > { %3573 = dma.vmem_to_hbm [thread:$0]  (%p8409_p3), %s3450_s5, 128, %s7226_s4, %s3436_s8  }
 0x2be PF: > { %s3461_s17 = sand.u32 1, %s3747_s9   ;;  %p8410_p7 = scmp.ne.s32.totalorder %s7480_s22, 0 }
 0x2bf   : > { %p8411_p9 = scmp.ge.s32.totalorder %s3759_s12, 2  ;;  %s3462_s24 = scalar_lea.sflag [#allocation4], %s3461_s17 }
 0x2c1   : > { %p3576_p10 = pnand %p8411_p9, %p8410_p7 }
 0x2c3   : > { %3742 = dma.done.wait (!%p3576_p10), %s3462_s24, 128  }
 0x2c4   : > { %3744 = vsyncadd (!%p3576_p10), %s3462_s24, 4294967168  ;;  %p18_p13 = scmp.ge.s32.totalorder %s3808_s15, 4   ;;  %s8412_s9 = smov %s3751_s10 }
 0x2c5   : > { %s8413_s10 = smov %s3755_s11  ;;  %s8414_s11 = smov %s3820_s18 }
 0x2c6   : > { %s8415_s12 = smov %s3808_s15  ;;  %20 = sbr.rel (!%p18_p13) target bundleno = 7 (0x7), region = 94 }
 0x2cd   :  { %3467 = vsyncpa [#allocation3], 1 }
 0x2ce   :  { %3469 = vsyncpa [#allocation3 + $0x1], 1 }
 0x2cf   :  { %3470 = vsyncpa [#allocation6], 1 }
 0x2d0   :  { %3472 = vsyncpa [#allocation6 + $0x1], 1 }
 0x2d1   :  { %3473 = vsyncpa [#allocation4], 1 }
 0x2d2   :  { %3475 = vsyncpa [#allocation4 + $0x1], 1 }

</bundles_post_ra>
